<compile_context>
chip_gen: v5e
topology: v5e:2x2
jax: 0.10.0
libtpu: 0.0.40
codegen_flags: <defaults>
</compile_context>

<pallas_src>
import dataclasses
import functools
import math

import jax
import jax.numpy as jnp
from jax.experimental import pallas as pl
from jax.experimental.pallas import tpu as pltpu


def _round_up(x, m):
    return (x + m - 1) // m * m


@functools.lru_cache(maxsize=None)
def _vmem_budget_bytes():
    """~3/4 of physical VMEM (48 MiB on v7x, 96 MiB on v5e/v6e), capped."""
    try:
        cap = pltpu.get_tpu_info().vmem_capacity_bytes
    except Exception:
        cap = 64 * 1024 * 1024            # conservative (v7x-sized) fallback
    return int(min(cap * 3 // 4, 100 * 1024 * 1024))


def _choose_th(h_pad, th_max=1024):
    """Largest 128-aligned divisor of h_pad that is <= th_max (h_pad % 128 == 0)."""
    best, cand = 128, 128
    while cand <= min(th_max, h_pad):
        if h_pad % cand == 0:
            best = cand
        cand += 128
    return best


def _choose_tm(m, tm_max=512):
    """Row tile: multiple of 16 (bf16 packing); >= 2 blocks when M is large enough
    (feeds both v7x TensorCores); ~ceil(M/n_tiles) to limit padding waste."""
    m16 = _round_up(max(m, 1), 16)
    if m16 <= tm_max:
        if m16 >= 256:
            return _round_up(pl.cdiv(m16, 2), 16)
        return m16
    n_tiles = pl.cdiv(m16, tm_max)
    return _round_up(pl.cdiv(m16, n_tiles), 16)


@dataclasses.dataclass(frozen=True)
class FFNParams:
    w1: jax.Array        # resident: (n_h, D, th) bf16 ; streamed: (D, H_pad) bf16
    b1: jax.Array        # resident: (n_h, 1, th) f32  ; streamed: (1, H_pad) f32
    w2: jax.Array        # resident: (n_h, th, D) bf16 ; streamed: (H_pad, D) bf16
    b2: jax.Array        # (1, D) f32
    dim: int
    hidden: int
    hidden_pad: int
    th: int
    n_h: int
    resident: bool


def prepare_ffn_params(w1, b1, w2, b2, *, compute_dtype=jnp.bfloat16, th_max=1024):
    """One-time weight preparation (cast + pad + reshape). Cache and reuse across calls;
    keeping this out of the per-call path removes un-pipelined HBM cast passes."""
    d, h = w1.shape
    assert w2.shape == (h, d) and b1.shape == (h,) and b2.shape == (d,)

    h_pad = _round_up(h, 128)
    if h_pad != h:
        # Padded hidden units: ReLU(x @ 0 + 0) = 0 and zero W2 rows -> exact 0 contribution.
        w1 = jnp.pad(w1, ((0, 0), (0, h_pad - h)))
        b1 = jnp.pad(b1, (0, h_pad - h))
        w2 = jnp.pad(w2, ((0, h_pad - h), (0, 0)))

    th = _choose_th(h_pad, th_max)
    n_h = h_pad // th

    itemsize = jnp.finfo(compute_dtype).bits // 8
    w_bytes = 2 * d * h_pad * itemsize
    # Count weights twice (possible double-buffering) + headroom for x/out tiles + scratch.
    resident = 2 * w_bytes + (16 << 20) <= _vmem_budget_bytes()

    w1c = w1.astype(compute_dtype)
    w2c = w2.astype(compute_dtype)
    b1f = b1.astype(jnp.float32)
    b2f = b2.reshape(1, d).astype(jnp.float32)

    if resident:
        w1c = w1c.reshape(d, n_h, th).transpose(1, 0, 2)     # (n_h, D, th)
        b1f = b1f.reshape(n_h, 1, th)
        w2c = w2c.reshape(n_h, th, d)                        # (n_h, th, D)
    else:
        b1f = b1f.reshape(1, h_pad)

    return FFNParams(w1c, b1f, w2c, b2f, dim=d, hidden=h, hidden_pad=h_pad,
                     th=th, n_h=n_h, resident=resident)


def _ffn_resident_kernel(x_ref, w1_ref, b1_ref, w2_ref, b2_ref, o_ref,
                         *scratch, n_h, acc_is_out):
    # x_ref:(tm,D)  w1_ref:(n_h,D,th) bf16  b1_ref:(n_h,1,th) f32
    # w2_ref:(n_h,th,D) bf16  b2_ref:(1,D) f32  o_ref:(tm,D)
    acc_ref = o_ref if acc_is_out else scratch[0]
    x = x_ref[...].astype(w1_ref.dtype)                 # in-kernel bf16 cast
    # Fold b2 into the accumulator init (no epilogue add pass).
    acc_ref[...] = jnp.broadcast_to(b2_ref[...], acc_ref.shape)

    def h_step(hc):
        h = jnp.dot(x, w1_ref[hc], preferred_element_type=jnp.float32)
        h = jnp.maximum(h + b1_ref[hc], 0.0)            # bias + ReLU in f32
        acc_ref[...] += jnp.dot(h.astype(w2_ref.dtype), w2_ref[hc],
                                preferred_element_type=jnp.float32)

    if n_h <= 8:
        for hc in range(n_h):                           # static unroll, short H loops
            h_step(hc)
    else:
        @pl.loop(0, n_h)
        def _(hc):
            h_step(hc)

    if not acc_is_out:
        o_ref[...] = acc_ref[...].astype(o_ref.dtype)


def _ffn_streamed_kernel(x_ref, w1_ref, b1_ref, w2_ref, b2_ref, o_ref, acc_ref):
    # Fallback when W1/W2 do not fit VMEM: H is the last ("arbitrary") grid axis,
    # a (tm, D) f32 scratch carries the second matmul across H chunks.
    h_idx = pl.program_id(1)

    @pl.when(h_idx == 0)
    def _():
        acc_ref[...] = jnp.broadcast_to(b2_ref[...], acc_ref.shape)

    x = x_ref[...].astype(w1_ref.dtype)
    h = jnp.dot(x, w1_ref[...], preferred_element_type=jnp.float32)
    h = jnp.maximum(h + b1_ref[...], 0.0)
    acc_ref[...] += jnp.dot(h.astype(w2_ref.dtype), w2_ref[...],
                            preferred_element_type=jnp.float32)

    @pl.when(h_idx == pl.num_programs(1) - 1)
    def _():
        o_ref[...] = acc_ref[...].astype(o_ref.dtype)


def _streamed_weight_spec(shape, index_map):
    # 3-deep pipeline on streamed weights hides DMA jitter near the roofline
    # crossover; fall back to default double-buffering if unsupported.
    try:
        return pl.BlockSpec(shape, index_map, pipeline_mode=pl.Buffered(3))
    except TypeError:
        return pl.BlockSpec(shape, index_map)


def feed_forward(x, params: FFNParams, *, tm_max=512):
    """x: (..., D) -> (..., D). Linear(D,4D) -> ReLU -> Linear(4D,D)."""
    d = params.dim
    assert x.shape[-1] == d
    orig_shape = x.shape
    out_dtype = x.dtype

    x2d = x.reshape(-1, d)
    m = x2d.shape[0]
    tm = _choose_tm(m, tm_max)
    m_pad = _round_up(m, tm)
    if m_pad != m:
        x2d = jnp.pad(x2d, ((0, m_pad - m), (0, 0)))
    n_rows = m_pad // tm

    if params.resident:
        acc_is_out = out_dtype == jnp.float32
        kernel = functools.partial(_ffn_resident_kernel,
                                   n_h=params.n_h, acc_is_out=acc_is_out)
        grid = (n_rows,)
        in_specs = [
            pl.BlockSpec((tm, d), lambda i: (i, 0)),                 # x row tile (f32)
            pl.BlockSpec(params.w1.shape, lambda i: (0, 0, 0)),      # W1 resident
            pl.BlockSpec(params.b1.shape, lambda i: (0, 0, 0)),      # b1 resident
            pl.BlockSpec(params.w2.shape, lambda i: (0, 0, 0)),      # W2 resident
            pl.BlockSpec((1, d), lambda i: (0, 0)),                  # b2
        ]
        out_specs = pl.BlockSpec((tm, d), lambda i: (i, 0))
        scratch_shapes = [] if acc_is_out else [pltpu.VMEM((tm, d), jnp.float32)]
        dim_sem = ("parallel",)
    else:
        kernel = _ffn_streamed_kernel
        th = params.th
        grid = (n_rows, params.n_h)                    # reduction (H) axis last
        in_specs = [
            pl.BlockSpec((tm, d), lambda i, h: (i, 0)),              # x row tile
            _streamed_weight_spec((d, th), lambda i, h: (0, h)),     # W1 H-chunk
            pl.BlockSpec((1, th), lambda i, h: (0, h)),              # b1 H-chunk
            _streamed_weight_spec((th, d), lambda i, h: (h, 0)),     # W2 H-chunk
            pl.BlockSpec((1, d), lambda i, h: (0, 0)),               # b2
        ]
        out_specs = pl.BlockSpec((tm, d), lambda i, h: (i, 0))
        scratch_shapes = [pltpu.VMEM((tm, d), jnp.float32)]
        dim_sem = ("parallel", "arbitrary")

    out = pl.pallas_call(
        kernel,
        out_shape=jax.ShapeDtypeStruct((m_pad, d), out_dtype),
        grid_spec=pltpu.PrefetchScalarGridSpec(
            num_scalar_prefetch=0,
            grid=grid,
            in_specs=in_specs,
            out_specs=out_specs,
            scratch_shapes=scratch_shapes,
        ),
        compiler_params=pltpu.CompilerParams(
            dimension_semantics=dim_sem,
            vmem_limit_bytes=_vmem_budget_bytes(),
        ),
    )(x2d, params.w1, params.b1, params.w2, params.b2)

    if m_pad != m:
        out = out[:m]
    return out.reshape(orig_shape)


def init_params(key, dim_num):
    """Deterministic init mimicking nn.Linear (uniform +-1/sqrt(fan_in))."""
    hidden = dim_num * 4
    k1, k2, k3, k4 = jax.random.split(key, 4)
    bound1 = 1.0 / math.sqrt(dim_num)
    bound2 = 1.0 / math.sqrt(hidden)
    # Weights stored transposed relative to PyTorch: (in_features, out_features).
    w1 = jax.random.uniform(k1, (dim_num, hidden), jnp.float32, -bound1, bound1)
    b1 = jax.random.uniform(k2, (hidden,), jnp.float32, -bound1, bound1)
    w2 = jax.random.uniform(k3, (hidden, dim_num), jnp.float32, -bound2, bound2)
    b2 = jax.random.uniform(k4, (dim_num,), jnp.float32, -bound2, bound2)
    return w1, b1, w2, b2


if __name__ == "__main__":
    # Small shapes consistent with the module: (batch, seq, dim), hidden = 4*dim.
    batch, seq, dim = 2, 64, 256
    key = jax.random.PRNGKey(0)
    kx, kp = jax.random.split(key)
    x = jax.random.normal(kx, (batch, seq, dim), jnp.float32)
    w1, b1, w2, b2 = init_params(kp, dim)

    # Prepare (cast/pad/reshape) the weights ONCE; reuse across calls.
    params = prepare_ffn_params(w1, b1, w2, b2)

    out = jax.block_until_ready(feed_forward(x, params))
    assert out.shape == x.shape

    # Reference 1: bf16-rounded operands, f32 math (close to kernel numerics;
    # accumulation order may differ so a modest tolerance is used).
    xb = x.astype(jnp.bfloat16).astype(jnp.float32)
    w1b = w1.astype(jnp.bfloat16).astype(jnp.float32)
    w2b = w2.astype(jnp.bfloat16).astype(jnp.float32)
    h_ref = jnp.maximum(xb @ w1b + b1, 0.0)
    h_ref = h_ref.astype(jnp.bfloat16).astype(jnp.float32)
    ref_bf16 = h_ref @ w2b + b2
    assert jnp.allclose(out, ref_bf16, atol=1e-2, rtol=1e-2)

    # Reference 2: pure-f32 PyTorch module semantics (loose tolerance for bf16
    # matmul rounding).
    ref_f32 = jnp.maximum(x @ w1 + b1, 0.0) @ w2 + b2
    assert jnp.allclose(out, ref_f32, atol=6e-2, rtol=6e-2)

    print("KERNEL_OK")
</pallas_src>

<mosaic_0001>
module attributes {stable_mosaic.version = 11 : i64} {
  func.func @_ffn_resident_kernel(%arg0: i32, %arg1: memref<128x256xf32, #tpu.memory_space<vmem>>, %arg2: memref<1x256x1024xbf16, #tpu.memory_space<vmem>>, %arg3: memref<1x1x1024xf32, #tpu.memory_space<vmem>>, %arg4: memref<1x1024x256xbf16, #tpu.memory_space<vmem>>, %arg5: memref<1x256xf32, #tpu.memory_space<vmem>>, %arg6: memref<128x256xf32, #tpu.memory_space<vmem>>) attributes {dimension_semantics = [#tpu.dimension_semantics<parallel>], iteration_bounds = array<i64: 1>, scalar_prefetch = 0 : i64, scratch_operands = 0 : i64, tpu.core_type = #tpu.core_type<tc>, window_params = [{transform_indices = @transform_0, window_bounds = array<i64: 128, 256>}, {pipeline_mode = #tpu.pipeline_mode<synchronous>, transform_indices = @transform_1, window_bounds = array<i64: 1, 256, 1024>}, {pipeline_mode = #tpu.pipeline_mode<synchronous>, transform_indices = @transform_2, window_bounds = array<i64: 1, 1, 1024>}, {pipeline_mode = #tpu.pipeline_mode<synchronous>, transform_indices = @transform_3, window_bounds = array<i64: 1, 1024, 256>}, {pipeline_mode = #tpu.pipeline_mode<synchronous>, transform_indices = @transform_4, window_bounds = array<i64: 1, 256>}, {transform_indices = @transform_5, window_bounds = array<i64: 128, 256>}]} {
    %c0 = arith.constant 0 : index
    %c0_0 = arith.constant 0 : index
    %0 = vector.load %arg1[%c0, %c0_0] : memref<128x256xf32, #tpu.memory_space<vmem>>, vector<128x256xf32>
    %1 = arith.truncf %0 : vector<128x256xf32> to vector<128x256xbf16>
    %c0_1 = arith.constant 0 : index
    %c0_2 = arith.constant 0 : index
    %2 = vector.load %arg5[%c0_1, %c0_2] : memref<1x256xf32, #tpu.memory_space<vmem>>, vector<1x256xf32>
    %3 = vector.shape_cast %2 : vector<1x256xf32> to vector<1x256xf32>
    %4 = vector.broadcast %3 : vector<1x256xf32> to vector<128x256xf32>
    %c0_3 = arith.constant 0 : index
    %c0_4 = arith.constant 0 : index
    %5 = vector.load %arg6[%c0_3, %c0_4] : memref<128x256xf32, #tpu.memory_space<vmem>>, vector<128x256xf32>
    tpu.vector_store %arg6[%c0_3, %c0_4], %4 {strides = array<i32>} : memref<128x256xf32, #tpu.memory_space<vmem>>, vector<128x256xf32>,
    %c0_5 = arith.constant 0 : index
    %c0_6 = arith.constant 0 : index
    %c0_7 = arith.constant 0 : index
    %6 = vector.load %arg2[%c0_5, %c0_6, %c0_7] : memref<1x256x1024xbf16, #tpu.memory_space<vmem>>, vector<1x256x1024xbf16>
    %7 = vector.shape_cast %6 : vector<1x256x1024xbf16> to vector<256x1024xbf16>
    %cst = arith.constant dense<0.000000e+00> : vector<128x1024xf32>
    %8 = tpu.matmul %1, %7, %cst {dimension_numbers = #tpu.dot_dimension_numbers<[1], [0], [0], [1], [0, 0, 1, 1], [], []>} : vector<128x256xbf16>, vector<256x1024xbf16>, vector<128x1024xf32> -> vector<128x1024xf32>
    %c0_8 = arith.constant 0 : index
    %c0_9 = arith.constant 0 : index
    %c0_10 = arith.constant 0 : index
    %9 = vector.load %arg3[%c0_8, %c0_9, %c0_10] : memref<1x1x1024xf32, #tpu.memory_space<vmem>>, vector<1x1x1024xf32>
    %10 = vector.shape_cast %9 : vector<1x1x1024xf32> to vector<1x1024xf32>
    %11 = vector.broadcast %10 : vector<1x1024xf32> to vector<128x1024xf32>
    %12 = arith.addf %8, %11 : vector<128x1024xf32>
    %cst_11 = arith.constant 0.000000e+00 : f32
    %13 = vector.broadcast %cst_11 : f32 to vector<128x1024xf32>
    %14 = arith.maximumf %12, %13 : vector<128x1024xf32>
    %c0_12 = arith.constant 0 : index
    %c0_13 = arith.constant 0 : index
    %15 = vector.load %arg6[%c0_12, %c0_13] : memref<128x256xf32, #tpu.memory_space<vmem>>, vector<128x256xf32>
    %16 = arith.truncf %14 : vector<128x1024xf32> to vector<128x1024xbf16>
    %c0_14 = arith.constant 0 : index
    %c0_15 = arith.constant 0 : index
    %c0_16 = arith.constant 0 : index
    %17 = vector.load %arg4[%c0_14, %c0_15, %c0_16] : memref<1x1024x256xbf16, #tpu.memory_space<vmem>>, vector<1x1024x256xbf16>
    %18 = vector.shape_cast %17 : vector<1x1024x256xbf16> to vector<1024x256xbf16>
    %cst_17 = arith.constant dense<0.000000e+00> : vector<128x256xf32>
    %19 = tpu.matmul %16, %18, %cst_17 {dimension_numbers = #tpu.dot_dimension_numbers<[1], [0], [0], [1], [0, 0, 1, 1], [], []>} : vector<128x1024xbf16>, vector<1024x256xbf16>, vector<128x256xf32> -> vector<128x256xf32>
    %20 = arith.addf %15, %19 : vector<128x256xf32>
    %c0_18 = arith.constant 0 : index
    %c0_19 = arith.constant 0 : index
    %21 = vector.load %arg6[%c0_18, %c0_19] : memref<128x256xf32, #tpu.memory_space<vmem>>, vector<128x256xf32>
    tpu.vector_store %arg6[%c0_18, %c0_19], %20 {strides = array<i32>} : memref<128x256xf32, #tpu.memory_space<vmem>>, vector<128x256xf32>,
    return
  }
  func.func @transform_0(%arg0: i32) -> (i32, i32) {
    %c0_i32 = arith.constant 0 : i32
    %c0_i32_0 = arith.constant 0 : i32
    return %arg0, %c0_i32 : i32, i32
  }
  func.func @transform_1(%arg0: i32) -> (i32, i32, i32) {
    %c0_i32 = arith.constant 0 : i32
    %c0_i32_0 = arith.constant 0 : i32
    %c0_i32_1 = arith.constant 0 : i32
    %c0_i32_2 = arith.constant 0 : i32
    return %c0_i32, %c0_i32_0, %c0_i32_1 : i32, i32, i32
  }
  func.func @transform_2(%arg0: i32) -> (i32, i32, i32) {
    %c0_i32 = arith.constant 0 : i32
    %c0_i32_0 = arith.constant 0 : i32
    %c0_i32_1 = arith.constant 0 : i32
    %c0_i32_2 = arith.constant 0 : i32
    return %c0_i32, %c0_i32_0, %c0_i32_1 : i32, i32, i32
  }
  func.func @transform_3(%arg0: i32) -> (i32, i32, i32) {
    %c0_i32 = arith.constant 0 : i32
    %c0_i32_0 = arith.constant 0 : i32
    %c0_i32_1 = arith.constant 0 : i32
    %c0_i32_2 = arith.constant 0 : i32
    return %c0_i32, %c0_i32_0, %c0_i32_1 : i32, i32, i32
  }
  func.func @transform_4(%arg0: i32) -> (i32, i32) {
    %c0_i32 = arith.constant 0 : i32
    %c0_i32_0 = arith.constant 0 : i32
    %c0_i32_1 = arith.constant 0 : i32
    return %c0_i32, %c0_i32_0 : i32, i32
  }
  func.func @transform_5(%arg0: i32) -> (i32, i32) {
    %c0_i32 = arith.constant 0 : i32
    %c0_i32_0 = arith.constant 0 : i32
    return %arg0, %c0_i32 : i32, i32
  }
}

</mosaic_0001>

<bundles_post_ra>
// kernel: tpu_custom_call.1
= control target key start
LH: loop header
LB: loop body
LE: loop exit
PB: predicated region body
PF: predicated region fallthrough
CT: control target
= control target key end

     0   :  { %10 = vsyncpa [#allocation3], 0  ;;  %s5792_s0 = inlined_call_operand.hbm [shape: f32[128,256], index: 0, kind: input, shape index: {}]   ;;  %s5793_s1 = inlined_call_operand.hbm [shape: bf16[1,256,1024], index: 1, kind: input, shape index: {}]   ;;  %s5794_s2 = inlined_call_operand.hbm [shape: f32[1,1,1024], index: 2, kind: input, shape index: {}]   ;;  %s5795_s3 = inlined_call_operand.hbm [shape: bf16[1,1024,256], index: 3, kind: input, shape index: {}]   ;;  %s5796_s4 = inlined_call_operand.vmem [shape: f32[1,256], index: 4, kind: input, shape index: {}]   ;;  %s5797_s5 = inlined_call_operand.hbm [shape: f32[128,256], index: 5, kind: output, shape index: {}]  }
   0x1   :  { %11 = vsyncpa [#allocation6], 0 }
   0x2   :  { %12 = vsyncpa [#allocation9], 0  ;;  %s31_s20 = sshll.u32 %s5793_s1, 4  ;;  %s32_s20 = int_to_ptr.hbm [resolvable:$true] %s31_s20 }
   0x3   :  { %13 = vsyncpa [#allocation4], 0  ;;  %s5019_s21 = smov [#allocation5]   ;;  %s18_s25 = sshll.u32 %s5792_s0, 4  ;;  %s19_s25 = int_to_ptr.hbm [resolvable:$true] %s18_s25 }
   0x4   :  { %s33_s22 = sshll.u32 %s5019_s21, 4  ;;  %s5020_s26 = smov 512   ;;  %s34_s22 = int_to_ptr.vmem [resolvable:$true] %s33_s22 }
   0x5   :  { %s5021_s27 = smov 32   ;;  %s5022_s28 = smov [#allocation2]  }
   0x6   :  { %39 = dma.hbm_to_vmem [thread:$0]  %s32_s20, 16384, %s34_s22, [#allocation6], %s5020_s26, %s5020_s26, %s5021_s27  }
   0x7   :  { %s20_s29 = sshll.u32 %s5022_s28, 4  ;;  %s5023_s30 = smov 256   ;;  %s21_s29 = int_to_ptr.vmem [resolvable:$true] %s20_s29 }
   0x8   :  { %s5024_s6 = smov 16   ;;  %s45_s8 = sshll.u32 %s5794_s2, 4  ;;  %s46_s8 = int_to_ptr.hbm [resolvable:$true] %s45_s8 }
   0x9   :  { %26 = dma.hbm_to_vmem [thread:$0]  %s19_s25, 4096, %s21_s29, [#allocation3], %s5023_s30, %s5023_s30, %s5024_s6  }
   0xa   :  { %s5025_s9 = smov [#allocation7]   ;;  %s55_s12 = sshll.u32 %s5795_s3, 4  ;;  %s56_s12 = int_to_ptr.hbm [resolvable:$true] %s55_s12 }
   0xb   :  { %s47_s0 = sshll.u32 %s5025_s9, 4  ;;  %s5026_s13 = smov [#allocation8]   ;;  %s48_s0 = int_to_ptr.vmem [resolvable:$true] %s47_s0 }
   0xc   :  { %50 = dma.hbm_to_vmem [thread:$0]  %s46_s8, 128, %s48_s0, [#allocation6]  }
   0xd   :  { %s57_s14 = sshll.u32 %s5026_s13, 4  ;;  %s5027_s15 = smov 128   ;;  %s58_s14 = int_to_ptr.vmem [resolvable:$true] %s57_s14 }
   0xe   :  { %s5028_s16 = smov 8  }
   0xf   :  { %63 = dma.hbm_to_vmem [thread:$0]  %s56_s12, 16384, %s58_s14, [#allocation9], %s5027_s15, %s5027_s15, %s5028_s16  }
  0x10   :  { %5011 = dma.done.wait [#allocation3], 4096  }
  0x11   :  { %5012 = vsyncadd [#allocation3], 4294963200 }
  0x12   :  { %5013 = dma.done.wait [#allocation6], 16512  }
  0x13   :  { %5014 = vsyncadd [#allocation6], 4294950784 }
  0x14   :  { %5015 = dma.done.wait [#allocation9], 16384  }
  0x15   :  { %5016 = vsyncadd [#allocation9], 4294950912  ;;  %v3825_v0 = vld [vmem:[#allocation5 + $0x1c0] sm:$0xf]  ;;  %v4679_v5 = vld [vmem:[#allocation5 + $0x1c4] sm:$0xf] }
  0x16   :  { %v4683_v1 = vld [vmem:[#allocation5 + $0x1dc] sm:$0xf0]  ;;  %v3827_v6 = vld [vmem:[#allocation5 + $0x1e0] sm:$0xf0]  ;;  %s3584_s20 = sshll.u32 %s5797_s5, 4  ;;  %s3585_s20 = int_to_ptr.hbm [resolvable:$true] %s3584_s20 }
  0x17   :  { %v4081_v2 = vld [vmem:[#allocation5 + $0x3c0] sm:$0xf]  ;;  %v3826_v3 = vor.u32 %v4683_v1, %v3825_v0  ;;  %v3830_v8 = vor.u32 %v4679_v5, %v3827_v6  ;;  %v4743_v9 = vld [vmem:[#allocation5 + $0x3c4] sm:$0xf] }
  0x18   :  { %v4747_v4 = vld [vmem:[#allocation5 + $0x3dc] sm:$0xf0]  ;;  %v4083_v10 = vld [vmem:[#allocation5 + $0x3e0] sm:$0xf0] }
  0x19   :  { %v4082_v7 = vor.u32 %v4747_v4, %v4081_v2  ;;  %v3793_v11 = vld [vmem:[#allocation5 + $0x180] sm:$0xf]  ;;  %954 = vmatpush.bf16.msra.mxu0 %v3826_v3  ;;  %v4086_v12 = vor.u32 %v4743_v9, %v4083_v10  ;;  %1052 = vmatpush.bf16.msra.mxu2 %v3830_v8  ;;  %v4671_v18 = vld [vmem:[#allocation5 + $0x184] sm:$0xf] }
  0x1a   :  { %v4675_v13 = vld [vmem:[#allocation5 + $0x19c] sm:$0xf0]  ;;  %v3795_v19 = vld [vmem:[#allocation5 + $0x1a0] sm:$0xf0] }
  0x1b   :  { %v4049_v14 = vld [vmem:[#allocation5 + $0x380] sm:$0xf]  ;;  %1003 = vmatpush.bf16.msra.mxu1 %v4082_v7  ;;  %v3794_v16 = vor.u32 %v4675_v13, %v3793_v11  ;;  %v4735_v20 = vld [vmem:[#allocation5 + $0x384] sm:$0xf]  ;;  %1101 = vmatpush.bf16.msra.mxu3 %v4086_v12  ;;  %v3798_v21 = vor.u32 %v4671_v18, %v3795_v19 }
  0x1c   :  { %v4739_v15 = vld [vmem:[#allocation5 + $0x39c] sm:$0xf0]  ;;  %v4051_v22 = vld [vmem:[#allocation5 + $0x3a0] sm:$0xf0] }
  0x1d   :  { %v4050_v17 = vor.u32 %v4739_v15, %v4049_v14  ;;  %v3761_v23 = vld [vmem:[#allocation5 + $0x140] sm:$0xf]  ;;  %v4054_v25 = vor.u32 %v4735_v20, %v4051_v22  ;;  %v4663_v28 = vld [vmem:[#allocation5 + $0x144] sm:$0xf]  ;;  %955 = vmatpush.bf16.msra.mxu0 %v3794_v16  ;;  %1053 = vmatpush.bf16.msra.mxu2 %v3798_v21 }
  0x1e   :  { %v4667_v24 = vld [vmem:[#allocation5 + $0x15c] sm:$0xf0]  ;;  %v3763_v30 = vld [vmem:[#allocation5 + $0x160] sm:$0xf0] }
  0x1f   :  { %v4017_v26 = vld [vmem:[#allocation5 + $0x340] sm:$0xf]  ;;  %v3762_v29 = vor.u32 %v4667_v24, %v3761_v23  ;;  %v4727_v31 = vld [vmem:[#allocation5 + $0x344] sm:$0xf]  ;;  %1004 = vmatpush.bf16.msra.mxu1 %v4050_v17  ;;  %v3766_v34 = vor.u32 %v4663_v28, %v3763_v30  ;;  %1102 = vmatpush.bf16.msra.mxu3 %v4054_v25  ;;  %v3835_v30 = vld [vmem:[#allocation5 + $0x1e8] sm:$0xf0] }
  0x20   :  { %v4731_v27 = vld [vmem:[#allocation5 + $0x35c] sm:$0xf0]  ;;  %v4019_v32 = vld [vmem:[#allocation5 + $0x360] sm:$0xf0] }
  0x21   :  { %v4018_v33 = vor.u32 %v4731_v27, %v4017_v26  ;;  %v3729_v35 = vld [vmem:[#allocation5 + $0x100] sm:$0xf]  ;;  %v4022_v38 = vor.u32 %v4727_v31, %v4019_v32  ;;  %v4655_v40 = vld [vmem:[#allocation5 + $0x104] sm:$0xf]  ;;  %956 = vmatpush.bf16.msra.mxu0 %v3762_v29  ;;  %1054 = vmatpush.bf16.msra.mxu2 %v3766_v34  ;;  %v4680_v29 = vld [vmem:[#allocation5 + $0x1cc] sm:$0xf] }
  0x22   :  { %v4659_v36 = vld [vmem:[#allocation5 + $0x11c] sm:$0xf0]  ;;  %v3731_v41 = vld [vmem:[#allocation5 + $0x120] sm:$0xf0]  ;;  %v84_v32 = vld [vmem:[#allocation2 + $0x10] sm:$0xff] }
  0x23   :  { %v3985_v37 = vld [vmem:[#allocation5 + $0x300] sm:$0xf]  ;;  %v4719_v42 = vld [vmem:[#allocation5 + $0x304] sm:$0xf]  ;;  %v3730_v44 = vor.u32 %v4659_v36, %v3729_v35  ;;  %1005 = vmatpush.bf16.msra.mxu1 %v4018_v33  ;;  %v3734_v46 = vor.u32 %v4655_v40, %v3731_v41  ;;  %1103 = vmatpush.bf16.msra.mxu3 %v4022_v38  ;;  %v4744_v33 = vld [vmem:[#allocation5 + $0x3cc] sm:$0xf]  ;;  %v3838_v40 = vor.u32 %v4680_v29, %v3835_v30 }
  0x24   :  { %v4723_v39 = vld [vmem:[#allocation5 + $0x31c] sm:$0xf0]  ;;  %v3987_v43 = vld [vmem:[#allocation5 + $0x320] sm:$0xf0]  ;;  %v4091_v34 = vld [vmem:[#allocation5 + $0x3e8] sm:$0xf0] }
  0x25   :  { %v3986_v45 = vor.u32 %v4723_v39, %v3985_v37  ;;  %v3697_v47 = vld [vmem:[#allocation5 + $0xc0] sm:$0xf]  ;;  %v3990_v50 = vor.u32 %v4719_v42, %v3987_v43  ;;  %v4647_v52 = vld [vmem:[#allocation5 + $0xc4] sm:$0xf]  ;;  %957 = vmatpush.bf16.msra.mxu0 %v3730_v44  ;;  %1055 = vmatpush.bf16.msra.mxu2 %v3734_v46  ;;  %v83_v37 = vld [vmem:[#allocation2 + $0x8] sm:$0xff] }
  0x26   :  { %v4651_v48 = vld [vmem:[#allocation5 + $0xdc] sm:$0xf0]  ;;  %v3699_v53 = vld [vmem:[#allocation5 + $0xe0] sm:$0xf0]  ;;  %v85_v38 = vld [vmem:[#allocation2 + $0x18] sm:$0xff] }
  0x27   :  { %v3953_v49 = vld [vmem:[#allocation5 + $0x2c0] sm:$0xf]  ;;  %v4711_v54 = vld [vmem:[#allocation5 + $0x2c4] sm:$0xf]  ;;  %v3698_v56 = vor.u32 %v4651_v48, %v3697_v47  ;;  %1006 = vmatpush.bf16.msra.mxu1 %v3986_v45  ;;  %v3702_v58 = vor.u32 %v4647_v52, %v3699_v53  ;;  %1104 = vmatpush.bf16.msra.mxu3 %v3990_v50  ;;  %v3833_v41 = vld [vmem:[#allocation5 + $0x1c8] sm:$0xf]  ;;  %v4094_v45 = vor.u32 %v4744_v33, %v4091_v34 }
  0x28   :  { %v4715_v51 = vld [vmem:[#allocation5 + $0x2dc] sm:$0xf0]  ;;  %v3955_v55 = vld [vmem:[#allocation5 + $0x2e0] sm:$0xf0]  ;;  %v4684_v42 = vld [vmem:[#allocation5 + $0x1e4] sm:$0xf0] }
  0x29   :  { %v3954_v57 = vor.u32 %v4715_v51, %v3953_v49  ;;  %v3665_v59 = vld [vmem:[#allocation5 + $0x80] sm:$0xf]  ;;  %v3958_v62 = vor.u32 %v4711_v54, %v3955_v55  ;;  %v4639_v0 = vld [vmem:[#allocation5 + $0x84] sm:$0xf]  ;;  %958 = vmatpush.bf16.msra.mxu0 %v3698_v56  ;;  %1056 = vmatpush.bf16.msra.mxu2 %v3702_v58  ;;  %v4089_v43 = vld [vmem:[#allocation5 + $0x3c8] sm:$0xf]  ;;  %v5077_v49 = vpack.c.bf16 %v85_v38, %v83_v37 }
  0x2a   :  { %v4643_v60 = vld [vmem:[#allocation5 + $0x9c] sm:$0xf0]  ;;  %v3667_v1 = vld [vmem:[#allocation5 + $0xa0] sm:$0xf0]  ;;  %v4748_v46 = vld [vmem:[#allocation5 + $0x3e4] sm:$0xf0]  ;;  %v3834_v52 = vor.u32 %v4684_v42, %v3833_v41 }
  0x2b   :  { %v3921_v61 = vld [vmem:[#allocation5 + $0x280] sm:$0xf]  ;;  %v4703_v2 = vld [vmem:[#allocation5 + $0x284] sm:$0xf]  ;;  %v3666_v4 = vor.u32 %v4643_v60, %v3665_v59  ;;  %1007 = vmatpush.bf16.msra.mxu1 %v3954_v57  ;;  %v3670_v6 = vor.u32 %v4639_v0, %v3667_v1  ;;  %1105 = vmatpush.bf16.msra.mxu3 %v3958_v62  ;;  %v4672_v47 = vld [vmem:[#allocation5 + $0x18c] sm:$0xf]  ;;  %v4090_v53 = vor.u32 %v4748_v46, %v4089_v43 }
  0x2c   :  { %v4707_v63 = vld [vmem:[#allocation5 + $0x29c] sm:$0xf0]  ;;  %v3923_v3 = vld [vmem:[#allocation5 + $0x2a0] sm:$0xf0]  ;;  %v3803_v48 = vld [vmem:[#allocation5 + $0x1a8] sm:$0xf0] }
  0x2d   :  { %v3922_v5 = vor.u32 %v4707_v63, %v3921_v61  ;;  %v3633_v7 = vld [vmem:[#allocation5 + $0x40] sm:$0xf]  ;;  %v3926_v10 = vor.u32 %v4703_v2, %v3923_v3  ;;  %v4631_v12 = vld [vmem:[#allocation5 + $0x44] sm:$0xf]  ;;  %959 = vmatpush.bf16.msra.mxu0 %v3666_v4  ;;  %1057 = vmatpush.bf16.msra.mxu2 %v3670_v6  ;;  %v4736_v50 = vld [vmem:[#allocation5 + $0x38c] sm:$0xf]  ;;  %v3806_v54 = vor.u32 %v4672_v47, %v3803_v48 }
  0x2e   :  { %v4635_v8 = vld [vmem:[#allocation5 + $0x5c] sm:$0xf0]  ;;  %v3635_v13 = vld [vmem:[#allocation5 + $0x60] sm:$0xf0]  ;;  %v4059_v51 = vld [vmem:[#allocation5 + $0x3a8] sm:$0xf0] }
  0x2f   :  { %v3889_v9 = vld [vmem:[#allocation5 + $0x240] sm:$0xf]  ;;  %v4695_v14 = vld [vmem:[#allocation5 + $0x244] sm:$0xf]  ;;  %v3634_v16 = vor.u32 %v4635_v8, %v3633_v7  ;;  %1008 = vmatpush.bf16.msra.mxu1 %v3922_v5  ;;  %v3638_v20 = vor.u32 %v4631_v12, %v3635_v13  ;;  %1106 = vmatpush.bf16.msra.mxu3 %v3926_v10  ;;  %v3801_v55 = vld [vmem:[#allocation5 + $0x188] sm:$0xf]  ;;  %v4062_v57 = vor.u32 %v4736_v50, %v4059_v51 }
  0x30   :  { %v4699_v11 = vld [vmem:[#allocation5 + $0x25c] sm:$0xf0]  ;;  %v3891_v15 = vld [vmem:[#allocation5 + $0x260] sm:$0xf0]  ;;  %v4676_v56 = vld [vmem:[#allocation5 + $0x1a4] sm:$0xf0] }
  0x31   :  { %v3601_v17 = vld [vmem:[#allocation5] sm:$0xf]  ;;  %v3890_v19 = vor.u32 %v4699_v11, %v3889_v9  ;;  %v4623_v23 = vld [vmem:[#allocation5 + $0x4] sm:$0xf]  ;;  %v3894_v24 = vor.u32 %v4695_v14, %v3891_v15  ;;  %960 = vmatpush.bf16.msra.mxu0 %v3634_v16  ;;  %1058 = vmatpush.bf16.msra.mxu2 %v3638_v20  ;;  %v4057_v58 = vld [vmem:[#allocation5 + $0x388] sm:$0xf]  ;;  %v3802_v60 = vor.u32 %v4676_v56, %v3801_v55 }
  0x32   :  { %v4627_v18 = vld [vmem:[#allocation5 + $0x1c] sm:$0xf0]  ;;  %v3603_v25 = vld [vmem:[#allocation5 + $0x20] sm:$0xf0]  ;;  %v4740_v59 = vld [vmem:[#allocation5 + $0x3a4] sm:$0xf0] }
  0x33   :  { %v3857_v21 = vld [vmem:[#allocation5 + $0x200] sm:$0xf]  ;;  %v4687_v26 = vld [vmem:[#allocation5 + $0x204] sm:$0xf]  ;;  %v3602_v31 = vor.u32 %v4627_v18, %v3601_v17  ;;  %1009 = vmatpush.bf16.msra.mxu1 %v3890_v19  ;;  %v3606_v36 = vor.u32 %v4623_v23, %v3603_v25  ;;  %1107 = vmatpush.bf16.msra.mxu3 %v3894_v24  ;;  %v4664_v61 = vld [vmem:[#allocation5 + $0x14c] sm:$0xf]  ;;  %v4058_v0 = vor.u32 %v4740_v59, %v4057_v58 }
  0x34   :  { %v4691_v22 = vld [vmem:[#allocation5 + $0x21c] sm:$0xf0]  ;;  %v3859_v27 = vld [vmem:[#allocation5 + $0x220] sm:$0xf0]  ;;  %v3771_v62 = vld [vmem:[#allocation5 + $0x168] sm:$0xf0] }
  0x35   :  { %v82_v28 = vld [vmem:[#allocation2] sm:$0xff]  ;;  %v3858_v35 = vor.u32 %v4691_v22, %v3857_v21  ;;  %v3862_v39 = vor.u32 %v4687_v26, %v3859_v27  ;;  %961 = vmatpush.bf16.msra.mxu0 %v3602_v31  ;;  %1059 = vmatpush.bf16.msra.mxu2 %v3606_v36  ;;  %v3769_v63 = vld [vmem:[#allocation5 + $0x148] sm:$0xf]  ;;  %v3774_v1 = vor.u32 %v4664_v61, %v3771_v62  ;;  %v4728_v3 = vld [vmem:[#allocation5 + $0x34c] sm:$0xf] }
  0x36   :  { %v5075_v44 = vpack.c.bf16 %v84_v32, %v82_v28  ;;  %v4668_v2 = vld [vmem:[#allocation5 + $0x164] sm:$0xf0]  ;;  %v4027_v4 = vld [vmem:[#allocation5 + $0x368] sm:$0xf0]  ;;  %v86_v10 = vld [vmem:[#allocation2 + $0x20] sm:$0xff] }
  0x37   :  { %1010 = vmatpush.bf16.msra.mxu1 %v3858_v35  ;;  %1108 = vmatpush.bf16.msra.mxu3 %v3862_v39  ;;  %v4030_v5 = vor.u32 %v4728_v3, %v4027_v4  ;;  %v4025_v6 = vld [vmem:[#allocation5 + $0x348] sm:$0xf]  ;;  %v3770_v8 = vor.u32 %v4668_v2, %v3769_v63  ;;  %v88_v11 = vld [vmem:[#allocation2 + $0x30] sm:$0xff]  ;;  %v89_v13 = vld [vmem:[#allocation2 + $0x38] sm:$0xff] }
  0x38   :  { %962 = vmatmul.bf16.vlgmr.msra.gmra.mxu0 %v5075_v44  ;;  %1060 = vmatmul.bf16.vlgmr.msra.gmra.mxu2 %v5075_v44  ;;  %v4732_v7 = vld [vmem:[#allocation5 + $0x364] sm:$0xf0]  ;;  %v5083_v14 = vpack.c.bf16 %v88_v11, %v86_v10  ;;  %v4656_v16 = vld [vmem:[#allocation5 + $0x10c] sm:$0xf]  ;;  %v90_v28 = vld [vmem:[#allocation2 + $0x40] sm:$0xff] }
  0x39   :  { %1248 = vmatpush.bf16.msrb.mxu2 %v3838_v40  ;;  %1150 = vmatpush.bf16.msrb.mxu0 %v3834_v52  ;;  %v4026_v9 = vor.u32 %v4732_v7, %v4025_v6  ;;  %v87_v12 = vld [vmem:[#allocation2 + $0x28] sm:$0xff]  ;;  %v92_v29 = vld [vmem:[#allocation2 + $0x50] sm:$0xff]  ;;  %v93_v31 = vld [vmem:[#allocation2 + $0x58] sm:$0xff] }
  0x3a   :  { %1011 = vmatmul.bf16.vlgmr.msra.gmra.mxu1 %v5077_v49  ;;  %1109 = vmatmul.bf16.vlgmr.msra.gmra.mxu3 %v5077_v49  ;;  %v5085_v15 = vpack.c.bf16 %v89_v13, %v87_v12  ;;  %v3739_v17 = vld [vmem:[#allocation5 + $0x128] sm:$0xf0]  ;;  %v3737_v18 = vld [vmem:[#allocation5 + $0x108] sm:$0xf]  ;;  %v5091_v32 = vpack.c.bf16 %v92_v29, %v90_v28  ;;  %v94_v47 = vld [vmem:[#allocation2 + $0x60] sm:$0xff] }
  0x3b   :  { %1297 = vmatpush.bf16.msrb.mxu3 %v4094_v45  ;;  %1199 = vmatpush.bf16.msrb.mxu1 %v4090_v53  ;;  %v3742_v19 = vor.u32 %v4656_v16, %v3739_v17  ;;  %v4660_v20 = vld [vmem:[#allocation5 + $0x124] sm:$0xf0]  ;;  %v4720_v21 = vld [vmem:[#allocation5 + $0x30c] sm:$0xf]  ;;  %v96_v48 = vld [vmem:[#allocation2 + $0x70] sm:$0xff] }
  0x3c   :  { %v3995_v22 = vld [vmem:[#allocation5 + $0x328] sm:$0xf0]  ;;  %v3738_v23 = vor.u32 %v4660_v20, %v3737_v18  ;;  %v3993_v25 = vld [vmem:[#allocation5 + $0x308] sm:$0xf]  ;;  %v97_v51 = vld [vmem:[#allocation2 + $0x78] sm:$0xff]  ;;  %v5099_v52 = vpack.c.bf16 %v96_v48, %v94_v47 }
  0x3d   :  { %1249 = vmatpush.bf16.msrb.mxu2 %v3806_v54  ;;  %1151 = vmatpush.bf16.msrb.mxu0 %v3802_v60  ;;  %v3998_v24 = vor.u32 %v4720_v21, %v3995_v22  ;;  %v4724_v26 = vld [vmem:[#allocation5 + $0x324] sm:$0xf0]  ;;  %v4648_v34 = vld [vmem:[#allocation5 + $0xcc] sm:$0xf]  ;;  %v98_v2 = vld [vmem:[#allocation2 + $0x80] sm:$0xff] }
  0x3e   :  { %v3994_v27 = vor.u32 %v4724_v26, %v3993_v25  ;;  %v91_v30 = vld [vmem:[#allocation2 + $0x48] sm:$0xff]  ;;  %v100_v3 = vld [vmem:[#allocation2 + $0x90] sm:$0xff]  ;;  %v102_v22 = vld [vmem:[#allocation2 + $0xa0] sm:$0xff] }
  0x3f   :  { %1298 = vmatpush.bf16.msrb.mxu3 %v4062_v57  ;;  %1200 = vmatpush.bf16.msrb.mxu1 %v4058_v0  ;;  %v5093_v33 = vpack.c.bf16 %v93_v31, %v91_v30  ;;  %v3707_v35 = vld [vmem:[#allocation5 + $0xe8] sm:$0xf0]  ;;  %v3705_v36 = vld [vmem:[#allocation5 + $0xc8] sm:$0xf]  ;;  %v5107_v6 = vpack.c.bf16 %v100_v3, %v98_v2  ;;  %v105_v25 = vld [vmem:[#allocation2 + $0xb8] sm:$0xff] }
  0x40   :  { %v3710_v37 = vor.u32 %v4648_v34, %v3707_v35  ;;  %v4652_v38 = vld [vmem:[#allocation5 + $0xe4] sm:$0xf0]  ;;  %v4712_v39 = vld [vmem:[#allocation5 + $0x2cc] sm:$0xf]  ;;  %v113_v2 = vld [vmem:[#allocation2 + $0xf8] sm:$0xff] }
  0x41   :  { %1250 = vmatpush.bf16.msrb.mxu2 %v3774_v1  ;;  %1152 = vmatpush.bf16.msrb.mxu0 %v3770_v8  ;;  %v3963_v40 = vld [vmem:[#allocation5 + $0x2e8] sm:$0xf0]  ;;  %v3706_v41 = vor.u32 %v4652_v38, %v3705_v36  ;;  %v3961_v43 = vld [vmem:[#allocation5 + $0x2c8] sm:$0xf] }
  0x42   :  { %v3966_v42 = vor.u32 %v4712_v39, %v3963_v40  ;;  %v4716_v45 = vld [vmem:[#allocation5 + $0x2e4] sm:$0xf0]  ;;  %v4640_v54 = vld [vmem:[#allocation5 + $0x8c] sm:$0xf] }
  0x43   :  { %1299 = vmatpush.bf16.msrb.mxu3 %v4030_v5  ;;  %1201 = vmatpush.bf16.msrb.mxu1 %v4026_v9  ;;  %v3962_v46 = vor.u32 %v4716_v45, %v3961_v43  ;;  %v95_v50 = vld [vmem:[#allocation2 + $0x68] sm:$0xff]  ;;  %v101_v5 = vld [vmem:[#allocation2 + $0x98] sm:$0xff]  ;;  %v108_v43 = vld [vmem:[#allocation2 + $0xd0] sm:$0xff] }
  0x44   :  { %v5101_v53 = vpack.c.bf16 %v97_v51, %v95_v50  ;;  %v3675_v55 = vld [vmem:[#allocation5 + $0xa8] sm:$0xf0]  ;;  %v3673_v56 = vld [vmem:[#allocation5 + $0x88] sm:$0xf]  ;;  %v4681_v50 = vld [vmem:[#allocation5 + $0x1d4] sm:$0xf] }
  0x45   :  { %1251 = vmatpush.bf16.msrb.mxu2 %v3742_v19  ;;  %1153 = vmatpush.bf16.msrb.mxu0 %v3738_v23  ;;  %v3678_v57 = vor.u32 %v4640_v54, %v3675_v55  ;;  %v4644_v58 = vld [vmem:[#allocation5 + $0xa4] sm:$0xf0]  ;;  %v4704_v59 = vld [vmem:[#allocation5 + $0x28c] sm:$0xf]  ;;  %v104_v23 = vld [vmem:[#allocation2 + $0xb0] sm:$0xff] }
  0x46   :  { %v3931_v60 = vld [vmem:[#allocation5 + $0x2a8] sm:$0xf0]  ;;  %v3674_v61 = vor.u32 %v4644_v58, %v3673_v56  ;;  %v3929_v63 = vld [vmem:[#allocation5 + $0x288] sm:$0xf]  ;;  %v5115_v26 = vpack.c.bf16 %v104_v23, %v102_v22  ;;  %v3843_v51 = vld [vmem:[#allocation5 + $0x1f0] sm:$0xf0] }
  0x47   :  { %1300 = vmatpush.bf16.msrb.mxu3 %v3998_v24  ;;  %1202 = vmatpush.bf16.msrb.mxu1 %v3994_v27  ;;  %v3934_v62 = vor.u32 %v4704_v59, %v3931_v60  ;;  %v4708_v0 = vld [vmem:[#allocation5 + $0x2a4] sm:$0xf0]  ;;  %v4632_v8 = vld [vmem:[#allocation5 + $0x4c] sm:$0xf]  ;;  %v3841_v54 = vld [vmem:[#allocation5 + $0x1d0] sm:$0xf]  ;;  %v3846_v55 = vor.u32 %v4681_v50, %v3843_v51 }
  0x48   :  { %967 = vmatmul.bf16.gmra.mxu0 %v5083_v14  ;;  %1065 = vmatmul.bf16.gmra.mxu2 %v5083_v14  ;;  %v3930_v1 = vor.u32 %v4708_v0, %v3929_v63  ;;  %v99_v4 = vld [vmem:[#allocation2 + $0x88] sm:$0xff]  ;;  %v4685_v56 = vld [vmem:[#allocation5 + $0x1ec] sm:$0xf0]  ;;  %v4099_v58 = vld [vmem:[#allocation5 + $0x3f0] sm:$0xf0] }
  0x49   :  { %1252 = vmatpush.bf16.msrb.mxu2 %v3710_v37  ;;  %1154 = vmatpush.bf16.msrb.mxu0 %v3706_v41  ;;  %v5109_v7 = vpack.c.bf16 %v101_v5, %v99_v4  ;;  %v3643_v9 = vld [vmem:[#allocation5 + $0x68] sm:$0xf0]  ;;  %v3641_v10 = vld [vmem:[#allocation5 + $0x48] sm:$0xf]  ;;  %v3842_v59 = vor.u32 %v4685_v56, %v3841_v54  ;;  %v4097_v63 = vld [vmem:[#allocation5 + $0x3d0] sm:$0xf] }
  0x4a   :  { %1016 = vmatmul.bf16.gmra.mxu1 %v5085_v15  ;;  %1114 = vmatmul.bf16.gmra.mxu3 %v5085_v15  ;;  %v3646_v11 = vor.u32 %v4632_v8, %v3643_v9  ;;  %v4636_v12 = vld [vmem:[#allocation5 + $0x64] sm:$0xf0]  ;;  %v4696_v13 = vld [vmem:[#allocation5 + $0x24c] sm:$0xf]  ;;  %v4749_v0 = vld [vmem:[#allocation5 + $0x3ec] sm:$0xf0] }
  0x4b   :  { %1301 = vmatpush.bf16.msrb.mxu3 %v3966_v42  ;;  %1203 = vmatpush.bf16.msrb.mxu1 %v3962_v46  ;;  %v3899_v16 = vld [vmem:[#allocation5 + $0x268] sm:$0xf0]  ;;  %v3642_v17 = vor.u32 %v4636_v12, %v3641_v10  ;;  %v3897_v19 = vld [vmem:[#allocation5 + $0x248] sm:$0xf]  ;;  %v106_v42 = vld [vmem:[#allocation2 + $0xc0] sm:$0xff]  ;;  %v4098_v3 = vor.u32 %v4749_v0, %v4097_v63 }
  0x4c   :  { %v3902_v18 = vor.u32 %v4696_v13, %v3899_v16  ;;  %v4700_v20 = vld [vmem:[#allocation5 + $0x264] sm:$0xf0]  ;;  %v4624_v28 = vld [vmem:[#allocation5 + $0xc] sm:$0xf]  ;;  %v109_v46 = vld [vmem:[#allocation2 + $0xd8] sm:$0xff]  ;;  %v5123_v47 = vpack.c.bf16 %v108_v43, %v106_v42 }
  0x4d   :  { %1253 = vmatpush.bf16.msrb.mxu2 %v3678_v57  ;;  %1155 = vmatpush.bf16.msrb.mxu0 %v3674_v61  ;;  %v3898_v21 = vor.u32 %v4700_v20, %v3897_v19  ;;  %v103_v24 = vld [vmem:[#allocation2 + $0xa8] sm:$0xff]  ;;  %v4745_v57 = vld [vmem:[#allocation5 + $0x3d4] sm:$0xf]  ;;  %v110_v61 = vld [vmem:[#allocation2 + $0xe0] sm:$0xff] }
  0x4e   :  { %v5117_v27 = vpack.c.bf16 %v105_v25, %v103_v24  ;;  %v3611_v29 = vld [vmem:[#allocation5 + $0x28] sm:$0xf0]  ;;  %v3609_v30 = vld [vmem:[#allocation5 + $0x8] sm:$0xf]  ;;  %v4102_v60 = vor.u32 %v4745_v57, %v4099_v58  ;;  %v4673_v8 = vld [vmem:[#allocation5 + $0x194] sm:$0xf] }
  0x4f   :  { %1302 = vmatpush.bf16.msrb.mxu3 %v3934_v62  ;;  %1204 = vmatpush.bf16.msrb.mxu1 %v3930_v1  ;;  %v3614_v31 = vor.u32 %v4624_v28, %v3611_v29  ;;  %v4628_v34 = vld [vmem:[#allocation5 + $0x24] sm:$0xf0]  ;;  %v4688_v35 = vld [vmem:[#allocation5 + $0x20c] sm:$0xf]  ;;  %v112_v62 = vld [vmem:[#allocation2 + $0xf0] sm:$0xff] }
  0x50   :  { %v3867_v36 = vld [vmem:[#allocation5 + $0x228] sm:$0xf0]  ;;  %v3610_v37 = vor.u32 %v4628_v34, %v3609_v30  ;;  %v3865_v39 = vld [vmem:[#allocation5 + $0x208] sm:$0xf]  ;;  %v5131_v4 = vpack.c.bf16 %v112_v62, %v110_v61  ;;  %v3811_v9 = vld [vmem:[#allocation5 + $0x1b0] sm:$0xf0] }
  0x51   :  { %1254 = vmatpush.bf16.msrb.mxu2 %v3646_v11  ;;  %1156 = vmatpush.bf16.msrb.mxu0 %v3642_v17  ;;  %v3870_v38 = vor.u32 %v4688_v35, %v3867_v36  ;;  %v4692_v40 = vld [vmem:[#allocation5 + $0x224] sm:$0xf0]  ;;  %v3809_v10 = vld [vmem:[#allocation5 + $0x190] sm:$0xf]  ;;  %v3814_v11 = vor.u32 %v4673_v8, %v3811_v9  ;;  %v4737_v13 = vld [vmem:[#allocation5 + $0x394] sm:$0xf] }
  0x52   :  { %v3866_v41 = vor.u32 %v4692_v40, %v3865_v39  ;;  %v107_v45 = vld [vmem:[#allocation2 + $0xc8] sm:$0xff]  ;;  %v4677_v12 = vld [vmem:[#allocation5 + $0x1ac] sm:$0xf0]  ;;  %v4067_v16 = vld [vmem:[#allocation5 + $0x3b0] sm:$0xf0] }
  0x53   :  { %1303 = vmatpush.bf16.msrb.mxu3 %v3902_v18  ;;  %1205 = vmatpush.bf16.msrb.mxu1 %v3898_v21  ;;  %v5125_v48 = vpack.c.bf16 %v109_v46, %v107_v45  ;;  %v111_v1 = vld [vmem:[#allocation2 + $0xe8] sm:$0xff]  ;;  %v3810_v17 = vor.u32 %v4677_v12, %v3809_v10  ;;  %v4070_v18 = vor.u32 %v4737_v13, %v4067_v16  ;;  %v5139_v19 = vld [vmem:[#allocation7] sm:$0xff]  ;;  %v4065_v20 = vld [vmem:[#allocation5 + $0x390] sm:$0xf] }
  0x54   :  { %v5133_v5 = vpack.c.bf16 %v113_v2, %v111_v1  ;;  %v4741_v21 = vld [vmem:[#allocation5 + $0x3ac] sm:$0xf0]  ;;  %v5142_v22 = vperm.slane %v5139_v19, 0  ;;  %v5149_v30 = vperm.slane %v5139_v19, 1  ;;  %v3779_v34 = vld [vmem:[#allocation5 + $0x170] sm:$0xf0] }
  0x55   :  { %1255 = vmatpush.bf16.msrb.mxu2 %v3614_v31  ;;  %1157 = vmatpush.bf16.msrb.mxu0 %v3610_v37  ;;  %v4066_v23 = vor.u32 %v4741_v21, %v4065_v20  ;;  %v4665_v31 = vld [vmem:[#allocation5 + $0x154] sm:$0xf]  ;;  %v3777_v36 = vld [vmem:[#allocation5 + $0x150] sm:$0xf] }
  0x56   :  { %v3782_v35 = vor.u32 %v4665_v31, %v3779_v34  ;;  %v4669_v37 = vld [vmem:[#allocation5 + $0x16c] sm:$0xf0]  ;;  %v4657_v12 = vld [vmem:[#allocation5 + $0x114] sm:$0xf] }
  0x57   :  { %1304 = vmatpush.bf16.msrb.mxu3 %v3870_v38  ;;  %1206 = vmatpush.bf16.msrb.mxu1 %v3866_v41  ;;  %v4729_v38 = vld [vmem:[#allocation5 + $0x354] sm:$0xf]  ;;  %v3778_v40 = vor.u32 %v4669_v37, %v3777_v36  ;;  %v4033_v56 = vld [vmem:[#allocation5 + $0x350] sm:$0xf] }
  0x58   :  { %972 = vmatmul.bf16.gmra.mxu0 %v5091_v32  ;;  %1070 = vmatmul.bf16.gmra.mxu2 %v5091_v32  ;;  %v4035_v41 = vld [vmem:[#allocation5 + $0x370] sm:$0xf0]  ;;  %v4733_v57 = vld [vmem:[#allocation5 + $0x36c] sm:$0xf0] }
  0x59   :  { %1444 = vmatpush.bf16.msra.mxu2 %v3846_v55  ;;  %1346 = vmatpush.bf16.msra.mxu0 %v3842_v59  ;;  %v4038_v46 = vor.u32 %v4729_v38, %v4035_v41  ;;  %v3747_v13 = vld [vmem:[#allocation5 + $0x130] sm:$0xf0]  ;;  %v4661_v20 = vld [vmem:[#allocation5 + $0x12c] sm:$0xf0] }
  0x5a   :  { %1021 = vmatmul.bf16.gmra.mxu1 %v5093_v33  ;;  %1119 = vmatmul.bf16.gmra.mxu3 %v5093_v33  ;;  %v4721_v21 = vld [vmem:[#allocation5 + $0x314] sm:$0xf] }
  0x5b   :  { %1493 = vmatpush.bf16.msra.mxu3 %v4102_v60  ;;  %1395 = vmatpush.bf16.msra.mxu1 %v4098_v3  ;;  %v4034_v60 = vor.u32 %v4733_v57, %v4033_v56 }
  0x5d   :  { %1445 = vmatpush.bf16.msra.mxu2 %v3814_v11  ;;  %1347 = vmatpush.bf16.msra.mxu0 %v3810_v17  ;;  %v3750_v17 = vor.u32 %v4657_v12, %v3747_v13 }
  0x5f   :  { %1494 = vmatpush.bf16.msra.mxu3 %v4070_v18  ;;  %1396 = vmatpush.bf16.msra.mxu1 %v4066_v23  ;;  %v3745_v18 = vld [vmem:[#allocation5 + $0x110] sm:$0xf] }
  0x61   :  { %1446 = vmatpush.bf16.msra.mxu2 %v3782_v35  ;;  %1348 = vmatpush.bf16.msra.mxu0 %v3778_v40  ;;  %v4725_v40 = vld [vmem:[#allocation5 + $0x32c] sm:$0xf0] }
  0x63   :  { %1495 = vmatpush.bf16.msra.mxu3 %v4038_v46  ;;  %1397 = vmatpush.bf16.msra.mxu1 %v4034_v60 }
  0x65   :  { %1447 = vmatpush.bf16.msra.mxu2 %v3750_v17 }
  0x68   :  { %977 = vmatmul.bf16.gmra.mxu0 %v5099_v52  ;;  %1075 = vmatmul.bf16.gmra.mxu2 %v5099_v52 }
  0x6a   :  { %1026 = vmatmul.bf16.gmra.mxu1 %v5101_v53  ;;  %1124 = vmatmul.bf16.gmra.mxu3 %v5101_v53 }
  0x78   :  { %982 = vmatmul.bf16.gmra.mxu0 %v5107_v6  ;;  %1080 = vmatmul.bf16.gmra.mxu2 %v5107_v6 }
  0x7a   :  { %1031 = vmatmul.bf16.gmra.mxu1 %v5109_v7  ;;  %1129 = vmatmul.bf16.gmra.mxu3 %v5109_v7 }
  0x88   :  { %987 = vmatmul.bf16.gmra.mxu0 %v5115_v26  ;;  %1085 = vmatmul.bf16.gmra.mxu2 %v5115_v26 }
  0x8a   :  { %1036 = vmatmul.bf16.gmra.mxu1 %v5117_v27  ;;  %1134 = vmatmul.bf16.gmra.mxu3 %v5117_v27 }
  0x98   :  { %992 = vmatmul.bf16.gmra.mxu0 %v5123_v47  ;;  %1090 = vmatmul.bf16.gmra.mxu2 %v5123_v47 }
  0x9a   :  { %1041 = vmatmul.bf16.gmra.mxu1 %v5125_v48  ;;  %1139 = vmatmul.bf16.gmra.mxu3 %v5125_v48 }
  0xa8   :  { %997 = vmatmul.bf16.gmra.mxu0 %v5131_v4  ;;  %1095 = vmatmul.bf16.gmra.mxu2 %v5131_v4 }
  0xaa   :  { %1046 = vmatmul.bf16.gmra.mxu1 %v5133_v5  ;;  %1144 = vmatmul.bf16.gmra.mxu3 %v5133_v5 }
  0xb5   :  { %v963_v24 = vpop.f32.mrf.mxu0 }
  0xb6   :  { %v964_v25 = vadd.f32 %v963_v24, %v5142_v22  ;;  %v3746_v24 = vor.u32 %v4661_v20, %v3745_v18 }
  0xb7   :  { %v1012_v28 = vpop.f32.mrf.mxu1 }
  0xb8   :  { %v1013_v29 = vadd.f32 %v1012_v28, %v964_v25  ;;  %1158 = vmatmul.bf16.vlgmr.msrb.gmra.mxu0 %v5075_v44  ;;  %1256 = vmatmul.bf16.vlgmr.msrb.gmra.mxu2 %v5075_v44  ;;  %v4003_v25 = vld [vmem:[#allocation5 + $0x330] sm:$0xf0] }
  0xb9   :  { %v4006_v34 = vor.u32 %v4721_v21, %v4003_v25  ;;  %1349 = vmatpush.bf16.msra.mxu0 %v3746_v24  ;;  %v3969_v25 = vld [vmem:[#allocation5 + $0x2d0] sm:$0xf] }
  0xba   :  { %1207 = vmatmul.bf16.vlgmr.msrb.gmra.mxu1 %v5077_v49  ;;  %1305 = vmatmul.bf16.vlgmr.msrb.gmra.mxu3 %v5077_v49  ;;  %v1738_v58 = vmax.f32 %v1013_v29, 0.0 }
  0xbb   :  { %v1061_v39 = vpop.f32.mrf.mxu2  ;;  %1496 = vmatpush.bf16.msra.mxu3 %v4006_v34 }
  0xbc   :  { %v1062_v42 = vadd.f32 %v1061_v39, %v5149_v30  ;;  %v4001_v39 = vld [vmem:[#allocation5 + $0x310] sm:$0xf] }
  0xbd   :  { %v1110_v43 = vpop.f32.mrf.mxu3  ;;  %v965_v45 = vpop.f32.mrf.mxu0 }
  0xbe   :  { %v966_v50 = vadd.f32 %v965_v45, %v5142_v22  ;;  %v1111_v54 = vadd.f32 %v1110_v43, %v1062_v42  ;;  %v4002_v43 = vor.u32 %v4725_v40, %v4001_v39 }
  0xbf   :  { %v1014_v51 = vpop.f32.mrf.mxu1 }
  0xc0   :  { %v1015_v55 = vadd.f32 %v1014_v51, %v966_v50  ;;  %v1739_v10 = vmax.f32 %v1111_v54, 0.0  ;;  %1398 = vmatpush.bf16.msra.mxu1 %v4002_v43 }
  0xc2   :  { %v1746_v59 = vmax.f32 %v1015_v55, 0.0 }
  0xc3   :  { %v1063_v62 = vpop.f32.mrf.mxu2 }
  0xc4   :  { %v5154_v61 = vpack.c.bf16 %v1746_v59, %v1738_v58  ;;  %v1064_v63 = vadd.f32 %v1063_v62, %v5149_v30  ;;  %v4649_v62 = vld [vmem:[#allocation5 + $0xd4] sm:$0xf] }
  0xc5   :  { %v1112_v0 = vpop.f32.mrf.mxu3  ;;  %v968_v1 = vpop.f32.mrf.mxu0 }
  0xc6   :  { %v969_v2 = vadd.f32 %v968_v1, %v5142_v22  ;;  %v1113_v8 = vadd.f32 %v1112_v0, %v1064_v63  ;;  %v3715_v63 = vld [vmem:[#allocation5 + $0xf0] sm:$0xf0]  ;;  %v3713_v1 = vld [vmem:[#allocation5 + $0xd0] sm:$0xf] }
  0xc7   :  { %v1017_v3 = vpop.f32.mrf.mxu1  ;;  %v3718_v0 = vor.u32 %v4649_v62, %v3715_v63  ;;  %v3939_v63 = vld [vmem:[#allocation5 + $0x2b0] sm:$0xf0] }
  0xc8   :  { %v1018_v9 = vadd.f32 %v1017_v3, %v969_v2  ;;  %1163 = vmatmul.bf16.gmra.mxu0 %v5083_v14  ;;  %v1747_v11 = vmax.f32 %v1113_v8, 0.0  ;;  %1261 = vmatmul.bf16.gmra.mxu2 %v5083_v14  ;;  %v4653_v2 = vld [vmem:[#allocation5 + $0xec] sm:$0xf0]  ;;  %v4713_v3 = vld [vmem:[#allocation5 + $0x2d4] sm:$0xf] }
  0xc9   :  { %1448 = vmatpush.bf16.msra.mxu2 %v3718_v0 }
  0xca   :  { %1212 = vmatmul.bf16.gmra.mxu1 %v5085_v15  ;;  %1310 = vmatmul.bf16.gmra.mxu3 %v5085_v15  ;;  %v5162_v16 = vpack.c.bf16 %v1747_v11, %v1739_v10  ;;  %v1754_v41 = vmax.f32 %v1018_v9, 0.0  ;;  %v3714_v10 = vor.u32 %v4653_v2, %v3713_v1  ;;  %v3971_v11 = vld [vmem:[#allocation5 + $0x2f0] sm:$0xf0] }
  0xcb   :  { %v1066_v23 = vpop.f32.mrf.mxu2  ;;  %v3974_v18 = vor.u32 %v4713_v3, %v3971_v11 }
  0xcc   :  { %v1067_v28 = vadd.f32 %v1066_v23, %v5149_v30  ;;  %1350 = vmatpush.bf16.msra.mxu0 %v3714_v10 }
  0xcd   :  { %v1115_v29 = vpop.f32.mrf.mxu3  ;;  %v970_v31 = vpop.f32.mrf.mxu0  ;;  %1497 = vmatpush.bf16.msra.mxu3 %v3974_v18 }
  0xce   :  { %v971_v35 = vadd.f32 %v970_v31, %v5142_v22  ;;  %v1116_v37 = vadd.f32 %v1115_v29, %v1067_v28  ;;  %v4717_v28 = vld [vmem:[#allocation5 + $0x2ec] sm:$0xf0] }
  0xcf   :  { %v1019_v36 = vpop.f32.mrf.mxu1  ;;  %v3970_v34 = vor.u32 %v4717_v28, %v3969_v25 }
  0xd0   :  { %v1020_v38 = vadd.f32 %v1019_v36, %v971_v35  ;;  %v1755_v59 = vmax.f32 %v1116_v37, 0.0 }
  0xd1   :  { %1399 = vmatpush.bf16.msra.mxu1 %v3970_v34 }
  0xd2   :  { %v1762_v42 = vmax.f32 %v1020_v38, 0.0 }
  0xd3   :  { %v1068_v45 = vpop.f32.mrf.mxu2 }
  0xd4   :  { %v5166_v46 = vpack.c.bf16 %v1762_v42, %v1754_v41  ;;  %v1069_v50 = vadd.f32 %v1068_v45, %v5149_v30 }
  0xd5   :  { %v1117_v51 = vpop.f32.mrf.mxu3  ;;  %v973_v54 = vpop.f32.mrf.mxu0 }
  0xd6   :  { %v974_v55 = vadd.f32 %v973_v54, %v5142_v22  ;;  %v1118_v57 = vadd.f32 %v1117_v51, %v1069_v50  ;;  %v4641_v51 = vld [vmem:[#allocation5 + $0x94] sm:$0xf] }
  0xd7   :  { %v1022_v56 = vpop.f32.mrf.mxu1  ;;  %v3683_v54 = vld [vmem:[#allocation5 + $0xb0] sm:$0xf0] }
  0xd8   :  { %v1023_v58 = vadd.f32 %v1022_v56, %v974_v55  ;;  %1168 = vmatmul.bf16.gmra.mxu0 %v5091_v32  ;;  %v1763_v60 = vmax.f32 %v1118_v57, 0.0  ;;  %1266 = vmatmul.bf16.gmra.mxu2 %v5091_v32  ;;  %v3686_v55 = vor.u32 %v4641_v51, %v3683_v54  ;;  %v3681_v56 = vld [vmem:[#allocation5 + $0x90] sm:$0xf] }
  0xd9   :  { %v4645_v57 = vld [vmem:[#allocation5 + $0xac] sm:$0xf0] }
  0xda   :  { %1217 = vmatmul.bf16.gmra.mxu1 %v5093_v33  ;;  %1315 = vmatmul.bf16.gmra.mxu3 %v5093_v33  ;;  %v5174_v8 = vpack.c.bf16 %v1763_v60, %v1755_v59  ;;  %v1770_v29 = vmax.f32 %v1023_v58, 0.0  ;;  %v4705_v58 = vld [vmem:[#allocation5 + $0x294] sm:$0xf]  ;;  %v3682_v62 = vor.u32 %v4645_v57, %v3681_v56 }
  0xdb   :  { %v1071_v9 = vpop.f32.mrf.mxu2  ;;  %1449 = vmatpush.bf16.msra.mxu2 %v3686_v55  ;;  %v3942_v3 = vor.u32 %v4705_v58, %v3939_v63  ;;  %v3907_v56 = vld [vmem:[#allocation5 + $0x270] sm:$0xf0] }
  0xdc   :  { %v1072_v12 = vadd.f32 %v1071_v9, %v5149_v30  ;;  %1351 = vmatpush.bf16.msra.mxu0 %v3682_v62 }
  0xdd   :  { %v1120_v13 = vpop.f32.mrf.mxu3  ;;  %v975_v17 = vpop.f32.mrf.mxu0  ;;  %1498 = vmatpush.bf16.msra.mxu3 %v3942_v3  ;;  %v3905_v3 = vld [vmem:[#allocation5 + $0x250] sm:$0xf] }
  0xde   :  { %v976_v20 = vadd.f32 %v975_v17, %v5142_v22  ;;  %v1121_v23 = vadd.f32 %v1120_v13, %v1072_v12  ;;  %v3937_v13 = vld [vmem:[#allocation5 + $0x290] sm:$0xf] }
  0xdf   :  { %v1024_v21 = vpop.f32.mrf.mxu1  ;;  %v4709_v17 = vld [vmem:[#allocation5 + $0x2ac] sm:$0xf0] }
  0xe0   :  { %v1025_v24 = vadd.f32 %v1024_v21, %v976_v20  ;;  %v1771_v45 = vmax.f32 %v1121_v23, 0.0  ;;  %v3938_v21 = vor.u32 %v4709_v17, %v3937_v13 }
  0xe2   :  { %v1778_v31 = vmax.f32 %v1025_v24, 0.0  ;;  %1400 = vmatpush.bf16.msra.mxu1 %v3938_v21 }
  0xe3   :  { %v1073_v35 = vpop.f32.mrf.mxu2 }
  0xe4   :  { %v5178_v36 = vpack.c.bf16 %v1778_v31, %v1770_v29  ;;  %v1074_v37 = vadd.f32 %v1073_v35, %v5149_v30 }
  0xe5   :  { %v1122_v38 = vpop.f32.mrf.mxu3  ;;  %v978_v39 = vpop.f32.mrf.mxu0 }
  0xe6   :  { %v979_v40 = vadd.f32 %v978_v39, %v5142_v22  ;;  %v1123_v42 = vadd.f32 %v1122_v38, %v1074_v37 }
  0xe7   :  { %v1027_v41 = vpop.f32.mrf.mxu1 }
  0xe8   :  { %v1028_v43 = vadd.f32 %v1027_v41, %v979_v40  ;;  %1173 = vmatmul.bf16.gmra.mxu0 %v5099_v52  ;;  %v1779_v50 = vmax.f32 %v1123_v42, 0.0  ;;  %1271 = vmatmul.bf16.gmra.mxu2 %v5099_v52  ;;  %v4633_v40 = vld [vmem:[#allocation5 + $0x54] sm:$0xf] }
  0xe9   :  { %v3651_v41 = vld [vmem:[#allocation5 + $0x70] sm:$0xf0] }
  0xea   :  { %1222 = vmatmul.bf16.gmra.mxu1 %v5101_v53  ;;  %1320 = vmatmul.bf16.gmra.mxu3 %v5101_v53  ;;  %v5186_v59 = vpack.c.bf16 %v1779_v50, %v1771_v45  ;;  %v1786_v18 = vmax.f32 %v1028_v43, 0.0  ;;  %v3654_v42 = vor.u32 %v4633_v40, %v3651_v41  ;;  %v3649_v43 = vld [vmem:[#allocation5 + $0x50] sm:$0xf]  ;;  %v4697_v50 = vld [vmem:[#allocation5 + $0x254] sm:$0xf] }
  0xeb   :  { %v1076_v60 = vpop.f32.mrf.mxu2  ;;  %v4637_v45 = vld [vmem:[#allocation5 + $0x6c] sm:$0xf0]  ;;  %v3910_v62 = vor.u32 %v4697_v50, %v3907_v56  ;;  %v4689_v41 = vld [vmem:[#allocation5 + $0x214] sm:$0xf] }
  0xec   :  { %v1077_v0 = vadd.f32 %v1076_v60, %v5149_v30  ;;  %v3650_v55 = vor.u32 %v4637_v45, %v3649_v43  ;;  %1450 = vmatpush.bf16.msra.mxu2 %v3654_v42  ;;  %v4629_v40 = vld [vmem:[#allocation5 + $0x2c] sm:$0xf0]  ;;  %v3875_v50 = vld [vmem:[#allocation5 + $0x230] sm:$0xf0] }
  0xed   :  { %v1125_v1 = vpop.f32.mrf.mxu3  ;;  %v980_v2 = vpop.f32.mrf.mxu0  ;;  %1499 = vmatpush.bf16.msra.mxu3 %v3910_v62 }
  0xee   :  { %v981_v9 = vadd.f32 %v980_v2, %v5142_v22  ;;  %v1126_v11 = vadd.f32 %v1125_v1, %v1077_v0  ;;  %1352 = vmatpush.bf16.msra.mxu0 %v3650_v55 }
  0xef   :  { %v1029_v10 = vpop.f32.mrf.mxu1 }
  0xf0   :  { %v1030_v12 = vadd.f32 %v1029_v10, %v981_v9  ;;  %v1787_v38 = vmax.f32 %v1126_v11, 0.0  ;;  %v4701_v9 = vld [vmem:[#allocation5 + $0x26c] sm:$0xf0] }
  0xf2   :  { %v1794_v20 = vmax.f32 %v1030_v12, 0.0  ;;  %v3906_v12 = vor.u32 %v4701_v9, %v3905_v3 }
  0xf3   :  { %v1078_v23 = vpop.f32.mrf.mxu2 }
  0xf4   :  { %v5190_v24 = vpack.c.bf16 %v1794_v20, %v1786_v18  ;;  %v1079_v25 = vadd.f32 %v1078_v23, %v5149_v30  ;;  %1401 = vmatpush.bf16.msra.mxu1 %v3906_v12 }
  0xf5   :  { %v1127_v28 = vpop.f32.mrf.mxu3  ;;  %v983_v29 = vpop.f32.mrf.mxu0 }
  0xf6   :  { %v984_v31 = vadd.f32 %v983_v29, %v5142_v22  ;;  %v1128_v35 = vadd.f32 %v1127_v28, %v1079_v25 }
  0xf7   :  { %v1032_v34 = vpop.f32.mrf.mxu1 }
  0xf8   :  { %v1033_v37 = vadd.f32 %v1032_v34, %v984_v31  ;;  %1178 = vmatmul.bf16.gmra.mxu0 %v5107_v6  ;;  %v1795_v39 = vmax.f32 %v1128_v35, 0.0  ;;  %1276 = vmatmul.bf16.gmra.mxu2 %v5107_v6  ;;  %v4625_v35 = vld [vmem:[#allocation5 + $0x14] sm:$0xf] }
  0xfa   :  { %1227 = vmatmul.bf16.gmra.mxu1 %v5109_v7  ;;  %1325 = vmatmul.bf16.gmra.mxu3 %v5109_v7  ;;  %v5198_v51 = vpack.c.bf16 %v1795_v39, %v1787_v38  ;;  %v1802_v10 = vmax.f32 %v1033_v37, 0.0  ;;  %v3619_v37 = vld [vmem:[#allocation5 + $0x30] sm:$0xf0]  ;;  %v3617_v39 = vld [vmem:[#allocation5 + $0x10] sm:$0xf] }
  0xfb   :  { %v1081_v54 = vpop.f32.mrf.mxu2  ;;  %v3622_v38 = vor.u32 %v4625_v35, %v3619_v37  ;;  %v3618_v45 = vor.u32 %v4629_v40, %v3617_v39  ;;  %v3849_v37 = vld [vmem:[#allocation5 + $0x1d8] sm:$0xf]  ;;  %v4746_v39 = vld [vmem:[#allocation5 + $0x3dc] sm:$0xf] }
  0xfc   :  { %v1082_v57 = vadd.f32 %v1081_v54, %v5149_v30 }
  0xfd   :  { %v1130_v58 = vpop.f32.mrf.mxu3  ;;  %v985_v60 = vpop.f32.mrf.mxu0  ;;  %1451 = vmatpush.bf16.msra.mxu2 %v3622_v38  ;;  %1353 = vmatpush.bf16.msra.mxu0 %v3618_v45  ;;  %v4686_v38 = vld [vmem:[#allocation5 + $0x1f4] sm:$0xf0]  ;;  %v4107_v45 = vld [vmem:[#allocation5 + $0x3f8] sm:$0xf0] }
  0xfe   :  { %v986_v63 = vadd.f32 %v985_v60, %v5142_v22  ;;  %v1131_v1 = vadd.f32 %v1130_v58, %v1082_v57  ;;  %v3878_v57 = vor.u32 %v4689_v41, %v3875_v50 }
  0xff   :  { %v1034_v0 = vpop.f32.mrf.mxu1 }
 0x100   :  { %v1035_v2 = vadd.f32 %v1034_v0, %v986_v63  ;;  %v1803_v31 = vmax.f32 %v1131_v1, 0.0  ;;  %1500 = vmatpush.bf16.msra.mxu3 %v3878_v57  ;;  %v3873_v0 = vld [vmem:[#allocation5 + $0x210] sm:$0xf] }
 0x101   :  { %v4693_v1 = vld [vmem:[#allocation5 + $0x22c] sm:$0xf0] }
 0x102   :  { %v1810_v11 = vmax.f32 %v1035_v2, 0.0  ;;  %v3874_v9 = vor.u32 %v4693_v1, %v3873_v0  ;;  %v4750_v0 = vld [vmem:[#allocation5 + $0x3f4] sm:$0xf0] }
 0x103   :  { %v1083_v13 = vpop.f32.mrf.mxu2 }
 0x104   :  { %v5202_v17 = vpack.c.bf16 %v1810_v11, %v1802_v10  ;;  %v1084_v18 = vadd.f32 %v1083_v13, %v5149_v30  ;;  %1402 = vmatpush.bf16.msra.mxu1 %v3874_v9 }
 0x105   :  { %v1132_v20 = vpop.f32.mrf.mxu3  ;;  %v988_v21 = vpop.f32.mrf.mxu0 }
 0x106   :  { %v989_v23 = vadd.f32 %v988_v21, %v5142_v22  ;;  %v1133_v28 = vadd.f32 %v1132_v20, %v1084_v18 }
 0x107   :  { %v1037_v25 = vpop.f32.mrf.mxu1 }
 0x108   :  { %v1038_v29 = vadd.f32 %v1037_v25, %v989_v23  ;;  %1183 = vmatmul.bf16.gmra.mxu0 %v5115_v26  ;;  %v1811_v34 = vmax.f32 %v1133_v28, 0.0  ;;  %1281 = vmatmul.bf16.gmra.mxu2 %v5115_v26 }
 0x10a   :  { %1232 = vmatmul.bf16.gmra.mxu1 %v5117_v27  ;;  %1330 = vmatmul.bf16.gmra.mxu3 %v5117_v27  ;;  %v5210_v42 = vpack.c.bf16 %v1811_v34, %v1803_v31  ;;  %v1818_v2 = vmax.f32 %v1038_v29, 0.0  ;;  %v4682_v29 = vld [vmem:[#allocation5 + $0x1dc] sm:$0xf] }
 0x10b   :  { %v1086_v43 = vpop.f32.mrf.mxu2  ;;  %v3851_v34 = vld [vmem:[#allocation5 + $0x1f8] sm:$0xf0] }
 0x10c   :  { %v1087_v54 = vadd.f32 %v1086_v43, %v5149_v30  ;;  %v3854_v35 = vor.u32 %v4682_v29, %v3851_v34  ;;  %v3850_v43 = vor.u32 %v4686_v38, %v3849_v37  ;;  %v3819_v34 = vld [vmem:[#allocation5 + $0x1b8] sm:$0xf0] }
 0x10d   :  { %v1135_v55 = vpop.f32.mrf.mxu3  ;;  %v990_v56 = vpop.f32.mrf.mxu0 }
 0x10e   :  { %v991_v58 = vadd.f32 %v990_v56, %v5142_v22  ;;  %v1136_v62 = vadd.f32 %v1135_v55, %v1087_v54  ;;  %1640 = vmatpush.bf16.msrb.mxu2 %v3854_v35  ;;  %v4110_v56 = vor.u32 %v4746_v39, %v4107_v45  ;;  %1542 = vmatpush.bf16.msrb.mxu0 %v3850_v43  ;;  %v3817_v35 = vld [vmem:[#allocation5 + $0x198] sm:$0xf]  ;;  %v4738_v43 = vld [vmem:[#allocation5 + $0x39c] sm:$0xf] }
 0x10f   :  { %v1039_v60 = vpop.f32.mrf.mxu1  ;;  %v4075_v45 = vld [vmem:[#allocation5 + $0x3b8] sm:$0xf0] }
 0x110   :  { %v1040_v63 = vadd.f32 %v1039_v60, %v991_v58  ;;  %v1819_v28 = vmax.f32 %v1136_v62, 0.0  ;;  %1689 = vmatpush.bf16.msrb.mxu3 %v4110_v56 }
 0x112   :  { %v1826_v3 = vmax.f32 %v1040_v63, 0.0  ;;  %v4105_v63 = vld [vmem:[#allocation5 + $0x3d8] sm:$0xf] }
 0x113   :  { %v1088_v10 = vpop.f32.mrf.mxu2 }
 0x114   :  { %v5214_v11 = vpack.c.bf16 %v1826_v3, %v1818_v2  ;;  %v1089_v12 = vadd.f32 %v1088_v10, %v5149_v30  ;;  %v4106_v3 = vor.u32 %v4750_v0, %v4105_v63  ;;  %v4073_v0 = vld [vmem:[#allocation5 + $0x398] sm:$0xf] }
 0x115   :  { %v1137_v13 = vpop.f32.mrf.mxu3  ;;  %v993_v18 = vpop.f32.mrf.mxu0 }
 0x116   :  { %5835 = vst [vmem:[#allocation15_spill] sm:$0xff] %v5214_v11  ;;  %v994_v20 = vadd.f32 %v993_v18, %v5142_v22  ;;  %v1138_v23 = vadd.f32 %v1137_v13, %v1089_v12  ;;  %1591 = vmatpush.bf16.msrb.mxu1 %v4106_v3 }
 0x117   :  { %v1042_v21 = vpop.f32.mrf.mxu1 }
 0x118   :  { %v1043_v25 = vadd.f32 %v1042_v21, %v994_v20  ;;  %1188 = vmatmul.bf16.gmra.mxu0 %v5123_v47  ;;  %v1827_v31 = vmax.f32 %v1138_v23, 0.0  ;;  %1286 = vmatmul.bf16.gmra.mxu2 %v5123_v47 }
 0x11a   :  { %1237 = vmatmul.bf16.gmra.mxu1 %v5125_v48  ;;  %1335 = vmatmul.bf16.gmra.mxu3 %v5125_v48  ;;  %v5222_v40 = vpack.c.bf16 %v1827_v31, %v1819_v28  ;;  %v1834_v1 = vmax.f32 %v1043_v25, 0.0  ;;  %v4674_v25 = vld [vmem:[#allocation5 + $0x19c] sm:$0xf] }
 0x11b   :  { %v1091_v41 = vpop.f32.mrf.mxu2  ;;  %v3822_v39 = vor.u32 %v4674_v25, %v3819_v34 }
 0x11c   :  { %5836 = vst [vmem:[#allocation16_spill] sm:$0xff] %v5222_v40  ;;  %v1092_v50 = vadd.f32 %v1091_v41, %v5149_v30  ;;  %v4678_v41 = vld [vmem:[#allocation5 + $0x1b4] sm:$0xf0] }
 0x11d   :  { %v1140_v54 = vpop.f32.mrf.mxu3  ;;  %v995_v55 = vpop.f32.mrf.mxu0  ;;  %v3818_v56 = vor.u32 %v4678_v41, %v3817_v35  ;;  %1641 = vmatpush.bf16.msrb.mxu2 %v3822_v39  ;;  %v5249_v35 = vperm.slane %v5139_v19, 3  ;;  %v3785_v41 = vld [vmem:[#allocation5 + $0x158] sm:$0xf] }
 0x11e   :  { %v996_v57 = vadd.f32 %v995_v55, %v5142_v22  ;;  %v1141_v60 = vadd.f32 %v1140_v54, %v1092_v50 }
 0x11f   :  { %v1044_v58 = vpop.f32.mrf.mxu1  ;;  %1543 = vmatpush.bf16.msrb.mxu0 %v3818_v56  ;;  %v4043_v56 = vld [vmem:[#allocation5 + $0x378] sm:$0xf0] }
 0x120   :  { %v1045_v62 = vadd.f32 %v1044_v58, %v996_v57  ;;  %v1835_v31 = vmax.f32 %v1141_v60, 0.0  ;;  %v4078_v57 = vor.u32 %v4738_v43, %v4075_v45  ;;  %v4670_v43 = vld [vmem:[#allocation5 + $0x174] sm:$0xf0]  ;;  %v4730_v45 = vld [vmem:[#allocation5 + $0x35c] sm:$0xf] }
 0x122   :  { %v1842_v2 = vmax.f32 %v1045_v62, 0.0  ;;  %1690 = vmatpush.bf16.msrb.mxu3 %v4078_v57 }
 0x123   :  { %v1093_v9 = vpop.f32.mrf.mxu2 }
 0x124   :  { %v5226_v10 = vpack.c.bf16 %v1842_v2, %v1834_v1  ;;  %v1094_v12 = vadd.f32 %v1093_v9, %v5149_v30  ;;  %v4742_v1 = vld [vmem:[#allocation5 + $0x3b4] sm:$0xf0]  ;;  %v5239_v9 = vperm.slane %v5139_v19, 2  ;;  %v4046_v19 = vor.u32 %v4730_v45, %v4043_v56 }
 0x125   :  { %v1142_v13 = vpop.f32.mrf.mxu3  ;;  %v998_v18 = vpop.f32.mrf.mxu0  ;;  %v4662_v56 = vld [vmem:[#allocation5 + $0x134] sm:$0xf0] }
 0x126   :  { %5837 = vst [vmem:[#allocation17_spill] sm:$0xff] %v5226_v10  ;;  %v999_v20 = vadd.f32 %v998_v18, %v5142_v22  ;;  %v1143_v23 = vadd.f32 %v1142_v13, %v1094_v12  ;;  %v4074_v12 = vor.u32 %v4742_v1, %v4073_v0  ;;  %1691 = vmatpush.bf16.msrb.mxu3 %v4046_v19  ;;  %v4011_v19 = vld [vmem:[#allocation5 + $0x338] sm:$0xf0] }
 0x127   :  { %v1047_v21 = vpop.f32.mrf.mxu1 }
 0x128   :  { %v1048_v28 = vadd.f32 %v1047_v21, %v999_v20  ;;  %1193 = vmatmul.bf16.gmra.mxu0 %v5131_v4  ;;  %v1843_v29 = vmax.f32 %v1143_v23, 0.0  ;;  %1291 = vmatmul.bf16.gmra.mxu2 %v5131_v4 }
 0x129   :  { %1592 = vmatpush.bf16.msrb.mxu1 %v4074_v12 }
 0x12a   :  { %1242 = vmatmul.bf16.gmra.mxu1 %v5133_v5  ;;  %1340 = vmatmul.bf16.gmra.mxu3 %v5133_v5  ;;  %v5234_v37 = vpack.c.bf16 %v1843_v29, %v1835_v31  ;;  %v1850_v2 = vmax.f32 %v1048_v28, 0.0 }
 0x12b   :  { %v1096_v38 = vpop.f32.mrf.mxu2 }
 0x12c   :  { %5838 = vst [vmem:[#allocation18_spill] sm:$0xff] %v5234_v37  ;;  %v1097_v50 = vadd.f32 %v1096_v38, %v5149_v30  ;;  %v3787_v38 = vld [vmem:[#allocation5 + $0x178] sm:$0xf0] }
 0x12d   :  { %v1145_v54 = vpop.f32.mrf.mxu3  ;;  %v1000_v55 = vpop.f32.mrf.mxu0 }
 0x12e   :  { %v1001_v58 = vadd.f32 %v1000_v55, %v5142_v22  ;;  %v1146_v62 = vadd.f32 %v1145_v54, %v1097_v50  ;;  %v3786_v55 = vor.u32 %v4670_v43, %v3785_v41  ;;  %v3755_v43 = vld [vmem:[#allocation5 + $0x138] sm:$0xf0] }
 0x12f   :  { %v1049_v60 = vpop.f32.mrf.mxu1 }
 0x130   :  { %v1050_v63 = vadd.f32 %v1049_v60, %v1001_v58  ;;  %v1851_v28 = vmax.f32 %v1146_v62, 0.0  ;;  %1544 = vmatpush.bf16.msrb.mxu0 %v3786_v55  ;;  %v3753_v55 = vld [vmem:[#allocation5 + $0x118] sm:$0xf] }
 0x132   :  { %v1858_v3 = vmax.f32 %v1050_v63, 0.0 }
 0x133   :  { %v1098_v13 = vpop.f32.mrf.mxu2 }
 0x134   :  { %v5241_v18 = vpack.c.bf16 %v1858_v3, %v1850_v2  ;;  %v1099_v22 = vadd.f32 %v1098_v13, %v5149_v30  ;;  %v4666_v30 = vld [vmem:[#allocation5 + $0x15c] sm:$0xf]  ;;  %v4041_v2 = vld [vmem:[#allocation5 + $0x358] sm:$0xf] }
 0x135   :  { %v1147_v20 = vpop.f32.mrf.mxu3  ;;  %v1159_v21 = vpop.f32.mrf.mxu0  ;;  %v3790_v39 = vor.u32 %v4666_v30, %v3787_v38  ;;  %v4734_v3 = vld [vmem:[#allocation5 + $0x374] sm:$0xf0] }
 0x136   :  { %5839 = vst [vmem:[#allocation19_spill] sm:$0xff] %v5241_v18  ;;  %v1160_v23 = vadd.f32 %v1159_v21, %v5239_v9  ;;  %v1148_v29 = vadd.f32 %v1147_v20, %v1099_v22  ;;  %v4042_v22 = vor.u32 %v4734_v3, %v4041_v2  ;;  %v4782_v18 = vld [vmem:[#allocation8 + $0xf4] sm:$0xf0] }
 0x137   :  { %v1208_v31 = vpop.f32.mrf.mxu1  ;;  %1642 = vmatpush.bf16.msrb.mxu2 %v3790_v39 }
 0x138   :  { %v1209_v25 = vadd.f32 %v1208_v31, %v1160_v23  ;;  %1354 = vmatmul.bf16.vlgmr.msra.gmra.mxu0 %v5075_v44  ;;  %v1859_v34 = vmax.f32 %v1148_v29, 0.0  ;;  %1452 = vmatmul.bf16.vlgmr.msra.gmra.mxu2 %v5075_v44 }
 0x139   :  { %1593 = vmatpush.bf16.msrb.mxu1 %v4042_v22  ;;  %v4009_v22 = vld [vmem:[#allocation5 + $0x318] sm:$0xf] }
 0x13a   :  { %1403 = vmatmul.bf16.vlgmr.msra.gmra.mxu1 %v5077_v49  ;;  %1501 = vmatmul.bf16.vlgmr.msra.gmra.mxu3 %v5077_v49  ;;  %v5252_v50 = vpack.c.bf16 %v1859_v34, %v1851_v28  ;;  %v1740_v12 = vmax.f32 %v1209_v25, 0.0  ;;  %v4658_v25 = vld [vmem:[#allocation5 + $0x11c] sm:$0xf] }
 0x13b   :  { %v1257_v54 = vpop.f32.mrf.mxu2 }
 0x13c   :  { %5840 = vst [vmem:[#allocation20_spill] sm:$0xff] %v5252_v50  ;;  %v1258_v57 = vadd.f32 %v1257_v54, %v5249_v35  ;;  %v3758_v54 = vor.u32 %v4658_v25, %v3755_v43 }
 0x13d   :  { %v1306_v58 = vpop.f32.mrf.mxu3  ;;  %v1161_v60 = vpop.f32.mrf.mxu0 }
 0x13e   :  { %v1162_v62 = vadd.f32 %v1161_v60, %v5239_v9  ;;  %v1307_v0 = vadd.f32 %v1306_v58, %v1258_v57  ;;  %v4722_v57 = vld [vmem:[#allocation5 + $0x31c] sm:$0xf]  ;;  %v3754_v60 = vor.u32 %v4662_v56, %v3753_v55  ;;  %1643 = vmatpush.bf16.msrb.mxu2 %v3758_v54 }
 0x13f   :  { %v1210_v63 = vpop.f32.mrf.mxu1 }
 0x140   :  { %v1211_v1 = vadd.f32 %v1210_v63, %v1162_v62  ;;  %v1741_v39 = vmax.f32 %v1307_v0, 0.0  ;;  %1545 = vmatpush.bf16.msrb.mxu0 %v3754_v60 }
 0x142   :  { %v1748_v13 = vmax.f32 %v1211_v1, 0.0  ;;  %v4014_v1 = vor.u32 %v4722_v57, %v4011_v19  ;;  %v3721_v19 = vld [vmem:[#allocation5 + $0xd8] sm:$0xf] }
 0x143   :  { %v1259_v21 = vpop.f32.mrf.mxu2 }
 0x144   :  { %v5256_v20 = vpack.c.bf16 %v1748_v13, %v1740_v12  ;;  %v1260_v23 = vadd.f32 %v1259_v21, %v5249_v35  ;;  %1692 = vmatpush.bf16.msrb.mxu3 %v4014_v1  ;;  %v4726_v21 = vld [vmem:[#allocation5 + $0x334] sm:$0xf0] }
 0x145   :  { %v1308_v31 = vpop.f32.mrf.mxu3  ;;  %v1164_v29 = vpop.f32.mrf.mxu0 }
 0x146   :  { %v1165_v28 = vadd.f32 %v1164_v29, %v5239_v9  ;;  %v1309_v30 = vadd.f32 %v1308_v31, %v1260_v23  ;;  %v4010_v29 = vor.u32 %v4726_v21, %v4009_v22 }
 0x147   :  { %v1213_v34 = vpop.f32.mrf.mxu1 }
 0x148   :  { %v1214_v38 = vadd.f32 %v1213_v34, %v1165_v28  ;;  %1359 = vmatmul.bf16.gmra.mxu0 %v5083_v14  ;;  %v1749_v41 = vmax.f32 %v1309_v30, 0.0  ;;  %1457 = vmatmul.bf16.gmra.mxu2 %v5083_v14 }
 0x149   :  { %1594 = vmatpush.bf16.msrb.mxu1 %v4010_v29 }
 0x14a   :  { %1408 = vmatmul.bf16.gmra.mxu1 %v5085_v15  ;;  %1506 = vmatmul.bf16.gmra.mxu3 %v5085_v15  ;;  %v5264_v45 = vpack.c.bf16 %v1749_v41, %v1741_v39  ;;  %v1756_v23 = vmax.f32 %v1214_v38, 0.0  ;;  %v4650_v38 = vld [vmem:[#allocation5 + $0xdc] sm:$0xf] }
 0x14b   :  { %v1262_v58 = vpop.f32.mrf.mxu2 }
 0x14c   :  { %v1263_v62 = vadd.f32 %v1262_v58, %v5249_v35  ;;  %v3723_v58 = vld [vmem:[#allocation5 + $0xf8] sm:$0xf0] }
 0x14d   :  { %v1311_v63 = vpop.f32.mrf.mxu3  ;;  %v1166_v0 = vpop.f32.mrf.mxu0  ;;  %v3726_v60 = vor.u32 %v4650_v38, %v3723_v58 }
 0x14e   :  { %v1167_v2 = vadd.f32 %v1166_v0, %v5239_v9  ;;  %v1312_v12 = vadd.f32 %v1311_v63, %v1263_v62  ;;  %v4654_v62 = vld [vmem:[#allocation5 + $0xf4] sm:$0xf0]  ;;  %v4714_v63 = vld [vmem:[#allocation5 + $0x2dc] sm:$0xf] }
 0x14f   :  { %v1215_v3 = vpop.f32.mrf.mxu1  ;;  %1644 = vmatpush.bf16.msrb.mxu2 %v3726_v60 }
 0x150   :  { %v1216_v13 = vadd.f32 %v1215_v3, %v1167_v2  ;;  %v1757_v56 = vmax.f32 %v1312_v12, 0.0  ;;  %v3722_v2 = vor.u32 %v4654_v62, %v3721_v19  ;;  %v3979_v3 = vld [vmem:[#allocation5 + $0x2f8] sm:$0xf0] }
 0x151   :  { %v3982_v21 = vor.u32 %v4714_v63, %v3979_v3  ;;  %v3691_v3 = vld [vmem:[#allocation5 + $0xb8] sm:$0xf0] }
 0x152   :  { %v1764_v31 = vmax.f32 %v1216_v13, 0.0  ;;  %1546 = vmatpush.bf16.msrb.mxu0 %v3722_v2 }
 0x153   :  { %v1264_v28 = vpop.f32.mrf.mxu2  ;;  %1693 = vmatpush.bf16.msrb.mxu3 %v3982_v21  ;;  %v4706_v21 = vld [vmem:[#allocation5 + $0x29c] sm:$0xf] }
 0x154   :  { %v5268_v34 = vpack.c.bf16 %v1764_v31, %v1756_v23  ;;  %v1265_v30 = vadd.f32 %v1264_v28, %v5249_v35 }
 0x155   :  { %v1313_v39 = vpop.f32.mrf.mxu3  ;;  %v1169_v41 = vpop.f32.mrf.mxu0 }
 0x156   :  { %5841 = vst [vmem:[#allocation21_spill] sm:$0xff] %v5268_v34  ;;  %v1170_v25 = vadd.f32 %v1169_v41, %v5239_v9  ;;  %v1314_v54 = vadd.f32 %v1313_v39, %v1265_v30  ;;  %v3977_v30 = vld [vmem:[#allocation5 + $0x2d8] sm:$0xf] }
 0x157   :  { %v1218_v43 = vpop.f32.mrf.mxu1  ;;  %v4718_v39 = vld [vmem:[#allocation5 + $0x2f4] sm:$0xf0] }
 0x158   :  { %v1219_v55 = vadd.f32 %v1218_v43, %v1170_v25  ;;  %1364 = vmatmul.bf16.gmra.mxu0 %v5091_v32  ;;  %v1765_v57 = vmax.f32 %v1314_v54, 0.0  ;;  %1462 = vmatmul.bf16.gmra.mxu2 %v5091_v32  ;;  %v3978_v43 = vor.u32 %v4718_v39, %v3977_v30  ;;  %v3947_v30 = vld [vmem:[#allocation5 + $0x2b8] sm:$0xf0] }
 0x15a   :  { %1413 = vmatmul.bf16.gmra.mxu1 %v5093_v33  ;;  %1511 = vmatmul.bf16.gmra.mxu3 %v5093_v33  ;;  %v5276_v0 = vpack.c.bf16 %v1765_v57, %v1757_v56  ;;  %v1772_v41 = vmax.f32 %v1219_v55, 0.0  ;;  %v4642_v55 = vld [vmem:[#allocation5 + $0x9c] sm:$0xf] }
 0x15b   :  { %v1267_v1 = vpop.f32.mrf.mxu2  ;;  %1595 = vmatpush.bf16.msrb.mxu1 %v3978_v43 }
 0x15c   :  { %5842 = vst [vmem:[#allocation22_spill] sm:$0xff] %v5276_v0  ;;  %v1268_v12 = vadd.f32 %v1267_v1, %v5249_v35 }
 0x15d   :  { %v1316_v13 = vpop.f32.mrf.mxu3  ;;  %v1171_v22 = vpop.f32.mrf.mxu0 }
 0x15e   :  { %v1172_v23 = vadd.f32 %v1171_v22, %v5239_v9  ;;  %v1317_v29 = vadd.f32 %v1316_v13, %v1268_v12  ;;  %v3694_v12 = vor.u32 %v4642_v55, %v3691_v3  ;;  %v3689_v13 = vld [vmem:[#allocation5 + $0x98] sm:$0xf] }
 0x15f   :  { %v1220_v31 = vpop.f32.mrf.mxu1  ;;  %v4646_v22 = vld [vmem:[#allocation5 + $0xb4] sm:$0xf0] }
 0x160   :  { %v1221_v28 = vadd.f32 %v1220_v31, %v1172_v23  ;;  %v1773_v1 = vmax.f32 %v1317_v29, 0.0  ;;  %1645 = vmatpush.bf16.msrb.mxu2 %v3694_v12 }
 0x162   :  { %v1780_v25 = vmax.f32 %v1221_v28, 0.0  ;;  %v3690_v28 = vor.u32 %v4646_v22, %v3689_v13 }
 0x163   :  { %v1269_v54 = vpop.f32.mrf.mxu2 }
 0x164   :  { %v5280_v56 = vpack.c.bf16 %v1780_v25, %v1772_v41  ;;  %v1270_v57 = vadd.f32 %v1269_v54, %v5249_v35  ;;  %v3950_v25 = vor.u32 %v4706_v21, %v3947_v30  ;;  %1547 = vmatpush.bf16.msrb.mxu0 %v3690_v28 }
 0x165   :  { %v1318_v38 = vpop.f32.mrf.mxu3  ;;  %v1174_v58 = vpop.f32.mrf.mxu0 }
 0x166   :  { %5843 = vst [vmem:[#allocation23_spill] sm:$0xff] %v5280_v56  ;;  %v1175_v60 = vadd.f32 %v1174_v58, %v5239_v9  ;;  %v1319_v62 = vadd.f32 %v1318_v38, %v1270_v57  ;;  %1694 = vmatpush.bf16.msrb.mxu3 %v3950_v25  ;;  %v3945_v58 = vld [vmem:[#allocation5 + $0x298] sm:$0xf] }
 0x167   :  { %v1223_v19 = vpop.f32.mrf.mxu1  ;;  %v3657_v25 = vld [vmem:[#allocation5 + $0x58] sm:$0xf] }
 0x168   :  { %v1224_v63 = vadd.f32 %v1223_v19, %v1175_v60  ;;  %1369 = vmatmul.bf16.gmra.mxu0 %v5099_v52  ;;  %v1781_v2 = vmax.f32 %v1319_v62, 0.0  ;;  %1467 = vmatmul.bf16.gmra.mxu2 %v5099_v52  ;;  %v4710_v60 = vld [vmem:[#allocation5 + $0x2b4] sm:$0xf0] }
 0x16a   :  { %1418 = vmatmul.bf16.gmra.mxu1 %v5101_v53  ;;  %1516 = vmatmul.bf16.gmra.mxu3 %v5101_v53  ;;  %v5288_v23 = vpack.c.bf16 %v1781_v2, %v1773_v1  ;;  %v1788_v19 = vmax.f32 %v1224_v63, 0.0  ;;  %v3946_v1 = vor.u32 %v4710_v60, %v3945_v58  ;;  %v4634_v63 = vld [vmem:[#allocation5 + $0x5c] sm:$0xf] }
 0x16b   :  { %v1272_v31 = vpop.f32.mrf.mxu2 }
 0x16c   :  { %5844 = vst [vmem:[#allocation24_spill] sm:$0xff] %v5288_v23  ;;  %v1273_v29 = vadd.f32 %v1272_v31, %v5249_v35  ;;  %1596 = vmatpush.bf16.msrb.mxu1 %v3946_v1 }
 0x16d   :  { %v1321_v39 = vpop.f32.mrf.mxu3  ;;  %v1176_v41 = vpop.f32.mrf.mxu0 }
 0x16e   :  { %v1177_v43 = vadd.f32 %v1176_v41, %v5239_v9  ;;  %v1322_v57 = vadd.f32 %v1321_v39, %v1273_v29  ;;  %v3659_v39 = vld [vmem:[#allocation5 + $0x78] sm:$0xf0] }
 0x16f   :  { %v1225_v54 = vpop.f32.mrf.mxu1  ;;  %v3662_v41 = vor.u32 %v4634_v63, %v3659_v39 }
 0x170   :  { %v1226_v38 = vadd.f32 %v1225_v54, %v1177_v43  ;;  %v1789_v30 = vmax.f32 %v1322_v57, 0.0  ;;  %v4638_v43 = vld [vmem:[#allocation5 + $0x74] sm:$0xf0]  ;;  %v4698_v54 = vld [vmem:[#allocation5 + $0x25c] sm:$0xf] }
 0x171   :  { %v3658_v60 = vor.u32 %v4638_v43, %v3657_v25  ;;  %1646 = vmatpush.bf16.msrb.mxu2 %v3662_v41 }
 0x172   :  { %v1796_v62 = vmax.f32 %v1226_v38, 0.0 }
 0x173   :  { %v1274_v2 = vpop.f32.mrf.mxu2  ;;  %1548 = vmatpush.bf16.msrb.mxu0 %v3658_v60 }
 0x174   :  { %v5292_v55 = vpack.c.bf16 %v1796_v62, %v1788_v19  ;;  %v1275_v3 = vadd.f32 %v1274_v2, %v5249_v35  ;;  %v3915_v19 = vld [vmem:[#allocation5 + $0x278] sm:$0xf0] }
 0x175   :  { %v1323_v12 = vpop.f32.mrf.mxu3  ;;  %v1179_v13 = vpop.f32.mrf.mxu0  ;;  %v3918_v2 = vor.u32 %v4698_v54, %v3915_v19 }
 0x176   :  { %5845 = vst [vmem:[#allocation25_spill] sm:$0xff] %v5292_v55  ;;  %v1180_v22 = vadd.f32 %v1179_v13, %v5239_v9  ;;  %v1324_v31 = vadd.f32 %v1323_v12, %v1275_v3 }
 0x177   :  { %v1228_v21 = vpop.f32.mrf.mxu1  ;;  %1695 = vmatpush.bf16.msrb.mxu3 %v3918_v2  ;;  %v3627_v2 = vld [vmem:[#allocation5 + $0x38] sm:$0xf0] }
 0x178   :  { %v1229_v28 = vadd.f32 %v1228_v21, %v1180_v22  ;;  %1374 = vmatmul.bf16.gmra.mxu0 %v5107_v6  ;;  %v1797_v29 = vmax.f32 %v1324_v31, 0.0  ;;  %1472 = vmatmul.bf16.gmra.mxu2 %v5107_v6  ;;  %v3913_v21 = vld [vmem:[#allocation5 + $0x258] sm:$0xf] }
 0x179   :  { %v4702_v31 = vld [vmem:[#allocation5 + $0x274] sm:$0xf0] }
 0x17a   :  { %1423 = vmatmul.bf16.gmra.mxu1 %v5109_v7  ;;  %1521 = vmatmul.bf16.gmra.mxu3 %v5109_v7  ;;  %v5300_v38 = vpack.c.bf16 %v1797_v29, %v1789_v30  ;;  %v1804_v30 = vmax.f32 %v1229_v28, 0.0  ;;  %v3914_v63 = vor.u32 %v4702_v31, %v3913_v21  ;;  %v4626_v28 = vld [vmem:[#allocation5 + $0x1c] sm:$0xf] }
 0x17b   :  { %v1277_v58 = vpop.f32.mrf.mxu2  ;;  %v4690_v21 = vld [vmem:[#allocation5 + $0x21c] sm:$0xf] }
 0x17c   :  { %5846 = vst [vmem:[#allocation26_spill] sm:$0xff] %v5300_v38  ;;  %v1278_v57 = vadd.f32 %v1277_v58, %v5249_v35  ;;  %1597 = vmatpush.bf16.msrb.mxu1 %v3914_v63  ;;  %v3883_v63 = vld [vmem:[#allocation5 + $0x238] sm:$0xf0] }
 0x17d   :  { %v1326_v62 = vpop.f32.mrf.mxu3  ;;  %v1181_v1 = vpop.f32.mrf.mxu0 }
 0x17e   :  { %v1182_v3 = vadd.f32 %v1181_v1, %v5239_v9  ;;  %v1327_v13 = vadd.f32 %v1326_v62, %v1278_v57 }
 0x17f   :  { %v1230_v12 = vpop.f32.mrf.mxu1 }
 0x180   :  { %v1231_v22 = vadd.f32 %v1230_v12, %v1182_v3  ;;  %v1805_v62 = vmax.f32 %v1327_v13, 0.0  ;;  %v3630_v3 = vor.u32 %v4626_v28, %v3627_v2  ;;  %v3625_v12 = vld [vmem:[#allocation5 + $0x18] sm:$0xf] }
 0x181   :  { %v3881_v28 = vld [vmem:[#allocation5 + $0x218] sm:$0xf] }
 0x182   :  { %v1812_v29 = vmax.f32 %v1231_v22, 0.0  ;;  %v4630_v22 = vld [vmem:[#allocation5 + $0x34] sm:$0xf0]  ;;  %1647 = vmatpush.bf16.msrb.mxu2 %v3630_v3 }
 0x183   :  { %v1279_v39 = vpop.f32.mrf.mxu2  ;;  %v4694_v2 = vld [vmem:[#allocation5 + $0x234] sm:$0xf0] }
 0x184   :  { %v5304_v25 = vpack.c.bf16 %v1812_v29, %v1804_v30  ;;  %v1280_v43 = vadd.f32 %v1279_v39, %v5249_v35  ;;  %v3626_v29 = vor.u32 %v4630_v22, %v3625_v12  ;;  %v3882_v50 = vor.u32 %v4694_v2, %v3881_v28  ;;  %v4361_v28 = vld [vmem:[#allocation8 + $0x1f0] sm:$0xf] }
 0x185   :  { %v1328_v41 = vpop.f32.mrf.mxu3  ;;  %v1184_v54 = vpop.f32.mrf.mxu0 }
 0x186   :  { %5847 = vst [vmem:[#allocation27_spill] sm:$0xff] %v5304_v25  ;;  %v1185_v58 = vadd.f32 %v1184_v54, %v5239_v9  ;;  %v1329_v60 = vadd.f32 %v1328_v41, %v1280_v43  ;;  %v3886_v41 = vor.u32 %v4690_v21, %v3883_v63  ;;  %1549 = vmatpush.bf16.msrb.mxu0 %v3626_v29 }
 0x187   :  { %v1233_v19 = vpop.f32.mrf.mxu1  ;;  %1598 = vmatpush.bf16.msrb.mxu1 %v3882_v50  ;;  %v4297_v50 = vld [vmem:[#allocation8 + $0x170] sm:$0xf] }
 0x188   :  { %v1234_v57 = vadd.f32 %v1233_v19, %v1185_v58  ;;  %1379 = vmatmul.bf16.gmra.mxu0 %v5115_v26  ;;  %v1813_v1 = vmax.f32 %v1329_v60, 0.0  ;;  %1477 = vmatmul.bf16.gmra.mxu2 %v5115_v26 }
 0x189   :  { %1696 = vmatpush.bf16.msrb.mxu3 %v3886_v41 }
 0x18a   :  { %1428 = vmatmul.bf16.gmra.mxu1 %v5117_v27  ;;  %1526 = vmatmul.bf16.gmra.mxu3 %v5117_v27  ;;  %v5312_v31 = vpack.c.bf16 %v1813_v1, %v1805_v62  ;;  %v1820_v62 = vmax.f32 %v1234_v57, 0.0  ;;  %v4798_v57 = vld [vmem:[#allocation8 + $0x174] sm:$0xf0] }
 0x18b   :  { %v1282_v30 = vpop.f32.mrf.mxu2 }
 0x18c   :  { %5848 = vst [vmem:[#allocation28_spill] sm:$0xff] %v5312_v31  ;;  %v1283_v13 = vadd.f32 %v1282_v30, %v5249_v35 }
 0x18d   :  { %v1331_v39 = vpop.f32.mrf.mxu3  ;;  %v1186_v43 = vpop.f32.mrf.mxu0 }
 0x18e   :  { %v1187_v54 = vadd.f32 %v1186_v43, %v5239_v9  ;;  %v1332_v19 = vadd.f32 %v1331_v39, %v1283_v13 }
 0x18f   :  { %v1235_v58 = vpop.f32.mrf.mxu1 }
 0x190   :  { %v1236_v60 = vadd.f32 %v1235_v58, %v1187_v54  ;;  %v1821_v39 = vmax.f32 %v1332_v19, 0.0  ;;  %v4298_v54 = vor.u32 %v4798_v57, %v4297_v50  ;;  %v4169_v58 = vld [vmem:[#allocation8 + $0x70] sm:$0xf] }
 0x191   :  { %v4233_v57 = vld [vmem:[#allocation8 + $0xf0] sm:$0xf] }
 0x192   :  { %v1828_v1 = vmax.f32 %v1236_v60, 0.0  ;;  %v4766_v60 = vld [vmem:[#allocation8 + $0x74] sm:$0xf0]  ;;  %2828 = vmatpush.bf16.msra.mxu2 %v4298_v54  ;;  %v4234_v37 = vor.u32 %v4782_v18, %v4233_v57  ;;  %v4796_v18 = vld [vmem:[#allocation8 + $0x164] sm:$0xf0] }
 0x193   :  { %v1284_v12 = vpop.f32.mrf.mxu2  ;;  %v4764_v57 = vld [vmem:[#allocation8 + $0x64] sm:$0xf0] }
 0x194   :  { %v5316_v22 = vpack.c.bf16 %v1828_v1, %v1820_v62  ;;  %v1285_v30 = vadd.f32 %v1284_v12, %v5249_v35  ;;  %v4170_v1 = vor.u32 %v4766_v60, %v4169_v58  ;;  %v4814_v12 = vld [vmem:[#allocation8 + $0x1f4] sm:$0xf0]  ;;  %2779 = vmatpush.bf16.msra.mxu1 %v4234_v37  ;;  %v4289_v37 = vld [vmem:[#allocation8 + $0x160] sm:$0xf] }
 0x195   :  { %v1333_v3 = vpop.f32.mrf.mxu3  ;;  %v1189_v21 = vpop.f32.mrf.mxu0 }
 0x196   :  { %5849 = vst [vmem:[#allocation29_spill] sm:$0xff] %v5316_v22  ;;  %v1190_v63 = vadd.f32 %v1189_v21, %v5239_v9  ;;  %v1334_v29 = vadd.f32 %v1333_v3, %v1285_v30  ;;  %v4362_v21 = vor.u32 %v4814_v12, %v4361_v28  ;;  %2730 = vmatpush.bf16.msra.mxu0 %v4170_v1 }
 0x197   :  { %v1238_v43 = vpop.f32.mrf.mxu1 }
 0x198   :  { %v1239_v13 = vadd.f32 %v1238_v43, %v1190_v63  ;;  %1384 = vmatmul.bf16.gmra.mxu0 %v5123_v47  ;;  %v1829_v41 = vmax.f32 %v1334_v29, 0.0  ;;  %1482 = vmatmul.bf16.gmra.mxu2 %v5123_v47 }
 0x199   :  { %2877 = vmatpush.bf16.msra.mxu3 %v4362_v21 }
 0x19a   :  { %1433 = vmatmul.bf16.gmra.mxu1 %v5125_v48  ;;  %1531 = vmatmul.bf16.gmra.mxu3 %v5125_v48  ;;  %v5324_v2 = vpack.c.bf16 %v1829_v41, %v1821_v39  ;;  %v1836_v39 = vmax.f32 %v1239_v13, 0.0  ;;  %v4161_v13 = vld [vmem:[#allocation8 + $0x60] sm:$0xf] }
 0x19b   :  { %v1287_v62 = vpop.f32.mrf.mxu2 }
 0x19c   :  { %5850 = vst [vmem:[#allocation30_spill] sm:$0xff] %v5324_v2  ;;  %v1288_v19 = vadd.f32 %v1287_v62, %v5249_v35 }
 0x19d   :  { %v1336_v30 = vpop.f32.mrf.mxu3  ;;  %v1191_v3 = vpop.f32.mrf.mxu0 }
 0x19e   :  { %v1192_v63 = vadd.f32 %v1191_v3, %v5239_v9  ;;  %v1337_v29 = vadd.f32 %v1336_v30, %v1288_v19 }
 0x19f   :  { %v1240_v43 = vpop.f32.mrf.mxu1 }
 0x1a0   :  { %v1241_v50 = vadd.f32 %v1240_v43, %v1192_v63  ;;  %v1837_v30 = vmax.f32 %v1337_v29, 0.0 }
 0x1a2   :  { %v1844_v41 = vmax.f32 %v1241_v50, 0.0  ;;  %v4290_v50 = vor.u32 %v4796_v18, %v4289_v37 }
 0x1a3   :  { %v1289_v58 = vpop.f32.mrf.mxu2 }
 0x1a4   :  { %v5328_v60 = vpack.c.bf16 %v1844_v41, %v1836_v39  ;;  %v1290_v62 = vadd.f32 %v1289_v58, %v5249_v35  ;;  %v4353_v39 = vld [vmem:[#allocation8 + $0x1e0] sm:$0xf]  ;;  %v4812_v41 = vld [vmem:[#allocation8 + $0x1e4] sm:$0xf0]  ;;  %2829 = vmatpush.bf16.msra.mxu2 %v4290_v50 }
 0x1a5   :  { %v1338_v54 = vpop.f32.mrf.mxu3  ;;  %v1194_v28 = vpop.f32.mrf.mxu0 }
 0x1a6   :  { %5851 = vst [vmem:[#allocation31_spill] sm:$0xff] %v5328_v60  ;;  %v1195_v12 = vadd.f32 %v1194_v28, %v5239_v9  ;;  %v1339_v1 = vadd.f32 %v1338_v54, %v1290_v62  ;;  %v4162_v54 = vor.u32 %v4764_v57, %v4161_v13  ;;  %v4354_v28 = vor.u32 %v4812_v41, %v4353_v39  ;;  %v5340_v60 = vld [vmem:[#allocation7] sm:$0xff] }
 0x1a7   :  { %v1243_v3 = vpop.f32.mrf.mxu1 }
 0x1a8   :  { %v1244_v19 = vadd.f32 %v1243_v3, %v1195_v12  ;;  %1389 = vmatmul.bf16.gmra.mxu0 %v5131_v4  ;;  %v1845_v21 = vmax.f32 %v1339_v1, 0.0  ;;  %1487 = vmatmul.bf16.gmra.mxu2 %v5131_v4 }
 0x1a9   :  { %2731 = vmatpush.bf16.msra.mxu0 %v4162_v54  ;;  %2878 = vmatpush.bf16.msra.mxu3 %v4354_v28 }
 0x1aa   :  { %1438 = vmatmul.bf16.gmra.mxu1 %v5133_v5  ;;  %1536 = vmatmul.bf16.gmra.mxu3 %v5133_v5  ;;  %v5336_v63 = vpack.c.bf16 %v1845_v21, %v1837_v30  ;;  %v4225_v21 = vld [vmem:[#allocation8 + $0xe0] sm:$0xf]  ;;  %v1852_v37 = vmax.f32 %v1244_v19, 0.0 }
 0x1ab   :  { %v1292_v43 = vpop.f32.mrf.mxu2 }
 0x1ac   :  { %5852 = vst [vmem:[#allocation32_spill] sm:$0xff] %v5336_v63  ;;  %v1293_v58 = vadd.f32 %v1292_v43, %v5249_v35  ;;  %v4780_v63 = vld [vmem:[#allocation8 + $0xe4] sm:$0xf0]  ;;  %v5343_v43 = vperm.slane %v5340_v60, 4 }
 0x1ad   :  { %v1341_v29 = vpop.f32.mrf.mxu3  ;;  %v1196_v62 = vpop.f32.mrf.mxu0  ;;  %v4226_v10 = vor.u32 %v4780_v63, %v4225_v21  ;;  %v4794_v63 = vld [vmem:[#allocation8 + $0x154] sm:$0xf0] }
 0x1ae   :  { %v1197_v12 = vadd.f32 %v1196_v62, %v5239_v9  ;;  %v1342_v1 = vadd.f32 %v1341_v29, %v1293_v58 }
 0x1af   :  { %v1245_v3 = vpop.f32.mrf.mxu1  ;;  %2780 = vmatpush.bf16.msra.mxu1 %v4226_v10  ;;  %v5353_v10 = vperm.slane %v5340_v60, 5 }
 0x1b0   :  { %v1246_v30 = vadd.f32 %v1245_v3, %v1197_v12  ;;  %v1853_v62 = vmax.f32 %v1342_v1, 0.0  ;;  %v4153_v12 = vld [vmem:[#allocation8 + $0x50] sm:$0xf]  ;;  %v4762_v3 = vld [vmem:[#allocation8 + $0x54] sm:$0xf0] }
 0x1b1   :  { %v4154_v1 = vor.u32 %v4762_v3, %v4153_v12 }
 0x1b2   :  { %v1860_v18 = vmax.f32 %v1246_v30, 0.0  ;;  %v4345_v30 = vld [vmem:[#allocation8 + $0x1d0] sm:$0xf] }
 0x1b3   :  { %v1294_v13 = vpop.f32.mrf.mxu2  ;;  %2732 = vmatpush.bf16.msra.mxu0 %v4154_v1 }
 0x1b4   :  { %v5345_v57 = vpack.c.bf16 %v1860_v18, %v1852_v37  ;;  %v1295_v9 = vadd.f32 %v1294_v13, %v5249_v35  ;;  %v4281_v35 = vld [vmem:[#allocation8 + $0x150] sm:$0xf]  ;;  %v4810_v18 = vld [vmem:[#allocation8 + $0x1d4] sm:$0xf0] }
 0x1b5   :  { %v1343_v50 = vpop.f32.mrf.mxu3  ;;  %v1355_v39 = vpop.f32.mrf.mxu0  ;;  %v4282_v28 = vor.u32 %v4794_v63, %v4281_v35  ;;  %v4778_v35 = vld [vmem:[#allocation8 + $0xd4] sm:$0xf0] }
 0x1b6   :  { %5853 = vst [vmem:[#allocation33_spill] sm:$0xff] %v5345_v57  ;;  %v1356_v41 = vadd.f32 %v1355_v39, %v5343_v43  ;;  %v1344_v29 = vadd.f32 %v1343_v50, %v1295_v9  ;;  %v4346_v50 = vor.u32 %v4810_v18, %v4345_v30 }
 0x1b7   :  { %v1404_v58 = vpop.f32.mrf.mxu1  ;;  %2830 = vmatpush.bf16.msra.mxu2 %v4282_v28 }
 0x1b8   :  { %v1405_v19 = vadd.f32 %v1404_v58, %v1356_v41  ;;  %1550 = vmatmul.bf16.vlgmr.msrb.gmra.mxu0 %v5075_v44  ;;  %v1861_v54 = vmax.f32 %v1344_v29, 0.0  ;;  %1648 = vmatmul.bf16.vlgmr.msrb.gmra.mxu2 %v5075_v44  ;;  %v4217_v29 = vld [vmem:[#allocation8 + $0xd0] sm:$0xf] }
 0x1b9   :  { %2879 = vmatpush.bf16.msra.mxu3 %v4346_v50  ;;  %v4218_v63 = vor.u32 %v4778_v35, %v4217_v29  ;;  %v4145_v29 = vld [vmem:[#allocation8 + $0x40] sm:$0xf]  ;;  %v4760_v35 = vld [vmem:[#allocation8 + $0x44] sm:$0xf0] }
 0x1ba   :  { %1599 = vmatmul.bf16.vlgmr.msrb.gmra.mxu1 %v5077_v49  ;;  %1697 = vmatmul.bf16.vlgmr.msrb.gmra.mxu3 %v5077_v49  ;;  %v5356_v21 = vpack.c.bf16 %v1861_v54, %v1853_v62  ;;  %v1742_v62 = vmax.f32 %v1405_v19, 0.0  ;;  %v4273_v19 = vld [vmem:[#allocation8 + $0x140] sm:$0xf] }
 0x1bb   :  { %v1453_v37 = vpop.f32.mrf.mxu2  ;;  %2781 = vmatpush.bf16.msra.mxu1 %v4218_v63  ;;  %v4146_v63 = vor.u32 %v4760_v35, %v4145_v29 }
 0x1bc   :  { %5854 = vst [vmem:[#allocation34_spill] sm:$0xff] %v5356_v21  ;;  %v1454_v13 = vadd.f32 %v1453_v37, %v5353_v10 }
 0x1bd   :  { %v1502_v9 = vpop.f32.mrf.mxu3  ;;  %v1357_v44 = vpop.f32.mrf.mxu0  ;;  %2733 = vmatpush.bf16.msra.mxu0 %v4146_v63 }
 0x1be   :  { %v1358_v39 = vadd.f32 %v1357_v44, %v5343_v43  ;;  %v1503_v41 = vadd.f32 %v1502_v9, %v1454_v13 }
 0x1bf   :  { %v1406_v49 = vpop.f32.mrf.mxu1 }
 0x1c0   :  { %v1407_v58 = vadd.f32 %v1406_v49, %v1358_v39  ;;  %v1743_v9 = vmax.f32 %v1503_v41, 0.0  ;;  %v4792_v39 = vld [vmem:[#allocation8 + $0x144] sm:$0xf0] }
 0x1c2   :  { %v1750_v54 = vmax.f32 %v1407_v58, 0.0  ;;  %v4274_v58 = vor.u32 %v4792_v39, %v4273_v19 }
 0x1c3   :  { %v1455_v3 = vpop.f32.mrf.mxu2 }
 0x1c4   :  { %v5360_v12 = vpack.c.bf16 %v1750_v54, %v1742_v62  ;;  %v1456_v37 = vadd.f32 %v1455_v3, %v5353_v10  ;;  %v4337_v62 = vld [vmem:[#allocation8 + $0x1c0] sm:$0xf]  ;;  %v4808_v3 = vld [vmem:[#allocation8 + $0x1c4] sm:$0xf0]  ;;  %2831 = vmatpush.bf16.msra.mxu2 %v4274_v58 }
 0x1c5   :  { %v1504_v28 = vpop.f32.mrf.mxu3  ;;  %v1360_v30 = vpop.f32.mrf.mxu0 }
 0x1c6   :  { %v1361_v18 = vadd.f32 %v1360_v30, %v5343_v43  ;;  %v1505_v1 = vadd.f32 %v1504_v28, %v1456_v37  ;;  %v4338_v30 = vor.u32 %v4808_v3, %v4337_v62 }
 0x1c7   :  { %v1409_v44 = vpop.f32.mrf.mxu1 }
 0x1c8   :  { %v1410_v13 = vadd.f32 %v1409_v44, %v1361_v18  ;;  %1555 = vmatmul.bf16.gmra.mxu0 %v5083_v14  ;;  %v1751_v50 = vmax.f32 %v1505_v1, 0.0  ;;  %1653 = vmatmul.bf16.gmra.mxu2 %v5083_v14  ;;  %v4209_v1 = vld [vmem:[#allocation8 + $0xc0] sm:$0xf] }
 0x1c9   :  { %2880 = vmatpush.bf16.msra.mxu3 %v4338_v30 }
 0x1ca   :  { %1604 = vmatmul.bf16.gmra.mxu1 %v5085_v15  ;;  %1702 = vmatmul.bf16.gmra.mxu3 %v5085_v15  ;;  %v5368_v49 = vpack.c.bf16 %v1751_v50, %v1743_v9  ;;  %v4776_v9 = vld [vmem:[#allocation8 + $0xc4] sm:$0xf0]  ;;  %v1758_v50 = vmax.f32 %v1410_v13, 0.0  ;;  %v4265_v13 = vld [vmem:[#allocation8 + $0x130] sm:$0xf] }
 0x1cb   :  { %v1458_v54 = vpop.f32.mrf.mxu2  ;;  %v4210_v39 = vor.u32 %v4776_v9, %v4209_v1  ;;  %v4758_v1 = vld [vmem:[#allocation8 + $0x34] sm:$0xf0]  ;;  %v4329_v9 = vld [vmem:[#allocation8 + $0x1b0] sm:$0xf] }
 0x1cc   :  { %v1459_v41 = vadd.f32 %v1458_v54, %v5353_v10 }
 0x1cd   :  { %v1507_v37 = vpop.f32.mrf.mxu3  ;;  %v1362_v28 = vpop.f32.mrf.mxu0  ;;  %2782 = vmatpush.bf16.msra.mxu1 %v4210_v39 }
 0x1ce   :  { %v1363_v14 = vadd.f32 %v1362_v28, %v5343_v43  ;;  %v1508_v18 = vadd.f32 %v1507_v37, %v1459_v41 }
 0x1cf   :  { %v1411_v15 = vpop.f32.mrf.mxu1 }
 0x1d0   :  { %v1412_v44 = vadd.f32 %v1411_v15, %v1363_v14  ;;  %v1759_v37 = vmax.f32 %v1508_v18, 0.0  ;;  %v4790_v14 = vld [vmem:[#allocation8 + $0x134] sm:$0xf0] }
 0x1d1   :  { %v4266_v15 = vor.u32 %v4790_v14, %v4265_v13  ;;  %v4774_v13 = vld [vmem:[#allocation8 + $0xb4] sm:$0xf0] }
 0x1d2   :  { %v1766_v19 = vmax.f32 %v1412_v44, 0.0  ;;  %v4137_v44 = vld [vmem:[#allocation8 + $0x30] sm:$0xf] }
 0x1d3   :  { %v1460_v29 = vpop.f32.mrf.mxu2  ;;  %v4138_v39 = vor.u32 %v4758_v1, %v4137_v44  ;;  %2832 = vmatpush.bf16.msra.mxu2 %v4266_v15 }
 0x1d4   :  { %v5372_v35 = vpack.c.bf16 %v1766_v19, %v1758_v50  ;;  %v1461_v54 = vadd.f32 %v1460_v29, %v5353_v10  ;;  %v4806_v29 = vld [vmem:[#allocation8 + $0x1b4] sm:$0xf0] }
 0x1d5   :  { %v1509_v58 = vpop.f32.mrf.mxu3  ;;  %v1365_v62 = vpop.f32.mrf.mxu0  ;;  %2734 = vmatpush.bf16.msra.mxu0 %v4138_v39 }
 0x1d6   :  { %v1366_v3 = vadd.f32 %v1365_v62, %v5343_v43  ;;  %v1510_v63 = vadd.f32 %v1509_v58, %v1461_v54  ;;  %v4330_v62 = vor.u32 %v4806_v29, %v4329_v9 }
 0x1d7   :  { %v1414_v28 = vpop.f32.mrf.mxu1 }
 0x1d8   :  { %v1415_v41 = vadd.f32 %v1414_v28, %v1366_v3  ;;  %1560 = vmatmul.bf16.gmra.mxu0 %v5091_v32  ;;  %v1767_v30 = vmax.f32 %v1510_v63, 0.0  ;;  %1658 = vmatmul.bf16.gmra.mxu2 %v5091_v32  ;;  %v4201_v63 = vld [vmem:[#allocation8 + $0xb0] sm:$0xf] }
 0x1d9   :  { %2881 = vmatpush.bf16.msra.mxu3 %v4330_v62  ;;  %v4202_v14 = vor.u32 %v4774_v13, %v4201_v63  ;;  %v4756_v63 = vld [vmem:[#allocation8 + $0x24] sm:$0xf0]  ;;  %v4321_v13 = vld [vmem:[#allocation8 + $0x1a0] sm:$0xf] }
 0x1da   :  { %1609 = vmatmul.bf16.gmra.mxu1 %v5093_v33  ;;  %1707 = vmatmul.bf16.gmra.mxu3 %v5093_v33  ;;  %v5380_v50 = vpack.c.bf16 %v1767_v30, %v1759_v37  ;;  %v1774_v37 = vmax.f32 %v1415_v41, 0.0  ;;  %v4257_v41 = vld [vmem:[#allocation8 + $0x120] sm:$0xf] }
 0x1db   :  { %v1463_v19 = vpop.f32.mrf.mxu2  ;;  %2783 = vmatpush.bf16.msra.mxu1 %v4202_v14 }
 0x1dc   :  { %v1464_v18 = vadd.f32 %v1463_v19, %v5353_v10 }
 0x1dd   :  { %v1512_v54 = vpop.f32.mrf.mxu3  ;;  %v1367_v58 = vpop.f32.mrf.mxu0 }
 0x1de   :  { %v1368_v32 = vadd.f32 %v1367_v58, %v5343_v43  ;;  %v1513_v3 = vadd.f32 %v1512_v54, %v1464_v18 }
 0x1df   :  { %v1416_v33 = vpop.f32.mrf.mxu1 }
 0x1e0   :  { %v1417_v28 = vadd.f32 %v1416_v33, %v1368_v32  ;;  %v1775_v54 = vmax.f32 %v1513_v3, 0.0  ;;  %v4788_v32 = vld [vmem:[#allocation8 + $0x124] sm:$0xf0] }
 0x1e1   :  { %v4258_v33 = vor.u32 %v4788_v32, %v4257_v41  ;;  %v4772_v41 = vld [vmem:[#allocation8 + $0xa4] sm:$0xf0] }
 0x1e2   :  { %v1782_v30 = vmax.f32 %v1417_v28, 0.0  ;;  %v4129_v28 = vld [vmem:[#allocation8 + $0x20] sm:$0xf] }
 0x1e3   :  { %v1465_v44 = vpop.f32.mrf.mxu2  ;;  %v4130_v14 = vor.u32 %v4756_v63, %v4129_v28  ;;  %2833 = vmatpush.bf16.msra.mxu2 %v4258_v33 }
 0x1e4   :  { %v5384_v1 = vpack.c.bf16 %v1782_v30, %v1774_v37  ;;  %v1466_v19 = vadd.f32 %v1465_v44, %v5353_v10  ;;  %v4804_v44 = vld [vmem:[#allocation8 + $0x1a4] sm:$0xf0] }
 0x1e5   :  { %v1514_v15 = vpop.f32.mrf.mxu3  ;;  %v1370_v9 = vpop.f32.mrf.mxu0  ;;  %2735 = vmatpush.bf16.msra.mxu0 %v4130_v14 }
 0x1e6   :  { %v1371_v29 = vadd.f32 %v1370_v9, %v5343_v43  ;;  %v1515_v39 = vadd.f32 %v1514_v15, %v1466_v19  ;;  %v4322_v9 = vor.u32 %v4804_v44, %v4321_v13 }
 0x1e7   :  { %v1419_v58 = vpop.f32.mrf.mxu1 }
 0x1e8   :  { %v1420_v18 = vadd.f32 %v1419_v58, %v1371_v29  ;;  %1565 = vmatmul.bf16.gmra.mxu0 %v5099_v52  ;;  %v1783_v62 = vmax.f32 %v1515_v39, 0.0  ;;  %1663 = vmatmul.bf16.gmra.mxu2 %v5099_v52  ;;  %v4193_v39 = vld [vmem:[#allocation8 + $0xa0] sm:$0xf] }
 0x1e9   :  { %2882 = vmatpush.bf16.msra.mxu3 %v4322_v9  ;;  %v4194_v32 = vor.u32 %v4772_v41, %v4193_v39  ;;  %v4754_v39 = vld [vmem:[#allocation8 + $0x14] sm:$0xf0]  ;;  %v4313_v41 = vld [vmem:[#allocation8 + $0x190] sm:$0xf] }
 0x1ea   :  { %1614 = vmatmul.bf16.gmra.mxu1 %v5101_v53  ;;  %1712 = vmatmul.bf16.gmra.mxu3 %v5101_v53  ;;  %v5392_v37 = vpack.c.bf16 %v1783_v62, %v1775_v54  ;;  %v1790_v54 = vmax.f32 %v1420_v18, 0.0  ;;  %v4249_v18 = vld [vmem:[#allocation8 + $0x110] sm:$0xf] }
 0x1eb   :  { %v1468_v30 = vpop.f32.mrf.mxu2  ;;  %2784 = vmatpush.bf16.msra.mxu1 %v4194_v32 }
 0x1ec   :  { %v1469_v3 = vadd.f32 %v1468_v30, %v5353_v10 }
 0x1ed   :  { %v1517_v19 = vpop.f32.mrf.mxu3  ;;  %v1372_v15 = vpop.f32.mrf.mxu0 }
 0x1ee   :  { %v1373_v52 = vadd.f32 %v1372_v15, %v5343_v43  ;;  %v1518_v29 = vadd.f32 %v1517_v19, %v1469_v3 }
 0x1ef   :  { %v1421_v53 = vpop.f32.mrf.mxu1 }
 0x1f0   :  { %v1422_v58 = vadd.f32 %v1421_v53, %v1373_v52  ;;  %v1791_v19 = vmax.f32 %v1518_v29, 0.0  ;;  %v4786_v52 = vld [vmem:[#allocation8 + $0x114] sm:$0xf0] }
 0x1f1   :  { %v4250_v53 = vor.u32 %v4786_v52, %v4249_v18  ;;  %v4770_v18 = vld [vmem:[#allocation8 + $0x94] sm:$0xf0] }
 0x1f2   :  { %v1798_v62 = vmax.f32 %v1422_v58, 0.0  ;;  %v4121_v58 = vld [vmem:[#allocation8 + $0x10] sm:$0xf] }
 0x1f3   :  { %v1470_v28 = vpop.f32.mrf.mxu2  ;;  %v4122_v32 = vor.u32 %v4754_v39, %v4121_v58  ;;  %2834 = vmatpush.bf16.msra.mxu2 %v4250_v53 }
 0x1f4   :  { %v5396_v63 = vpack.c.bf16 %v1798_v62, %v1790_v54  ;;  %v1471_v30 = vadd.f32 %v1470_v28, %v5353_v10  ;;  %v4802_v28 = vld [vmem:[#allocation8 + $0x194] sm:$0xf0] }
 0x1f5   :  { %v1519_v33 = vpop.f32.mrf.mxu3  ;;  %v1375_v13 = vpop.f32.mrf.mxu0  ;;  %2736 = vmatpush.bf16.msra.mxu0 %v4122_v32 }
 0x1f6   :  { %v1376_v44 = vadd.f32 %v1375_v13, %v5343_v43  ;;  %v1520_v14 = vadd.f32 %v1519_v33, %v1471_v30  ;;  %v4314_v13 = vor.u32 %v4802_v28, %v4313_v41 }
 0x1f7   :  { %v1424_v15 = vpop.f32.mrf.mxu1 }
 0x1f8   :  { %v1425_v3 = vadd.f32 %v1424_v15, %v1376_v44  ;;  %1570 = vmatmul.bf16.gmra.mxu0 %v5107_v6  ;;  %v1799_v9 = vmax.f32 %v1520_v14, 0.0  ;;  %1668 = vmatmul.bf16.gmra.mxu2 %v5107_v6  ;;  %v4185_v14 = vld [vmem:[#allocation8 + $0x90] sm:$0xf] }
 0x1f9   :  { %2883 = vmatpush.bf16.msra.mxu3 %v4314_v13  ;;  %v4186_v52 = vor.u32 %v4770_v18, %v4185_v14  ;;  %v4752_v14 = vld [vmem:[#allocation8 + $0x4] sm:$0xf0]  ;;  %v4305_v18 = vld [vmem:[#allocation8 + $0x180] sm:$0xf] }
 0x1fa   :  { %1619 = vmatmul.bf16.gmra.mxu1 %v5109_v7  ;;  %1717 = vmatmul.bf16.gmra.mxu3 %v5109_v7  ;;  %v5404_v54 = vpack.c.bf16 %v1799_v9, %v1791_v19  ;;  %v1806_v19 = vmax.f32 %v1425_v3, 0.0  ;;  %v4241_v3 = vld [vmem:[#allocation8 + $0x100] sm:$0xf] }
 0x1fb   :  { %v1473_v62 = vpop.f32.mrf.mxu2  ;;  %2785 = vmatpush.bf16.msra.mxu1 %v4186_v52 }
 0x1fc   :  { %v1474_v29 = vadd.f32 %v1473_v62, %v5353_v10 }
 0x1fd   :  { %v1522_v30 = vpop.f32.mrf.mxu3  ;;  %v1377_v33 = vpop.f32.mrf.mxu0 }
 0x1fe   :  { %v1378_v6 = vadd.f32 %v1377_v33, %v5343_v43  ;;  %v1523_v44 = vadd.f32 %v1522_v30, %v1474_v29 }
 0x1ff   :  { %v1426_v7 = vpop.f32.mrf.mxu1 }
 0x200   :  { %v1427_v15 = vadd.f32 %v1426_v7, %v1378_v6  ;;  %v1807_v30 = vmax.f32 %v1523_v44, 0.0  ;;  %v4784_v6 = vld [vmem:[#allocation8 + $0x104] sm:$0xf0] }
 0x201   :  { %v4242_v7 = vor.u32 %v4784_v6, %v4241_v3  ;;  %v4768_v3 = vld [vmem:[#allocation8 + $0x84] sm:$0xf0] }
 0x202   :  { %v1814_v9 = vmax.f32 %v1427_v15, 0.0  ;;  %v4113_v15 = vld [vmem:[#allocation8] sm:$0xf] }
 0x203   :  { %v1475_v58 = vpop.f32.mrf.mxu2  ;;  %v4114_v52 = vor.u32 %v4752_v14, %v4113_v15  ;;  %2835 = vmatpush.bf16.msra.mxu2 %v4242_v7 }
 0x204   :  { %v5408_v39 = vpack.c.bf16 %v1814_v9, %v1806_v19  ;;  %v1476_v62 = vadd.f32 %v1475_v58, %v5353_v10  ;;  %v4800_v58 = vld [vmem:[#allocation8 + $0x184] sm:$0xf0] }
 0x205   :  { %v1524_v53 = vpop.f32.mrf.mxu3  ;;  %v1380_v41 = vpop.f32.mrf.mxu0  ;;  %2737 = vmatpush.bf16.msra.mxu0 %v4114_v52 }
 0x206   :  { %v1381_v28 = vadd.f32 %v1380_v41, %v5343_v43  ;;  %v1525_v32 = vadd.f32 %v1524_v53, %v1476_v62  ;;  %v4306_v41 = vor.u32 %v4800_v58, %v4305_v18 }
 0x207   :  { %v1429_v33 = vpop.f32.mrf.mxu1 }
 0x208   :  { %v1430_v29 = vadd.f32 %v1429_v33, %v1381_v28  ;;  %1575 = vmatmul.bf16.gmra.mxu0 %v5115_v26  ;;  %v1815_v13 = vmax.f32 %v1525_v32, 0.0  ;;  %1673 = vmatmul.bf16.gmra.mxu2 %v5115_v26  ;;  %v4177_v32 = vld [vmem:[#allocation8 + $0x80] sm:$0xf] }
 0x209   :  { %2884 = vmatpush.bf16.msra.mxu3 %v4306_v41  ;;  %v4178_v6 = vor.u32 %v4768_v3, %v4177_v32  ;;  %v4830_v32 = vld [vmem:[#allocation8 + $0x274] sm:$0xf0]  ;;  %v4617_v3 = vld [vmem:[#allocation8 + $0x3f0] sm:$0xf] }
 0x20a   :  { %1624 = vmatmul.bf16.gmra.mxu1 %v5117_v27  ;;  %1722 = vmatmul.bf16.gmra.mxu3 %v5117_v27  ;;  %v5416_v19 = vpack.c.bf16 %v1815_v13, %v1807_v30  ;;  %v1822_v30 = vmax.f32 %v1430_v29, 0.0  ;;  %v4553_v29 = vld [vmem:[#allocation8 + $0x370] sm:$0xf] }
 0x20b   :  { %v1478_v9 = vpop.f32.mrf.mxu2  ;;  %2786 = vmatpush.bf16.msra.mxu1 %v4178_v6 }
 0x20c   :  { %v1479_v44 = vadd.f32 %v1478_v9, %v5353_v10 }
 0x20d   :  { %v1527_v62 = vpop.f32.mrf.mxu3  ;;  %v1382_v53 = vpop.f32.mrf.mxu0 }
 0x20e   :  { %v1383_v26 = vadd.f32 %v1382_v53, %v5343_v43  ;;  %v1528_v28 = vadd.f32 %v1527_v62, %v1479_v44 }
 0x20f   :  { %v1431_v27 = vpop.f32.mrf.mxu1 }
 0x210   :  { %v1432_v33 = vadd.f32 %v1431_v27, %v1383_v26  ;;  %v1823_v62 = vmax.f32 %v1528_v28, 0.0  ;;  %v4862_v26 = vld [vmem:[#allocation8 + $0x374] sm:$0xf0] }
 0x211   :  { %v4554_v27 = vor.u32 %v4862_v26, %v4553_v29  ;;  %v4846_v29 = vld [vmem:[#allocation8 + $0x2f4] sm:$0xf0] }
 0x212   :  { %v1830_v13 = vmax.f32 %v1432_v33, 0.0  ;;  %v4425_v33 = vld [vmem:[#allocation8 + $0x270] sm:$0xf] }
 0x213   :  { %v1480_v15 = vpop.f32.mrf.mxu2  ;;  %v4426_v6 = vor.u32 %v4830_v32, %v4425_v33  ;;  %3024 = vmatpush.bf16.msrb.mxu2 %v4554_v27 }
 0x214   :  { %v5420_v14 = vpack.c.bf16 %v1830_v13, %v1822_v30  ;;  %v1481_v9 = vadd.f32 %v1480_v15, %v5353_v10  ;;  %v4878_v15 = vld [vmem:[#allocation8 + $0x3f4] sm:$0xf0] }
 0x215   :  { %v1529_v7 = vpop.f32.mrf.mxu3  ;;  %v1385_v18 = vpop.f32.mrf.mxu0  ;;  %2926 = vmatpush.bf16.msrb.mxu0 %v4426_v6 }
 0x216   :  { %v1386_v58 = vadd.f32 %v1385_v18, %v5343_v43  ;;  %v1530_v52 = vadd.f32 %v1529_v7, %v1481_v9  ;;  %v4618_v18 = vor.u32 %v4878_v15, %v4617_v3 }
 0x217   :  { %v1434_v53 = vpop.f32.mrf.mxu1 }
 0x218   :  { %v1435_v44 = vadd.f32 %v1434_v53, %v1386_v58  ;;  %1580 = vmatmul.bf16.gmra.mxu0 %v5123_v47  ;;  %v1831_v41 = vmax.f32 %v1530_v52, 0.0  ;;  %1678 = vmatmul.bf16.gmra.mxu2 %v5123_v47  ;;  %v4489_v52 = vld [vmem:[#allocation8 + $0x2f0] sm:$0xf] }
 0x219   :  { %3073 = vmatpush.bf16.msrb.mxu3 %v4618_v18  ;;  %v4490_v26 = vor.u32 %v4846_v29, %v4489_v52 }
 0x21a   :  { %1629 = vmatmul.bf16.gmra.mxu1 %v5125_v48  ;;  %1727 = vmatmul.bf16.gmra.mxu3 %v5125_v48  ;;  %v5428_v30 = vpack.c.bf16 %v1831_v41, %v1823_v62  ;;  %v1838_v62 = vmax.f32 %v1435_v44, 0.0  ;;  %v4545_v44 = vld [vmem:[#allocation8 + $0x360] sm:$0xf] }
 0x21b   :  { %v1483_v13 = vpop.f32.mrf.mxu2  ;;  %2975 = vmatpush.bf16.msrb.mxu1 %v4490_v26  ;;  %v4876_v26 = vld [vmem:[#allocation8 + $0x3e4] sm:$0xf0] }
 0x21c   :  { %v1484_v28 = vadd.f32 %v1483_v13, %v5353_v10 }
 0x21d   :  { %v1532_v9 = vpop.f32.mrf.mxu3  ;;  %v1387_v7 = vpop.f32.mrf.mxu0 }
 0x21e   :  { %v1388_v47 = vadd.f32 %v1387_v7, %v5343_v43  ;;  %v1533_v58 = vadd.f32 %v1532_v9, %v1484_v28 }
 0x21f   :  { %v1436_v48 = vpop.f32.mrf.mxu1 }
 0x220   :  { %v1437_v53 = vadd.f32 %v1436_v48, %v1388_v47  ;;  %v1839_v9 = vmax.f32 %v1533_v58, 0.0  ;;  %v4860_v47 = vld [vmem:[#allocation8 + $0x364] sm:$0xf0]  ;;  %v4417_v48 = vld [vmem:[#allocation8 + $0x260] sm:$0xf] }
 0x221   :  { %v4546_v29 = vor.u32 %v4860_v47, %v4545_v44  ;;  %v5445_v47 = vperm.slane %v5340_v60, 6 }
 0x222   :  { %v1846_v41 = vmax.f32 %v1437_v53, 0.0 }
 0x223   :  { %v1485_v33 = vpop.f32.mrf.mxu2  ;;  %3025 = vmatpush.bf16.msrb.mxu2 %v4546_v29 }
 0x224   :  { %v5432_v32 = vpack.c.bf16 %v1846_v41, %v1838_v62  ;;  %v1486_v13 = vadd.f32 %v1485_v33, %v5353_v10  ;;  %v4828_v62 = vld [vmem:[#allocation8 + $0x264] sm:$0xf0]  ;;  %v4609_v41 = vld [vmem:[#allocation8 + $0x3e0] sm:$0xf] }
 0x225   :  { %v1534_v27 = vpop.f32.mrf.mxu3  ;;  %v1390_v3 = vpop.f32.mrf.mxu0 }
 0x226   :  { %5855 = vst [vmem:[#allocation35_spill] sm:$0xff] %v5432_v32  ;;  %v1391_v15 = vadd.f32 %v1390_v3, %v5343_v43  ;;  %v1535_v6 = vadd.f32 %v1534_v27, %v1486_v13  ;;  %v4418_v27 = vor.u32 %v4828_v62, %v4417_v48  ;;  %v4610_v3 = vor.u32 %v4876_v26, %v4609_v41 }
 0x227   :  { %v1439_v7 = vpop.f32.mrf.mxu1 }
 0x228   :  { %v1440_v28 = vadd.f32 %v1439_v7, %v1391_v15  ;;  %1585 = vmatmul.bf16.gmra.mxu0 %v5131_v4  ;;  %v1847_v18 = vmax.f32 %v1535_v6, 0.0  ;;  %1683 = vmatmul.bf16.gmra.mxu2 %v5131_v4  ;;  %v4481_v6 = vld [vmem:[#allocation8 + $0x2e0] sm:$0xf] }
 0x229   :  { %2927 = vmatpush.bf16.msrb.mxu0 %v4418_v27  ;;  %3074 = vmatpush.bf16.msrb.mxu3 %v4610_v3  ;;  %v5455_v27 = vperm.slane %v5340_v60, 7 }
 0x22a   :  { %1634 = vmatmul.bf16.gmra.mxu1 %v5133_v5  ;;  %1732 = vmatmul.bf16.gmra.mxu3 %v5133_v5  ;;  %v5440_v53 = vpack.c.bf16 %v1847_v18, %v1839_v9  ;;  %v4844_v9 = vld [vmem:[#allocation8 + $0x2e4] sm:$0xf0]  ;;  %v1854_v18 = vmax.f32 %v1440_v28, 0.0 }
 0x22b   :  { %v1488_v52 = vpop.f32.mrf.mxu2 }
 0x22c   :  { %5856 = vst [vmem:[#allocation36_spill] sm:$0xff] %v5440_v53  ;;  %v1489_v33 = vadd.f32 %v1488_v52, %v5353_v10  ;;  %v4482_v52 = vor.u32 %v4844_v9, %v4481_v6 }
 0x22d   :  { %v1537_v58 = vpop.f32.mrf.mxu3  ;;  %v1392_v13 = vpop.f32.mrf.mxu0 }
 0x22e   :  { %v1393_v4 = vadd.f32 %v1392_v13, %v5343_v43  ;;  %v1538_v5 = vadd.f32 %v1537_v58, %v1489_v33  ;;  %2976 = vmatpush.bf16.msrb.mxu1 %v4482_v52 }
 0x22f   :  { %v1441_v15 = vpop.f32.mrf.mxu1 }
 0x230   :  { %v1442_v7 = vadd.f32 %v1441_v15, %v1393_v4  ;;  %v1855_v28 = vmax.f32 %v1538_v5, 0.0  ;;  %v4409_v4 = vld [vmem:[#allocation8 + $0x250] sm:$0xf]  ;;  %v4826_v15 = vld [vmem:[#allocation8 + $0x254] sm:$0xf0] }
 0x231   :  { %v4410_v5 = vor.u32 %v4826_v15, %v4409_v4 }
 0x232   :  { %v1862_v44 = vmax.f32 %v1442_v7, 0.0  ;;  %v4601_v7 = vld [vmem:[#allocation8 + $0x3d0] sm:$0xf] }
 0x233   :  { %v1490_v53 = vpop.f32.mrf.mxu2  ;;  %2928 = vmatpush.bf16.msrb.mxu0 %v4410_v5 }
 0x234   :  { %v5447_v48 = vpack.c.bf16 %v1862_v44, %v1854_v18  ;;  %v1491_v43 = vadd.f32 %v1490_v53, %v5353_v10  ;;  %v4537_v10 = vld [vmem:[#allocation8 + $0x350] sm:$0xf]  ;;  %v4858_v53 = vld [vmem:[#allocation8 + $0x354] sm:$0xf0] }
 0x235   :  { %v1539_v62 = vpop.f32.mrf.mxu3  ;;  %v1551_v29 = vpop.f32.mrf.mxu0  ;;  %v4538_v3 = vor.u32 %v4858_v53, %v4537_v10  ;;  %v4874_v18 = vld [vmem:[#allocation8 + $0x3d4] sm:$0xf0] }
 0x236   :  { %v1552_v41 = vadd.f32 %v1551_v29, %v5445_v47  ;;  %v1540_v33 = vadd.f32 %v1539_v62, %v1491_v43  ;;  %v4602_v60 = vor.u32 %v4874_v18, %v4601_v7  ;;  %v4842_v10 = vld [vmem:[#allocation8 + $0x2d4] sm:$0xf0] }
 0x237   :  { %v1600_v26 = vpop.f32.mrf.mxu1  ;;  %3026 = vmatpush.bf16.msrb.mxu2 %v4538_v3 }
 0x238   :  { %v1601_v58 = vadd.f32 %v1600_v26, %v1552_v41  ;;  %2738 = vmatmul.bf16.vlgmr.msra.gmra.mxu0 %v5154_v61  ;;  %v1863_v13 = vmax.f32 %v1540_v33, 0.0  ;;  %2836 = vmatmul.bf16.vlgmr.msra.gmra.mxu2 %v5256_v20  ;;  %v4473_v33 = vld [vmem:[#allocation8 + $0x2d0] sm:$0xf] }
 0x239   :  { %3075 = vmatpush.bf16.msrb.mxu3 %v4602_v60  ;;  %v4474_v53 = vor.u32 %v4842_v10, %v4473_v33  ;;  %v4401_v33 = vld [vmem:[#allocation8 + $0x240] sm:$0xf]  ;;  %v4824_v10 = vld [vmem:[#allocation8 + $0x244] sm:$0xf0] }
 0x23a   :  { %2787 = vmatmul.bf16.vlgmr.msra.gmra.mxu1 %v5162_v16  ;;  %2885 = vmatmul.bf16.vlgmr.msra.gmra.mxu3 %v5264_v45  ;;  %v5458_v6 = vpack.c.bf16 %v1863_v13, %v1855_v28  ;;  %v1744_v28 = vmax.f32 %v1601_v58, 0.0  ;;  %v4529_v58 = vld [vmem:[#allocation8 + $0x340] sm:$0xf] }
 0x23b   :  { %v1649_v9 = vpop.f32.mrf.mxu2  ;;  %2977 = vmatpush.bf16.msrb.mxu1 %v4474_v53  ;;  %v4402_v53 = vor.u32 %v4824_v10, %v4401_v33 }
 0x23c   :  { %v1650_v44 = vadd.f32 %v1649_v9, %v5455_v27 }
 0x23d   :  { %v1698_v52 = vpop.f32.mrf.mxu3  ;;  %v1553_v43 = vpop.f32.mrf.mxu0  ;;  %2929 = vmatpush.bf16.msrb.mxu0 %v4402_v53 }
 0x23e   :  { %v1554_v62 = vadd.f32 %v1553_v43, %v5445_v47  ;;  %v1699_v41 = vadd.f32 %v1698_v52, %v1650_v44 }
 0x23f   :  { %v1602_v29 = vpop.f32.mrf.mxu1 }
 0x240   :  { %v1603_v26 = vadd.f32 %v1602_v29, %v1554_v62  ;;  %v1745_v52 = vmax.f32 %v1699_v41, 0.0  ;;  %v4856_v62 = vld [vmem:[#allocation8 + $0x344] sm:$0xf0] }
 0x242   :  { %v1752_v13 = vmax.f32 %v1603_v26, 0.0  ;;  %v4530_v26 = vor.u32 %v4856_v62, %v4529_v58  ;;  %v4840_v58 = vld [vmem:[#allocation8 + $0x2c4] sm:$0xf0] }
 0x243   :  { %v1651_v15 = vpop.f32.mrf.mxu2 }
 0x244   :  { %v5462_v4 = vpack.c.bf16 %v1752_v13, %v1744_v28  ;;  %v1652_v9 = vadd.f32 %v1651_v15, %v5455_v27  ;;  %v4593_v28 = vld [vmem:[#allocation8 + $0x3c0] sm:$0xf]  ;;  %v4872_v15 = vld [vmem:[#allocation8 + $0x3c4] sm:$0xf0]  ;;  %3027 = vmatpush.bf16.msrb.mxu2 %v4530_v26 }
 0x245   :  { %v1700_v3 = vpop.f32.mrf.mxu3  ;;  %v1556_v7 = vpop.f32.mrf.mxu0 }
 0x246   :  { %v1557_v18 = vadd.f32 %v1556_v7, %v5445_v47  ;;  %v1701_v5 = vadd.f32 %v1700_v3, %v1652_v9  ;;  %v4594_v7 = vor.u32 %v4872_v15, %v4593_v28 }
 0x247   :  { %v1605_v43 = vpop.f32.mrf.mxu1 }
 0x248   :  { %v1606_v44 = vadd.f32 %v1605_v43, %v1557_v18  ;;  %2743 = vmatmul.bf16.gmra.mxu0 %v5166_v46  ;;  %v1753_v60 = vmax.f32 %v1701_v5, 0.0  ;;  %2841 = vmatmul.bf16.gmra.mxu2 %v5268_v34 }
 0x249   :  { %3076 = vmatpush.bf16.msrb.mxu3 %v4594_v7 }
 0x24a   :  { %2792 = vmatmul.bf16.gmra.mxu1 %v5174_v8  ;;  %2890 = vmatmul.bf16.gmra.mxu3 %v5276_v0  ;;  %v5470_v29 = vpack.c.bf16 %v1753_v60, %v1745_v52  ;;  %v4465_v60 = vld [vmem:[#allocation8 + $0x2c0] sm:$0xf]  ;;  %v1760_v62 = vmax.f32 %v1606_v44, 0.0 }
 0x24b   :  { %v1654_v13 = vpop.f32.mrf.mxu2  ;;  %v4466_v34 = vor.u32 %v4840_v58, %v4465_v60 }
 0x24c   :  { %5857 = vst [vmem:[#allocation37_spill] sm:$0xff] %v5470_v29  ;;  %v1655_v41 = vadd.f32 %v1654_v13, %v5455_v27 }
 0x24d   :  { %v1703_v9 = vpop.f32.mrf.mxu3  ;;  %v1558_v3 = vpop.f32.mrf.mxu0  ;;  %2978 = vmatpush.bf16.msrb.mxu1 %v4466_v34  ;;  %v4521_v34 = vld [vmem:[#allocation8 + $0x330] sm:$0xf] }
 0x24e   :  { %v1559_v18 = vadd.f32 %v1558_v3, %v5445_v47  ;;  %v1704_v5 = vadd.f32 %v1703_v9, %v1655_v41 }
 0x24f   :  { %v1607_v43 = vpop.f32.mrf.mxu1 }
 0x250   :  { %v1608_v52 = vadd.f32 %v1607_v43, %v1559_v18  ;;  %v1761_v9 = vmax.f32 %v1704_v5, 0.0  ;;  %v4393_v18 = vld [vmem:[#allocation8 + $0x230] sm:$0xf]  ;;  %v4822_v43 = vld [vmem:[#allocation8 + $0x234] sm:$0xf0] }
 0x252   :  { %v1768_v0 = vmax.f32 %v1608_v52, 0.0  ;;  %v4585_v52 = vld [vmem:[#allocation8 + $0x3b0] sm:$0xf] }
 0x253   :  { %v1656_v33 = vpop.f32.mrf.mxu2 }
 0x254   :  { %v5474_v10 = vpack.c.bf16 %v1768_v0, %v1760_v62  ;;  %v1657_v13 = vadd.f32 %v1656_v33, %v5455_v27  ;;  %v4854_v0 = vld [vmem:[#allocation8 + $0x334] sm:$0xf0]  ;;  %v4394_v62 = vor.u32 %v4822_v43, %v4393_v18 }
 0x255   :  { %v1705_v26 = vpop.f32.mrf.mxu3  ;;  %v1561_v28 = vpop.f32.mrf.mxu0  ;;  %v4522_v44 = vor.u32 %v4854_v0, %v4521_v34  ;;  %v4870_v33 = vld [vmem:[#allocation8 + $0x3b4] sm:$0xf0]  ;;  %v4457_v0 = vld [vmem:[#allocation8 + $0x2b0] sm:$0xf] }
 0x256   :  { %5858 = vst [vmem:[#allocation38_spill] sm:$0xff] %v5474_v10  ;;  %v1562_v15 = vadd.f32 %v1561_v28, %v5445_v47  ;;  %v1706_v53 = vadd.f32 %v1705_v26, %v1657_v13  ;;  %v4586_v28 = vor.u32 %v4870_v33, %v4585_v52  ;;  %2930 = vmatpush.bf16.msrb.mxu0 %v4394_v62 }
 0x257   :  { %v1610_v3 = vpop.f32.mrf.mxu1  ;;  %3028 = vmatpush.bf16.msrb.mxu2 %v4522_v44 }
 0x258   :  { %v1611_v41 = vadd.f32 %v1610_v3, %v1562_v15  ;;  %2748 = vmatmul.bf16.gmra.mxu0 %v5178_v36  ;;  %v1769_v7 = vmax.f32 %v1706_v53, 0.0  ;;  %2846 = vmatmul.bf16.gmra.mxu2 %v5280_v56 }
 0x259   :  { %3077 = vmatpush.bf16.msrb.mxu3 %v4586_v28 }
 0x25a   :  { %2797 = vmatmul.bf16.gmra.mxu1 %v5186_v59  ;;  %2895 = vmatmul.bf16.gmra.mxu3 %v5288_v23  ;;  %v5482_v60 = vpack.c.bf16 %v1769_v7, %v1761_v9  ;;  %v4838_v23 = vld [vmem:[#allocation8 + $0x2b4] sm:$0xf0]  ;;  %v1776_v9 = vmax.f32 %v1611_v41, 0.0 }
 0x25b   :  { %v1659_v58 = vpop.f32.mrf.mxu2  ;;  %v4458_v56 = vor.u32 %v4838_v23, %v4457_v0  ;;  %v4852_v23 = vld [vmem:[#allocation8 + $0x324] sm:$0xf0] }
 0x25c   :  { %5859 = vst [vmem:[#allocation39_spill] sm:$0xff] %v5482_v60  ;;  %v1660_v5 = vadd.f32 %v1659_v58, %v5455_v27 }
 0x25d   :  { %v1708_v13 = vpop.f32.mrf.mxu3  ;;  %v1563_v26 = vpop.f32.mrf.mxu0  ;;  %2979 = vmatpush.bf16.msrb.mxu1 %v4458_v56  ;;  %v4513_v56 = vld [vmem:[#allocation8 + $0x320] sm:$0xf] }
 0x25e   :  { %v1564_v15 = vadd.f32 %v1563_v26, %v5445_v47  ;;  %v1709_v53 = vadd.f32 %v1708_v13, %v1660_v5  ;;  %v4514_v41 = vor.u32 %v4852_v23, %v4513_v56  ;;  %v4449_v23 = vld [vmem:[#allocation8 + $0x2a0] sm:$0xf] }
 0x25f   :  { %v1612_v3 = vpop.f32.mrf.mxu1 }
 0x260   :  { %v1613_v34 = vadd.f32 %v1612_v3, %v1564_v15  ;;  %v1777_v13 = vmax.f32 %v1709_v53, 0.0  ;;  %v4385_v15 = vld [vmem:[#allocation8 + $0x220] sm:$0xf]  ;;  %v4820_v3 = vld [vmem:[#allocation8 + $0x224] sm:$0xf0]  ;;  %3029 = vmatpush.bf16.msrb.mxu2 %v4514_v41 }
 0x262   :  { %v1784_v7 = vmax.f32 %v1613_v34, 0.0  ;;  %v4577_v34 = vld [vmem:[#allocation8 + $0x3a0] sm:$0xf] }
 0x263   :  { %v1661_v18 = vpop.f32.mrf.mxu2 }
 0x264   :  { %v5486_v43 = vpack.c.bf16 %v1784_v7, %v1776_v9  ;;  %v1662_v58 = vadd.f32 %v1661_v18, %v5455_v27  ;;  %v4386_v7 = vor.u32 %v4820_v3, %v4385_v15  ;;  %v4868_v18 = vld [vmem:[#allocation8 + $0x3a4] sm:$0xf0] }
 0x265   :  { %v1710_v44 = vpop.f32.mrf.mxu3  ;;  %v1566_v52 = vpop.f32.mrf.mxu0 }
 0x266   :  { %5860 = vst [vmem:[#allocation40_spill] sm:$0xff] %v5486_v43  ;;  %v1567_v33 = vadd.f32 %v1566_v52, %v5445_v47  ;;  %v1711_v62 = vadd.f32 %v1710_v44, %v1662_v58  ;;  %v4578_v52 = vor.u32 %v4868_v18, %v4577_v34  ;;  %2931 = vmatpush.bf16.msrb.mxu0 %v4386_v7 }
 0x267   :  { %v1615_v26 = vpop.f32.mrf.mxu1 }
 0x268   :  { %v1616_v5 = vadd.f32 %v1615_v26, %v1567_v33  ;;  %2753 = vmatmul.bf16.gmra.mxu0 %v5190_v24  ;;  %v1785_v28 = vmax.f32 %v1711_v62, 0.0  ;;  %2851 = vmatmul.bf16.gmra.mxu2 %v5292_v55 }
 0x269   :  { %3078 = vmatpush.bf16.msrb.mxu3 %v4578_v52 }
 0x26a   :  { %2802 = vmatmul.bf16.gmra.mxu1 %v5198_v51  ;;  %2900 = vmatmul.bf16.gmra.mxu3 %v5300_v38  ;;  %v5494_v0 = vpack.c.bf16 %v1785_v28, %v1777_v13  ;;  %v4836_v38 = vld [vmem:[#allocation8 + $0x2a4] sm:$0xf0]  ;;  %v1792_v13 = vmax.f32 %v1616_v5, 0.0 }
 0x26b   :  { %v1664_v9 = vpop.f32.mrf.mxu2  ;;  %v4450_v55 = vor.u32 %v4836_v38, %v4449_v23  ;;  %v4850_v38 = vld [vmem:[#allocation8 + $0x314] sm:$0xf0] }
 0x26c   :  { %5861 = vst [vmem:[#allocation41_spill] sm:$0xff] %v5494_v0  ;;  %v1665_v53 = vadd.f32 %v1664_v9, %v5455_v27 }
 0x26d   :  { %v1713_v58 = vpop.f32.mrf.mxu3  ;;  %v1568_v44 = vpop.f32.mrf.mxu0  ;;  %2980 = vmatpush.bf16.msrb.mxu1 %v4450_v55  ;;  %v4505_v55 = vld [vmem:[#allocation8 + $0x310] sm:$0xf] }
 0x26e   :  { %v1569_v33 = vadd.f32 %v1568_v44, %v5445_v47  ;;  %v1714_v62 = vadd.f32 %v1713_v58, %v1665_v53  ;;  %v4506_v5 = vor.u32 %v4850_v38, %v4505_v55  ;;  %v4441_v38 = vld [vmem:[#allocation8 + $0x290] sm:$0xf] }
 0x26f   :  { %v1617_v26 = vpop.f32.mrf.mxu1 }
 0x270   :  { %v1618_v56 = vadd.f32 %v1617_v26, %v1569_v33  ;;  %v1793_v58 = vmax.f32 %v1714_v62, 0.0  ;;  %v4377_v33 = vld [vmem:[#allocation8 + $0x210] sm:$0xf]  ;;  %v4818_v26 = vld [vmem:[#allocation8 + $0x214] sm:$0xf0]  ;;  %3030 = vmatpush.bf16.msrb.mxu2 %v4506_v5 }
 0x272   :  { %v1800_v28 = vmax.f32 %v1618_v56, 0.0  ;;  %v4569_v56 = vld [vmem:[#allocation8 + $0x390] sm:$0xf] }
 0x273   :  { %v1666_v15 = vpop.f32.mrf.mxu2 }
 0x274   :  { %v5498_v3 = vpack.c.bf16 %v1800_v28, %v1792_v13  ;;  %v1667_v9 = vadd.f32 %v1666_v15, %v5455_v27  ;;  %v4378_v28 = vor.u32 %v4818_v26, %v4377_v33  ;;  %v4866_v15 = vld [vmem:[#allocation8 + $0x394] sm:$0xf0] }
 0x275   :  { %v1715_v41 = vpop.f32.mrf.mxu3  ;;  %v1571_v34 = vpop.f32.mrf.mxu0 }
 0x276   :  { %5862 = vst [vmem:[#allocation42_spill] sm:$0xff] %v5498_v3  ;;  %v1572_v18 = vadd.f32 %v1571_v34, %v5445_v47  ;;  %v1716_v7 = vadd.f32 %v1715_v41, %v1667_v9  ;;  %v4570_v34 = vor.u32 %v4866_v15, %v4569_v56  ;;  %2932 = vmatpush.bf16.msrb.mxu0 %v4378_v28 }
 0x277   :  { %v1620_v44 = vpop.f32.mrf.mxu1 }
 0x278   :  { %v1621_v53 = vadd.f32 %v1620_v44, %v1572_v18  ;;  %2758 = vmatmul.bf16.gmra.mxu0 %v5202_v17  ;;  %v1801_v52 = vmax.f32 %v1716_v7, 0.0  ;;  %2856 = vmatmul.bf16.gmra.mxu2 %v5304_v25 }
 0x279   :  { %3079 = vmatpush.bf16.msrb.mxu3 %v4570_v34 }
 0x27a   :  { %2807 = vmatmul.bf16.gmra.mxu1 %v5210_v42  ;;  %2905 = vmatmul.bf16.gmra.mxu3 %v5312_v31  ;;  %v5506_v23 = vpack.c.bf16 %v1801_v52, %v1793_v58  ;;  %v4834_v31 = vld [vmem:[#allocation8 + $0x294] sm:$0xf0]  ;;  %v1808_v58 = vmax.f32 %v1621_v53, 0.0 }
 0x27b   :  { %v1669_v13 = vpop.f32.mrf.mxu2  ;;  %v4442_v25 = vor.u32 %v4834_v31, %v4441_v38  ;;  %v4848_v31 = vld [vmem:[#allocation8 + $0x304] sm:$0xf0] }
 0x27c   :  { %5863 = vst [vmem:[#allocation43_spill] sm:$0xff] %v5506_v23  ;;  %v1670_v62 = vadd.f32 %v1669_v13, %v5455_v27 }
 0x27d   :  { %v1718_v9 = vpop.f32.mrf.mxu3  ;;  %v1573_v41 = vpop.f32.mrf.mxu0  ;;  %2981 = vmatpush.bf16.msrb.mxu1 %v4442_v25  ;;  %v4497_v25 = vld [vmem:[#allocation8 + $0x300] sm:$0xf] }
 0x27e   :  { %v1574_v18 = vadd.f32 %v1573_v41, %v5445_v47  ;;  %v1719_v7 = vadd.f32 %v1718_v9, %v1670_v62  ;;  %v4498_v53 = vor.u32 %v4848_v31, %v4497_v25  ;;  %v4433_v31 = vld [vmem:[#allocation8 + $0x280] sm:$0xf] }
 0x27f   :  { %v1622_v44 = vpop.f32.mrf.mxu1 }
 0x280   :  { %v1623_v55 = vadd.f32 %v1622_v44, %v1574_v18  ;;  %v1809_v9 = vmax.f32 %v1719_v7, 0.0  ;;  %v4369_v18 = vld [vmem:[#allocation8 + $0x200] sm:$0xf]  ;;  %v4816_v44 = vld [vmem:[#allocation8 + $0x204] sm:$0xf0]  ;;  %3031 = vmatpush.bf16.msrb.mxu2 %v4498_v53 }
 0x282   :  { %v1816_v52 = vmax.f32 %v1623_v55, 0.0  ;;  %v4561_v55 = vld [vmem:[#allocation8 + $0x380] sm:$0xf] }
 0x283   :  { %v1671_v33 = vpop.f32.mrf.mxu2 }
 0x284   :  { %v5510_v26 = vpack.c.bf16 %v1816_v52, %v1808_v58  ;;  %v1672_v13 = vadd.f32 %v1671_v33, %v5455_v27  ;;  %v4370_v52 = vor.u32 %v4816_v44, %v4369_v18  ;;  %v4864_v33 = vld [vmem:[#allocation8 + $0x384] sm:$0xf0] }
 0x285   :  { %v1720_v5 = vpop.f32.mrf.mxu3  ;;  %v1576_v56 = vpop.f32.mrf.mxu0 }
 0x286   :  { %5864 = vst [vmem:[#allocation44_spill] sm:$0xff] %v5510_v26  ;;  %v1577_v15 = vadd.f32 %v1576_v56, %v5445_v47  ;;  %v1721_v28 = vadd.f32 %v1720_v5, %v1672_v13  ;;  %v4562_v56 = vor.u32 %v4864_v33, %v4561_v55  ;;  %2933 = vmatpush.bf16.msrb.mxu0 %v4370_v52 }
 0x287   :  { %v1625_v41 = vpop.f32.mrf.mxu1 }
 0x288   :  { %v1626_v62 = vadd.f32 %v1625_v41, %v1577_v15  ;;  %2763 = vmatmul.bf16.gmra.mxu0 %v5214_v11  ;;  %v1817_v34 = vmax.f32 %v1721_v28, 0.0  ;;  %2861 = vmatmul.bf16.gmra.mxu2 %v5316_v22 }
 0x289   :  { %3080 = vmatpush.bf16.msrb.mxu3 %v4562_v56 }
 0x28a   :  { %2812 = vmatmul.bf16.gmra.mxu1 %v5222_v40  ;;  %2910 = vmatmul.bf16.gmra.mxu3 %v5324_v2  ;;  %v5518_v38 = vpack.c.bf16 %v1817_v34, %v1809_v9  ;;  %v4832_v2 = vld [vmem:[#allocation8 + $0x284] sm:$0xf0]  ;;  %v1824_v9 = vmax.f32 %v1626_v62, 0.0  ;;  %v5868_v62 = vld [vmem:[#allocation18_spill] sm:$0xff] }
 0x28b   :  { %v1674_v58 = vpop.f32.mrf.mxu2  ;;  %v4434_v22 = vor.u32 %v4832_v2, %v4433_v31  ;;  %v5869_v2 = vld [vmem:[#allocation31_spill] sm:$0xff] }
 0x28c   :  { %5865 = vst [vmem:[#allocation45_spill] sm:$0xff] %v5518_v38  ;;  %v1675_v7 = vadd.f32 %v1674_v58, %v5455_v27 }
 0x28d   :  { %v1723_v13 = vpop.f32.mrf.mxu3  ;;  %v1578_v5 = vpop.f32.mrf.mxu0  ;;  %2982 = vmatpush.bf16.msrb.mxu1 %v4434_v22  ;;  %v5870_v22 = vld [vmem:[#allocation32_spill] sm:$0xff] }
 0x28e   :  { %v1579_v15 = vadd.f32 %v1578_v5, %v5445_v47  ;;  %v1724_v28 = vadd.f32 %v1723_v13, %v1675_v7  ;;  %v5867_v13 = vld [vmem:[#allocation17_spill] sm:$0xff] }
 0x28f   :  { %v1627_v41 = vpop.f32.mrf.mxu1 }
 0x290   :  { %v1628_v25 = vadd.f32 %v1627_v41, %v1579_v15  ;;  %v1825_v56 = vmax.f32 %v1724_v28, 0.0  ;;  %v4797_v41 = vld [vmem:[#allocation8 + $0x174] sm:$0xf] }
 0x292   :  { %v1832_v34 = vmax.f32 %v1628_v25, 0.0  ;;  %v4299_v25 = vld [vmem:[#allocation8 + $0x178] sm:$0xf0] }
 0x293   :  { %v1676_v18 = vpop.f32.mrf.mxu2  ;;  %v4302_v31 = vor.u32 %v4797_v41, %v4299_v25  ;;  %v4781_v41 = vld [vmem:[#allocation8 + $0xf4] sm:$0xf]  ;;  %v4235_v25 = vld [vmem:[#allocation8 + $0xf8] sm:$0xf0] }
 0x294   :  { %v5522_v44 = vpack.c.bf16 %v1832_v34, %v1824_v9  ;;  %v1677_v58 = vadd.f32 %v1676_v18, %v5455_v27  ;;  %v4765_v9 = vld [vmem:[#allocation8 + $0x74] sm:$0xf]  ;;  %v4171_v34 = vld [vmem:[#allocation8 + $0x78] sm:$0xf0] }
 0x295   :  { %v1725_v53 = vpop.f32.mrf.mxu3  ;;  %v1581_v55 = vpop.f32.mrf.mxu0  ;;  %v4813_v18 = vld [vmem:[#allocation8 + $0x1f4] sm:$0xf]  ;;  %3220 = vmatpush.bf16.msra.mxu2 %v4302_v31 }
 0x296   :  { %5866 = vst [vmem:[#allocation46_spill] sm:$0xff] %v5522_v44  ;;  %v1582_v33 = vadd.f32 %v1581_v55, %v5445_v47  ;;  %v1726_v52 = vadd.f32 %v1725_v53, %v1677_v58  ;;  %v4174_v53 = vor.u32 %v4765_v9, %v4171_v34 }
 0x297   :  { %v1630_v5 = vpop.f32.mrf.mxu1 }
 0x298   :  { %v1631_v7 = vadd.f32 %v1630_v5, %v1582_v33  ;;  %2768 = vmatmul.bf16.gmra.mxu0 %v5867_v13  ;;  %v1833_v15 = vmax.f32 %v1726_v52, 0.0  ;;  %2866 = vmatmul.bf16.gmra.mxu2 %v5869_v2  ;;  %v4363_v33 = vld [vmem:[#allocation8 + $0x1f8] sm:$0xf0] }
 0x299   :  { %3122 = vmatpush.bf16.msra.mxu0 %v4174_v53 }
 0x29a   :  { %2817 = vmatmul.bf16.gmra.mxu1 %v5868_v62  ;;  %2915 = vmatmul.bf16.gmra.mxu3 %v5870_v22  ;;  %v5530_v55 = vpack.c.bf16 %v1833_v15, %v1825_v56  ;;  %v4366_v62 = vor.u32 %v4813_v18, %v4363_v33  ;;  %v4238_v56 = vor.u32 %v4781_v41, %v4235_v25  ;;  %v1840_v15 = vmax.f32 %v1631_v7, 0.0  ;;  %v4763_v41 = vld [vmem:[#allocation8 + $0x64] sm:$0xf]  ;;  %v4163_v25 = vld [vmem:[#allocation8 + $0x68] sm:$0xf0] }
 0x29b   :  { %v1679_v58 = vpop.f32.mrf.mxu2 }
 0x29c   :  { %5871 = vst [vmem:[#allocation47_spill] sm:$0xff] %v5530_v55  ;;  %v1680_v28 = vadd.f32 %v1679_v58, %v5455_v27  ;;  %3269 = vmatpush.bf16.msra.mxu3 %v4366_v62  ;;  %3171 = vmatpush.bf16.msra.mxu1 %v4238_v56  ;;  %v5873_v62 = vld [vmem:[#allocation19_spill] sm:$0xff] }
 0x29d   :  { %v1728_v5 = vpop.f32.mrf.mxu3  ;;  %v1583_v52 = vpop.f32.mrf.mxu0  ;;  %v4811_v56 = vld [vmem:[#allocation8 + $0x1e4] sm:$0xf] }
 0x29e   :  { %v1584_v2 = vadd.f32 %v1583_v52, %v5445_v47  ;;  %v1729_v13 = vadd.f32 %v1728_v5, %v1680_v28 }
 0x29f   :  { %v1632_v22 = vpop.f32.mrf.mxu1 }
 0x2a0   :  { %v1633_v40 = vadd.f32 %v1632_v22, %v1584_v2  ;;  %v1841_v5 = vmax.f32 %v1729_v13, 0.0  ;;  %v5874_v22 = vld [vmem:[#allocation20_spill] sm:$0xff] }
 0x2a2   :  { %v1848_v11 = vmax.f32 %v1633_v40, 0.0  ;;  %v4291_v40 = vld [vmem:[#allocation8 + $0x168] sm:$0xf0] }
 0x2a3   :  { %v1681_v9 = vpop.f32.mrf.mxu2 }
 0x2a4   :  { %v5534_v34 = vpack.c.bf16 %v1848_v11, %v1840_v15  ;;  %v1682_v58 = vadd.f32 %v1681_v9, %v5455_v27  ;;  %v4795_v11 = vld [vmem:[#allocation8 + $0x164] sm:$0xf] }
 0x2a5   :  { %v1730_v31 = vpop.f32.mrf.mxu3  ;;  %v1586_v18 = vpop.f32.mrf.mxu0  ;;  %v4294_v7 = vor.u32 %v4795_v11, %v4291_v40  ;;  %v4779_v11 = vld [vmem:[#allocation8 + $0xe4] sm:$0xf]  ;;  %v4227_v40 = vld [vmem:[#allocation8 + $0xe8] sm:$0xf0] }
 0x2a6   :  { %5872 = vst [vmem:[#allocation48_spill] sm:$0xff] %v5534_v34  ;;  %v1587_v33 = vadd.f32 %v1586_v18, %v5445_v47  ;;  %v1731_v53 = vadd.f32 %v1730_v31, %v1682_v58  ;;  %v4166_v58 = vor.u32 %v4763_v41, %v4163_v25  ;;  %v4355_v31 = vld [vmem:[#allocation8 + $0x1e8] sm:$0xf0] }
 0x2a7   :  { %v1635_v52 = vpop.f32.mrf.mxu1  ;;  %3221 = vmatpush.bf16.msra.mxu2 %v4294_v7 }
 0x2a8   :  { %v1636_v28 = vadd.f32 %v1635_v52, %v1587_v33  ;;  %2773 = vmatmul.bf16.gmra.mxu0 %v5873_v62  ;;  %v1849_v2 = vmax.f32 %v1731_v53, 0.0  ;;  %2871 = vmatmul.bf16.gmra.mxu2 %v5345_v57  ;;  %v4358_v52 = vor.u32 %v4811_v56, %v4355_v31 }
 0x2a9   :  { %3123 = vmatpush.bf16.msra.mxu0 %v4166_v58 }
 0x2aa   :  { %2822 = vmatmul.bf16.gmra.mxu1 %v5874_v22  ;;  %2920 = vmatmul.bf16.gmra.mxu3 %v5356_v21  ;;  %v5542_v15 = vpack.c.bf16 %v1849_v2, %v1841_v5  ;;  %v4230_v5 = vor.u32 %v4779_v11, %v4227_v40  ;;  %v1856_v2 = vmax.f32 %v1636_v28, 0.0  ;;  %v4283_v28 = vld [vmem:[#allocation8 + $0x158] sm:$0xf0] }
 0x2ab   :  { %v1684_v9 = vpop.f32.mrf.mxu2  ;;  %3270 = vmatpush.bf16.msra.mxu3 %v4358_v52  ;;  %v4347_v52 = vld [vmem:[#allocation8 + $0x1d8] sm:$0xf0] }
 0x2ac   :  { %5875 = vst [vmem:[#allocation49_spill] sm:$0xff] %v5542_v15  ;;  %v1685_v13 = vadd.f32 %v1684_v9, %v5455_v27  ;;  %3172 = vmatpush.bf16.msra.mxu1 %v4230_v5 }
 0x2ad   :  { %v1733_v18 = vpop.f32.mrf.mxu3  ;;  %v1588_v33 = vpop.f32.mrf.mxu0 }
 0x2ae   :  { %v1589_v53 = vadd.f32 %v1588_v33, %v5445_v47  ;;  %v1734_v57 = vadd.f32 %v1733_v18, %v1685_v13  ;;  %v4809_v18 = vld [vmem:[#allocation8 + $0x1d4] sm:$0xf] }
 0x2af   :  { %v1637_v21 = vpop.f32.mrf.mxu1  ;;  %v4350_v5 = vor.u32 %v4809_v18, %v4347_v52  ;;  %v4275_v18 = vld [vmem:[#allocation8 + $0x148] sm:$0xf0]  ;;  %v4759_v52 = vld [vmem:[#allocation8 + $0x44] sm:$0xf] }
 0x2b0   :  { %v1638_v22 = vadd.f32 %v1637_v21, %v1589_v53  ;;  %v1857_v58 = vmax.f32 %v1734_v57, 0.0  ;;  %v4793_v21 = vld [vmem:[#allocation8 + $0x154] sm:$0xf] }
 0x2b1   :  { %3271 = vmatpush.bf16.msra.mxu3 %v4350_v5  ;;  %v4807_v5 = vld [vmem:[#allocation8 + $0x1c4] sm:$0xf] }
 0x2b2   :  { %v1864_v62 = vmax.f32 %v1638_v22, 0.0  ;;  %v4286_v22 = vor.u32 %v4793_v21, %v4283_v28 }
 0x2b3   :  { %v1686_v41 = vpop.f32.mrf.mxu2 }
 0x2b4   :  { %v5546_v25 = vpack.c.bf16 %v1864_v62, %v1856_v2  ;;  %v1687_v9 = vadd.f32 %v1686_v41, %v5455_v27  ;;  %v4761_v62 = vld [vmem:[#allocation8 + $0x54] sm:$0xf]  ;;  %v4155_v27 = vld [vmem:[#allocation8 + $0x58] sm:$0xf0]  ;;  %3222 = vmatpush.bf16.msra.mxu2 %v4286_v22  ;;  %v4791_v22 = vld [vmem:[#allocation8 + $0x144] sm:$0xf] }
 0x2b5   :  { %v1735_v7 = vpop.f32.mrf.mxu3  ;;  %v2739_v56 = vpop.f32.mrf.mxu0  ;;  %v4158_v40 = vor.u32 %v4761_v62, %v4155_v27 }
 0x2b6   :  { %5876 = vst [vmem:[#allocation50_spill] sm:$0xff] %v5546_v25  ;;  %v1736_v47 = vadd.f32 %v1735_v7, %v1687_v9 }
 0x2b7   :  { %v2788_v31 = vpop.f32.mrf.mxu1  ;;  %3124 = vmatpush.bf16.msra.mxu0 %v4158_v40  ;;  %v4147_v40 = vld [vmem:[#allocation8 + $0x48] sm:$0xf0] }
 0x2b8   :  { %v2789_v33 = vadd.f32 %v2788_v31, %v2739_v56  ;;  %2934 = vmatmul.bf16.vlgmr.msrb.gmra.mxu0 %v5360_v12  ;;  %v1865_v13 = vmax.f32 %v1736_v47, 0.0  ;;  %3032 = vmatmul.bf16.vlgmr.msrb.gmra.mxu2 %v5462_v4  ;;  %v4777_v31 = vld [vmem:[#allocation8 + $0xd4] sm:$0xf]  ;;  %v4219_v47 = vld [vmem:[#allocation8 + $0xd8] sm:$0xf0] }
 0x2b9   :  { %v4222_v21 = vor.u32 %v4777_v31, %v4219_v47 }
 0x2ba   :  { %2983 = vmatmul.bf16.vlgmr.msrb.gmra.mxu1 %v5368_v49  ;;  %3081 = vmatmul.bf16.vlgmr.msrb.gmra.mxu3 %v5470_v29  ;;  %v5553_v53 = vpack.c.bf16 %v1865_v13, %v1857_v58 }
 0x2bb   :  { %v2837_v11 = vpop.f32.mrf.mxu2  ;;  %3173 = vmatpush.bf16.msra.mxu1 %v4222_v21 }
 0x2bc   :  { %5877 = vst [vmem:[#allocation51_spill] sm:$0xff] %v5553_v53  ;;  %v2838_v57 = vadd.f32 %v2837_v11, %v2789_v33  ;;  %v4278_v11 = vor.u32 %v4791_v22, %v4275_v18 }
 0x2bd   :  { %v2886_v2 = vpop.f32.mrf.mxu3  ;;  %v2741_v41 = vpop.f32.mrf.mxu0 }
 0x2be   :  { %v5555_v7 = vadd.f32 %v2886_v2, %v2838_v57  ;;  %v4339_v57 = vld [vmem:[#allocation8 + $0x1c8] sm:$0xf0]  ;;  %3223 = vmatpush.bf16.msra.mxu2 %v4278_v11  ;;  %v4789_v11 = vld [vmem:[#allocation8 + $0x134] sm:$0xf] }
 0x2bf   :  { %v2790_v9 = vpop.f32.mrf.mxu1 }
 0x2c0   :  { %v2791_v56 = vadd.f32 %v2790_v9, %v2741_v41  ;;  %v4150_v41 = vor.u32 %v4759_v52, %v4147_v40  ;;  %v4342_v9 = vor.u32 %v4807_v5, %v4339_v57  ;;  %v4267_v5 = vld [vmem:[#allocation8 + $0x138] sm:$0xf0]  ;;  %v4757_v57 = vld [vmem:[#allocation8 + $0x34] sm:$0xf] }
 0x2c2   :  { %3125 = vmatpush.bf16.msra.mxu0 %v4150_v41  ;;  %3272 = vmatpush.bf16.msra.mxu3 %v4342_v9  ;;  %v4139_v41 = vld [vmem:[#allocation8 + $0x38] sm:$0xf0]  ;;  %v4805_v9 = vld [vmem:[#allocation8 + $0x1b4] sm:$0xf] }
 0x2c3   :  { %v2839_v28 = vpop.f32.mrf.mxu2 }
 0x2c4   :  { %v2840_v58 = vadd.f32 %v2839_v28, %v2791_v56 }
 0x2c5   :  { %v2888_v13 = vpop.f32.mrf.mxu3  ;;  %v2744_v29 = vpop.f32.mrf.mxu0 }
 0x2c6   :  { %v5557_v27 = vadd.f32 %v2888_v13, %v2840_v58  ;;  %v4775_v58 = vld [vmem:[#allocation8 + $0xc4] sm:$0xf]  ;;  %v4211_v13 = vld [vmem:[#allocation8 + $0xc8] sm:$0xf0] }
 0x2c7   :  { %v2793_v62 = vpop.f32.mrf.mxu1 }
 0x2c8   :  { %v2794_v33 = vadd.f32 %v2793_v62, %v2744_v29  ;;  %2939 = vmatmul.bf16.gmra.mxu0 %v5372_v35  ;;  %3037 = vmatmul.bf16.gmra.mxu2 %v5474_v10  ;;  %v4214_v62 = vor.u32 %v4775_v58, %v4211_v13 }
 0x2ca   :  { %2988 = vmatmul.bf16.gmra.mxu1 %v5380_v50  ;;  %3086 = vmatmul.bf16.gmra.mxu3 %v5482_v60 }
 0x2cb   :  { %v2842_v2 = vpop.f32.mrf.mxu2  ;;  %3174 = vmatpush.bf16.msra.mxu1 %v4214_v62 }
 0x2cc   :  { %v2843_v56 = vadd.f32 %v2842_v2, %v2794_v33  ;;  %v4270_v2 = vor.u32 %v4789_v11, %v4267_v5 }
 0x2cd   :  { %v2891_v29 = vpop.f32.mrf.mxu3  ;;  %v2746_v31 = vpop.f32.mrf.mxu0 }
 0x2ce   :  { %v5563_v21 = vadd.f32 %v2891_v29, %v2843_v56  ;;  %v4331_v56 = vld [vmem:[#allocation8 + $0x1b8] sm:$0xf0]  ;;  %3224 = vmatpush.bf16.msra.mxu2 %v4270_v2  ;;  %v4787_v2 = vld [vmem:[#allocation8 + $0x124] sm:$0xf] }
 0x2cf   :  { %v2795_v47 = vpop.f32.mrf.mxu1 }
 0x2d0   :  { %v2796_v28 = vadd.f32 %v2795_v47, %v2746_v31  ;;  %v4142_v31 = vor.u32 %v4757_v57, %v4139_v41 }
 0x2d2   :  { %3126 = vmatpush.bf16.msra.mxu0 %v4142_v31  ;;  %v4131_v31 = vld [vmem:[#allocation8 + $0x28] sm:$0xf0] }
 0x2d3   :  { %v2844_v22 = vpop.f32.mrf.mxu2 }
 0x2d4   :  { %v2845_v18 = vadd.f32 %v2844_v22, %v2796_v28  ;;  %v4773_v22 = vld [vmem:[#allocation8 + $0xb4] sm:$0xf] }
 0x2d5   :  { %v2893_v60 = vpop.f32.mrf.mxu3  ;;  %v2749_v10 = vpop.f32.mrf.mxu0 }
 0x2d6   :  { %v5565_v40 = vadd.f32 %v2893_v60, %v2845_v18  ;;  %v4334_v60 = vor.u32 %v4805_v9, %v4331_v56  ;;  %v4203_v18 = vld [vmem:[#allocation8 + $0xb8] sm:$0xf0]  ;;  %v4259_v9 = vld [vmem:[#allocation8 + $0x128] sm:$0xf0]  ;;  %v4755_v56 = vld [vmem:[#allocation8 + $0x24] sm:$0xf] }
 0x2d7   :  { %v2798_v52 = vpop.f32.mrf.mxu1 }
 0x2d8   :  { %v2799_v33 = vadd.f32 %v2798_v52, %v2749_v10  ;;  %2944 = vmatmul.bf16.gmra.mxu0 %v5384_v1  ;;  %3042 = vmatmul.bf16.gmra.mxu2 %v5486_v43  ;;  %v4206_v52 = vor.u32 %v4773_v22, %v4203_v18 }
 0x2d9   :  { %3273 = vmatpush.bf16.msra.mxu3 %v4334_v60  ;;  %v4803_v60 = vld [vmem:[#allocation8 + $0x1a4] sm:$0xf] }
 0x2da   :  { %2993 = vmatmul.bf16.gmra.mxu1 %v5392_v37  ;;  %3091 = vmatmul.bf16.gmra.mxu3 %v5494_v0 }
 0x2db   :  { %v2847_v29 = vpop.f32.mrf.mxu2  ;;  %3175 = vmatpush.bf16.msra.mxu1 %v4206_v52 }
 0x2dc   :  { %v2848_v47 = vadd.f32 %v2847_v29, %v2799_v33  ;;  %v4262_v29 = vor.u32 %v4787_v2, %v4259_v9 }
 0x2dd   :  { %v2896_v10 = vpop.f32.mrf.mxu3  ;;  %v2751_v28 = vpop.f32.mrf.mxu0 }
 0x2de   :  { %v5571_v13 = vadd.f32 %v2896_v10, %v2848_v47  ;;  %v4323_v47 = vld [vmem:[#allocation8 + $0x1a8] sm:$0xf0]  ;;  %3225 = vmatpush.bf16.msra.mxu2 %v4262_v29  ;;  %v4785_v29 = vld [vmem:[#allocation8 + $0x114] sm:$0xf] }
 0x2df   :  { %v2800_v58 = vpop.f32.mrf.mxu1 }
 0x2e0   :  { %v2801_v62 = vadd.f32 %v2800_v58, %v2751_v28  ;;  %v4134_v28 = vor.u32 %v4755_v56, %v4131_v31 }
 0x2e2   :  { %3127 = vmatpush.bf16.msra.mxu0 %v4134_v28  ;;  %v4123_v28 = vld [vmem:[#allocation8 + $0x18] sm:$0xf0] }
 0x2e3   :  { %v2849_v11 = vpop.f32.mrf.mxu2 }
 0x2e4   :  { %v2850_v5 = vadd.f32 %v2849_v11, %v2801_v62  ;;  %v4771_v11 = vld [vmem:[#allocation8 + $0xa4] sm:$0xf] }
 0x2e5   :  { %v2898_v0 = vpop.f32.mrf.mxu3  ;;  %v2754_v43 = vpop.f32.mrf.mxu0 }
 0x2e6   :  { %v5573_v41 = vadd.f32 %v2898_v0, %v2850_v5  ;;  %v4326_v0 = vor.u32 %v4803_v60, %v4323_v47  ;;  %v4195_v5 = vld [vmem:[#allocation8 + $0xa8] sm:$0xf0]  ;;  %v4251_v60 = vld [vmem:[#allocation8 + $0x118] sm:$0xf0]  ;;  %v4753_v47 = vld [vmem:[#allocation8 + $0x14] sm:$0xf] }
 0x2e7   :  { %v2803_v57 = vpop.f32.mrf.mxu1 }
 0x2e8   :  { %v2804_v33 = vadd.f32 %v2803_v57, %v2754_v43  ;;  %2949 = vmatmul.bf16.gmra.mxu0 %v5396_v63  ;;  %3047 = vmatmul.bf16.gmra.mxu2 %v5498_v3  ;;  %v4198_v57 = vor.u32 %v4771_v11, %v4195_v5 }
 0x2e9   :  { %3274 = vmatpush.bf16.msra.mxu3 %v4326_v0  ;;  %v4801_v0 = vld [vmem:[#allocation8 + $0x194] sm:$0xf] }
 0x2ea   :  { %2998 = vmatmul.bf16.gmra.mxu1 %v5404_v54  ;;  %3096 = vmatmul.bf16.gmra.mxu3 %v5506_v23 }
 0x2eb   :  { %v2852_v10 = vpop.f32.mrf.mxu2  ;;  %3176 = vmatpush.bf16.msra.mxu1 %v4198_v57 }
 0x2ec   :  { %v2853_v58 = vadd.f32 %v2852_v10, %v2804_v33  ;;  %v4254_v10 = vor.u32 %v4785_v29, %v4251_v60 }
 0x2ed   :  { %v2901_v43 = vpop.f32.mrf.mxu3  ;;  %v2756_v62 = vpop.f32.mrf.mxu0 }
 0x2ee   :  { %v5579_v18 = vadd.f32 %v2901_v43, %v2853_v58  ;;  %v4315_v58 = vld [vmem:[#allocation8 + $0x198] sm:$0xf0]  ;;  %3226 = vmatpush.bf16.msra.mxu2 %v4254_v10  ;;  %v4783_v10 = vld [vmem:[#allocation8 + $0x104] sm:$0xf] }
 0x2ef   :  { %v2805_v22 = vpop.f32.mrf.mxu1 }
 0x2f0   :  { %v2806_v52 = vadd.f32 %v2805_v22, %v2756_v62  ;;  %v4126_v62 = vor.u32 %v4753_v47, %v4123_v28 }
 0x2f2   :  { %3128 = vmatpush.bf16.msra.mxu0 %v4126_v62  ;;  %v4115_v62 = vld [vmem:[#allocation8 + $0x8] sm:$0xf0] }
 0x2f3   :  { %v2854_v2 = vpop.f32.mrf.mxu2 }
 0x2f4   :  { %v2855_v9 = vadd.f32 %v2854_v2, %v2806_v52  ;;  %v4769_v2 = vld [vmem:[#allocation8 + $0x94] sm:$0xf] }
 0x2f5   :  { %v2903_v23 = vpop.f32.mrf.mxu3  ;;  %v2759_v3 = vpop.f32.mrf.mxu0 }
 0x2f6   :  { %v5581_v31 = vadd.f32 %v2903_v23, %v2855_v9  ;;  %v4318_v23 = vor.u32 %v4801_v0, %v4315_v58  ;;  %v4187_v9 = vld [vmem:[#allocation8 + $0x98] sm:$0xf0]  ;;  %v4243_v0 = vld [vmem:[#allocation8 + $0x108] sm:$0xf0]  ;;  %v4751_v58 = vld [vmem:[#allocation8 + $0x4] sm:$0xf] }
 0x2f7   :  { %v2808_v56 = vpop.f32.mrf.mxu1 }
 0x2f8   :  { %v2809_v33 = vadd.f32 %v2808_v56, %v2759_v3  ;;  %2954 = vmatmul.bf16.gmra.mxu0 %v5408_v39  ;;  %3052 = vmatmul.bf16.gmra.mxu2 %v5510_v26  ;;  %v4190_v56 = vor.u32 %v4769_v2, %v4187_v9 }
 0x2f9   :  { %3275 = vmatpush.bf16.msra.mxu3 %v4318_v23  ;;  %v4799_v23 = vld [vmem:[#allocation8 + $0x184] sm:$0xf] }
 0x2fa   :  { %3003 = vmatmul.bf16.gmra.mxu1 %v5416_v19  ;;  %3101 = vmatmul.bf16.gmra.mxu3 %v5518_v38 }
 0x2fb   :  { %v2857_v43 = vpop.f32.mrf.mxu2  ;;  %3177 = vmatpush.bf16.msra.mxu1 %v4190_v56 }
 0x2fc   :  { %v2858_v22 = vadd.f32 %v2857_v43, %v2809_v33  ;;  %v4246_v43 = vor.u32 %v4783_v10, %v4243_v0 }
 0x2fd   :  { %v2906_v3 = vpop.f32.mrf.mxu3  ;;  %v2761_v52 = vpop.f32.mrf.mxu0 }
 0x2fe   :  { %v5587_v5 = vadd.f32 %v2906_v3, %v2858_v22  ;;  %v4307_v22 = vld [vmem:[#allocation8 + $0x188] sm:$0xf0]  ;;  %3227 = vmatpush.bf16.msra.mxu2 %v4246_v43 }
 0x2ff   :  { %v2810_v11 = vpop.f32.mrf.mxu1  ;;  %v5878_v43 = vld [vmem:[#allocation36_spill] sm:$0xff] }
 0x300   :  { %v2811_v57 = vadd.f32 %v2810_v11, %v2761_v52  ;;  %v4118_v52 = vor.u32 %v4751_v58, %v4115_v62 }
 0x302   :  { %3129 = vmatpush.bf16.msra.mxu0 %v4118_v52 }
 0x303   :  { %v2859_v29 = vpop.f32.mrf.mxu2 }
 0x304   :  { %v2860_v60 = vadd.f32 %v2859_v29, %v2811_v57  ;;  %v4767_v29 = vld [vmem:[#allocation8 + $0x84] sm:$0xf] }
 0x305   :  { %v2908_v38 = vpop.f32.mrf.mxu3  ;;  %v2764_v26 = vpop.f32.mrf.mxu0 }
 0x306   :  { %v5589_v28 = vadd.f32 %v2908_v38, %v2860_v60  ;;  %v4310_v38 = vor.u32 %v4799_v23, %v4307_v22  ;;  %v4179_v60 = vld [vmem:[#allocation8 + $0x88] sm:$0xf0]  ;;  %v4861_v23 = vld [vmem:[#allocation8 + $0x374] sm:$0xf]  ;;  %v4555_v22 = vld [vmem:[#allocation8 + $0x378] sm:$0xf0] }
 0x307   :  { %v2813_v47 = vpop.f32.mrf.mxu1  ;;  %v4558_v52 = vor.u32 %v4861_v23, %v4555_v22 }
 0x308   :  { %v2814_v33 = vadd.f32 %v2813_v47, %v2764_v26  ;;  %2959 = vmatmul.bf16.gmra.mxu0 %v5420_v14  ;;  %3057 = vmatmul.bf16.gmra.mxu2 %v5522_v44  ;;  %v4182_v47 = vor.u32 %v4767_v29, %v4179_v60 }
 0x309   :  { %3276 = vmatpush.bf16.msra.mxu3 %v4310_v38  ;;  %v4427_v38 = vld [vmem:[#allocation8 + $0x278] sm:$0xf0]  ;;  %3416 = vmatpush.bf16.msrb.mxu2 %v4558_v52  ;;  %v4859_v52 = vld [vmem:[#allocation8 + $0x364] sm:$0xf] }
 0x30a   :  { %3008 = vmatmul.bf16.gmra.mxu1 %v5428_v30  ;;  %3106 = vmatmul.bf16.gmra.mxu3 %v5530_v55 }
 0x30b   :  { %v2862_v3 = vpop.f32.mrf.mxu2  ;;  %3178 = vmatpush.bf16.msra.mxu1 %v4182_v47 }
 0x30c   :  { %v2863_v11 = vadd.f32 %v2862_v3, %v2814_v33  ;;  %v4829_v3 = vld [vmem:[#allocation8 + $0x274] sm:$0xf] }
 0x30d   :  { %v2911_v26 = vpop.f32.mrf.mxu3  ;;  %v2766_v57 = vpop.f32.mrf.mxu0 }
 0x30e   :  { %v5595_v9 = vadd.f32 %v2911_v26, %v2863_v11  ;;  %v4877_v11 = vld [vmem:[#allocation8 + $0x3f4] sm:$0xf]  ;;  %v4619_v26 = vld [vmem:[#allocation8 + $0x3f8] sm:$0xf0] }
 0x30f   :  { %v2815_v2 = vpop.f32.mrf.mxu1 }
 0x310   :  { %v2816_v56 = vadd.f32 %v2815_v2, %v2766_v57  ;;  %v4430_v2 = vor.u32 %v4829_v3, %v4427_v38  ;;  %v4547_v38 = vld [vmem:[#allocation8 + $0x368] sm:$0xf0] }
 0x312   :  { %3318 = vmatpush.bf16.msrb.mxu0 %v4430_v2  ;;  %v4875_v2 = vld [vmem:[#allocation8 + $0x3e4] sm:$0xf] }
 0x313   :  { %v2864_v10 = vpop.f32.mrf.mxu2 }
 0x314   :  { %v2865_v0 = vadd.f32 %v2864_v10, %v2816_v56 }
 0x315   :  { %v2913_v55 = vpop.f32.mrf.mxu3  ;;  %v2769_v44 = vpop.f32.mrf.mxu0 }
 0x316   :  { %v5597_v62 = vadd.f32 %v2913_v55, %v2865_v0  ;;  %v4622_v55 = vor.u32 %v4877_v11, %v4619_v26  ;;  %v4845_v0 = vld [vmem:[#allocation8 + $0x2f4] sm:$0xf]  ;;  %v4827_v11 = vld [vmem:[#allocation8 + $0x264] sm:$0xf] }
 0x317   :  { %v2818_v58 = vpop.f32.mrf.mxu1 }
 0x318   :  { %v2819_v33 = vadd.f32 %v2818_v58, %v2769_v44  ;;  %2964 = vmatmul.bf16.gmra.mxu0 %v5432_v32  ;;  %3062 = vmatmul.bf16.gmra.mxu2 %v5534_v34  ;;  %v4491_v58 = vld [vmem:[#allocation8 + $0x2f8] sm:$0xf0] }
 0x319   :  { %3465 = vmatpush.bf16.msrb.mxu3 %v4622_v55  ;;  %v4494_v23 = vor.u32 %v4845_v0, %v4491_v58  ;;  %v4611_v55 = vld [vmem:[#allocation8 + $0x3e8] sm:$0xf0]  ;;  %v4843_v0 = vld [vmem:[#allocation8 + $0x2e4] sm:$0xf] }
 0x31a   :  { %3013 = vmatmul.bf16.gmra.mxu1 %v5878_v43  ;;  %3111 = vmatmul.bf16.gmra.mxu3 %v5542_v15  ;;  %v4483_v58 = vld [vmem:[#allocation8 + $0x2e8] sm:$0xf0] }
 0x31b   :  { %v2867_v57 = vpop.f32.mrf.mxu2  ;;  %3367 = vmatpush.bf16.msrb.mxu1 %v4494_v23 }
 0x31c   :  { %v2868_v56 = vadd.f32 %v2867_v57, %v2819_v33  ;;  %v4419_v57 = vld [vmem:[#allocation8 + $0x268] sm:$0xf0] }
 0x31d   :  { %v2916_v44 = vpop.f32.mrf.mxu3  ;;  %v2771_v29 = vpop.f32.mrf.mxu0 }
 0x31e   :  { %v5603_v47 = vadd.f32 %v2916_v44, %v2868_v56 }
 0x31f   :  { %v2820_v60 = vpop.f32.mrf.mxu1 }
 0x320   :  { %v2821_v10 = vadd.f32 %v2820_v60, %v2771_v29 }
 0x323   :  { %v2869_v15 = vpop.f32.mrf.mxu2 }
 0x324   :  { %v2870_v22 = vadd.f32 %v2869_v15, %v2821_v10  ;;  %v4550_v15 = vor.u32 %v4859_v52, %v4547_v38 }
 0x325   :  { %v2918_v34 = vpop.f32.mrf.mxu3  ;;  %v2774_v43 = vpop.f32.mrf.mxu0 }
 0x326   :  { %v5605_v3 = vadd.f32 %v2918_v34, %v2870_v22  ;;  %3417 = vmatpush.bf16.msrb.mxu2 %v4550_v15  ;;  %v4486_v22 = vor.u32 %v4843_v0, %v4483_v58 }
 0x327   :  { %v2823_v32 = vpop.f32.mrf.mxu1 }
 0x328   :  { %v2824_v33 = vadd.f32 %v2823_v32, %v2774_v43  ;;  %2969 = vmatmul.bf16.gmra.mxu0 %v5447_v48  ;;  %3067 = vmatmul.bf16.gmra.mxu2 %v5546_v25  ;;  %v4422_v32 = vor.u32 %v4827_v11, %v4419_v57  ;;  %v4614_v43 = vor.u32 %v4875_v2, %v4611_v55  ;;  %v4857_v57 = vld [vmem:[#allocation8 + $0x354] sm:$0xf]  ;;  %v4539_v2 = vld [vmem:[#allocation8 + $0x358] sm:$0xf0] }
 0x329   :  { %3368 = vmatpush.bf16.msrb.mxu1 %v4486_v22  ;;  %v4825_v55 = vld [vmem:[#allocation8 + $0x254] sm:$0xf]  ;;  %v4475_v22 = vld [vmem:[#allocation8 + $0x2d8] sm:$0xf0] }
 0x32a   :  { %3018 = vmatmul.bf16.gmra.mxu1 %v5458_v6  ;;  %3116 = vmatmul.bf16.gmra.mxu3 %v5553_v53 }
 0x32b   :  { %v2872_v26 = vpop.f32.mrf.mxu2  ;;  %3319 = vmatpush.bf16.msrb.mxu0 %v4422_v32  ;;  %3466 = vmatpush.bf16.msrb.mxu3 %v4614_v43 }
 0x32c   :  { %v2873_v56 = vadd.f32 %v2872_v26, %v2824_v33  ;;  %v5623_v26 = vld [vmem:[%s5796_s4] sm:$0x3]  ;;  %s5029_s4 = smov [#allocation10]  }
 0x32d   :  { %v2921_v34 = vpop.f32.mrf.mxu3  ;;  %v2776_v44 = vpop.f32.mrf.mxu0  ;;  %s3582_s17 = sshll.u32 %s5029_s4, 4  ;;  %s3583_s17 = int_to_ptr.vmem [resolvable:$true] %s3582_s17 }
 0x32e   :  { %v5611_v60 = vadd.f32 %v2921_v34, %v2873_v56  ;;  %v4542_v34 = vor.u32 %v4857_v57, %v4539_v2 }
 0x32f   :  { %v2825_v29 = vpop.f32.mrf.mxu1 }
 0x330   :  { %v2826_v10 = vadd.f32 %v2825_v29, %v2776_v44  ;;  %3418 = vmatpush.bf16.msrb.mxu2 %v4542_v34  ;;  %v5879_v34 = vld [vmem:[#allocation21_spill] sm:$0xff] }
 0x333   :  { %v2874_v23 = vpop.f32.mrf.mxu2 }
 0x334   :  { %v2875_v52 = vadd.f32 %v2874_v23, %v2826_v10  ;;  %v4841_v23 = vld [vmem:[#allocation8 + $0x2d4] sm:$0xf] }
 0x335   :  { %v2923_v38 = vpop.f32.mrf.mxu3  ;;  %v2935_v53 = vpop.f32.mrf.mxu0 }
 0x336   :  { %v5613_v33 = vadd.f32 %v2923_v38, %v2875_v52  ;;  %v2936_v11 = vadd.f32 %v2935_v53, %v5555_v7  ;;  %v4411_v53 = vld [vmem:[#allocation8 + $0x258] sm:$0xf0]  ;;  %v4873_v7 = vld [vmem:[#allocation8 + $0x3d4] sm:$0xf]  ;;  %v4478_v38 = vor.u32 %v4841_v23, %v4475_v22 }
 0x337   :  { %v2984_v25 = vpop.f32.mrf.mxu1  ;;  %v4414_v32 = vor.u32 %v4825_v55, %v4411_v53  ;;  %v5880_v53 = vld [vmem:[#allocation22_spill] sm:$0xff] }
 0x338   :  { %3130 = vmatmul.bf16.vlgmr.msra.gmra.mxu0 %v5154_v61  ;;  %3228 = vmatmul.bf16.vlgmr.msra.gmra.mxu2 %v5256_v20  ;;  %v2985_v15 = vadd.f32 %v2984_v25, %v2936_v11  ;;  %v4603_v61 = vld [vmem:[#allocation8 + $0x3d8] sm:$0xf0] }
 0x339   :  { %v4606_v43 = vor.u32 %v4873_v7, %v4603_v61  ;;  %3320 = vmatpush.bf16.msrb.mxu0 %v4414_v32  ;;  %3369 = vmatpush.bf16.msrb.mxu1 %v4478_v38  ;;  %v4855_v61 = vld [vmem:[#allocation8 + $0x344] sm:$0xf] }
 0x33a   :  { %3179 = vmatmul.bf16.vlgmr.msra.gmra.mxu1 %v5162_v16  ;;  %3277 = vmatmul.bf16.vlgmr.msra.gmra.mxu3 %v5264_v45  ;;  %v5626_v16 = vperm.slane %v5623_v26, 0  ;;  %v4823_v32 = vld [vmem:[#allocation8 + $0x244] sm:$0xf] }
 0x33b   :  { %v3033_v56 = vpop.f32.mrf.mxu2  ;;  %3467 = vmatpush.bf16.msrb.mxu3 %v4606_v43  ;;  %v4403_v43 = vld [vmem:[#allocation8 + $0x248] sm:$0xf0] }
 0x33c   :  { %v3034_v44 = vadd.f32 %v3033_v56, %v2985_v15 }
 0x33d   :  { %v3082_v20 = vpop.f32.mrf.mxu3  ;;  %v2937_v45 = vpop.f32.mrf.mxu0 }
 0x33e   :  { %v3083_v10 = vadd.f32 %v3082_v20, %v3034_v44  ;;  %v2938_v25 = vadd.f32 %v2937_v45, %v5557_v27  ;;  %v4531_v44 = vld [vmem:[#allocation8 + $0x348] sm:$0xf0] }
 0x33f   :  { %v2986_v29 = vpop.f32.mrf.mxu1  ;;  %v4534_v45 = vor.u32 %v4855_v61, %v4531_v44  ;;  %v5881_v61 = vld [vmem:[#allocation23_spill] sm:$0xff]  ;;  %v5882_v44 = vld [vmem:[#allocation24_spill] sm:$0xff] }
 0x340   :  { %v3514_v0 = vadd.f32 %v3083_v10, %v5626_v16  ;;  %v2987_v58 = vadd.f32 %v2986_v29, %v2938_v25  ;;  %v4871_v29 = vld [vmem:[#allocation8 + $0x3c4] sm:$0xf]  ;;  %v4406_v25 = vor.u32 %v4823_v32, %v4403_v43  ;;  %v4523_v32 = vld [vmem:[#allocation8 + $0x338] sm:$0xf0] }
 0x341   :  { %3419 = vmatpush.bf16.msrb.mxu2 %v4534_v45  ;;  %v4853_v45 = vld [vmem:[#allocation8 + $0x334] sm:$0xf] }
 0x342   :  { %3546 = vst [vmem:[#allocation10] sm:$0xff] %v3514_v0  ;;  %v4595_v0 = vld [vmem:[#allocation8 + $0x3c8] sm:$0xf0]  ;;  %3321 = vmatpush.bf16.msrb.mxu0 %v4406_v25 }
 0x343   :  { %v3035_v52 = vpop.f32.mrf.mxu2 }
 0x344   :  { %v3036_v11 = vadd.f32 %v3035_v52, %v2987_v58 }
 0x345   :  { %v3084_v15 = vpop.f32.mrf.mxu3  ;;  %v2940_v57 = vpop.f32.mrf.mxu0 }
 0x346   :  { %v3085_v55 = vadd.f32 %v3084_v15, %v3036_v11  ;;  %v2941_v56 = vadd.f32 %v2940_v57, %v5563_v21  ;;  %v4839_v11 = vld [vmem:[#allocation8 + $0x2c4] sm:$0xf]  ;;  %v4467_v15 = vld [vmem:[#allocation8 + $0x2c8] sm:$0xf0] }
 0x347   :  { %v2989_v2 = vpop.f32.mrf.mxu1 }
 0x348   :  { %3135 = vmatmul.bf16.gmra.mxu0 %v5166_v46  ;;  %v3516_v27 = vadd.f32 %v3085_v55, %v5626_v16  ;;  %3233 = vmatmul.bf16.gmra.mxu2 %v5879_v34  ;;  %v2990_v7 = vadd.f32 %v2989_v2, %v2941_v56  ;;  %v4470_v2 = vor.u32 %v4839_v11, %v4467_v15  ;;  %v4837_v11 = vld [vmem:[#allocation8 + $0x2b4] sm:$0xf]  ;;  %v4459_v15 = vld [vmem:[#allocation8 + $0x2b8] sm:$0xf0] }
 0x34a   :  { %3184 = vmatmul.bf16.gmra.mxu1 %v5174_v8  ;;  %3282 = vmatmul.bf16.gmra.mxu3 %v5880_v53  ;;  %3548 = vst [vmem:[#allocation10 + $0x10] sm:$0xff] %v3516_v27  ;;  %v4598_v8 = vor.u32 %v4871_v29, %v4595_v0  ;;  %v4526_v29 = vor.u32 %v4853_v45, %v4523_v32  ;;  %v4515_v45 = vld [vmem:[#allocation8 + $0x328] sm:$0xf0] }
 0x34b   :  { %v3038_v20 = vpop.f32.mrf.mxu2  ;;  %3370 = vmatpush.bf16.msrb.mxu1 %v4470_v2  ;;  %v4462_v2 = vor.u32 %v4837_v11, %v4459_v15 }
 0x34c   :  { %v3039_v21 = vadd.f32 %v3038_v20, %v2990_v7  ;;  %3468 = vmatpush.bf16.msrb.mxu3 %v4598_v8  ;;  %3420 = vmatpush.bf16.msrb.mxu2 %v4526_v29  ;;  %v4819_v29 = vld [vmem:[#allocation8 + $0x224] sm:$0xf] }
 0x34d   :  { %v3087_v10 = vpop.f32.mrf.mxu3  ;;  %v2942_v46 = vpop.f32.mrf.mxu0 }
 0x34e   :  { %v3088_v23 = vadd.f32 %v3087_v10, %v3039_v21  ;;  %v2943_v22 = vadd.f32 %v2942_v46, %v5565_v40  ;;  %v4821_v21 = vld [vmem:[#allocation8 + $0x234] sm:$0xf]  ;;  %v4395_v10 = vld [vmem:[#allocation8 + $0x238] sm:$0xf0] }
 0x34f   :  { %v2991_v58 = vpop.f32.mrf.mxu1  ;;  %v4869_v46 = vld [vmem:[#allocation8 + $0x3b4] sm:$0xf]  ;;  %v4398_v0 = vor.u32 %v4821_v21, %v4395_v10  ;;  %3371 = vmatpush.bf16.msrb.mxu1 %v4462_v2  ;;  %v4387_v21 = vld [vmem:[#allocation8 + $0x228] sm:$0xf0]  ;;  %v4867_v10 = vld [vmem:[#allocation8 + $0x3a4] sm:$0xf] }
 0x350   :  { %v3518_v52 = vadd.f32 %v3088_v23, %v5626_v16  ;;  %v2992_v38 = vadd.f32 %v2991_v58, %v2943_v22  ;;  %v4587_v58 = vld [vmem:[#allocation8 + $0x3b8] sm:$0xf0] }
 0x351   :  { %3322 = vmatpush.bf16.msrb.mxu0 %v4398_v0 }
 0x352   :  { %3550 = vst [vmem:[#allocation10 + $0x20] sm:$0xff] %v3518_v52 }
 0x353   :  { %v3040_v57 = vpop.f32.mrf.mxu2 }
 0x354   :  { %v3041_v55 = vadd.f32 %v3040_v57, %v2992_v38 }
 0x355   :  { %v3089_v56 = vpop.f32.mrf.mxu3  ;;  %v2945_v27 = vpop.f32.mrf.mxu0 }
 0x356   :  { %v3090_v53 = vadd.f32 %v3089_v56, %v3041_v55  ;;  %v2946_v7 = vadd.f32 %v2945_v27, %v5571_v13 }
 0x357   :  { %v2994_v34 = vpop.f32.mrf.mxu1 }
 0x358   :  { %3140 = vmatmul.bf16.gmra.mxu0 %v5178_v36  ;;  %v3520_v40 = vadd.f32 %v3090_v53, %v5626_v16  ;;  %3238 = vmatmul.bf16.gmra.mxu2 %v5881_v61  ;;  %v2995_v20 = vadd.f32 %v2994_v34, %v2946_v7  ;;  %v5884_v61 = vld [vmem:[#allocation26_spill] sm:$0xff] }
 0x35a   :  { %3189 = vmatmul.bf16.gmra.mxu1 %v5186_v59  ;;  %3287 = vmatmul.bf16.gmra.mxu3 %v5882_v44  ;;  %3552 = vst [vmem:[#allocation10 + $0x30] sm:$0xff] %v3520_v40  ;;  %v4590_v59 = vor.u32 %v4869_v46, %v4587_v58  ;;  %v5883_v40 = vld [vmem:[#allocation25_spill] sm:$0xff] }
 0x35b   :  { %v3043_v43 = vpop.f32.mrf.mxu2 }
 0x35c   :  { %v3044_v13 = vadd.f32 %v3043_v43, %v2995_v20  ;;  %3469 = vmatpush.bf16.msrb.mxu3 %v4590_v59  ;;  %v4851_v20 = vld [vmem:[#allocation8 + $0x324] sm:$0xf] }
 0x35d   :  { %v3092_v25 = vpop.f32.mrf.mxu3  ;;  %v2947_v36 = vpop.f32.mrf.mxu0  ;;  %v4518_v43 = vor.u32 %v4851_v20, %v4515_v45  ;;  %v4379_v20 = vld [vmem:[#allocation8 + $0x218] sm:$0xf0]  ;;  %v4865_v45 = vld [vmem:[#allocation8 + $0x394] sm:$0xf] }
 0x35e   :  { %v3093_v23 = vadd.f32 %v3092_v25, %v3044_v13  ;;  %v2948_v22 = vadd.f32 %v2947_v36, %v5573_v41  ;;  %v4390_v13 = vor.u32 %v4819_v29, %v4387_v21  ;;  %v4579_v25 = vld [vmem:[#allocation8 + $0x3a8] sm:$0xf0]  ;;  %v4571_v29 = vld [vmem:[#allocation8 + $0x398] sm:$0xf0] }
 0x35f   :  { %v2996_v8 = vpop.f32.mrf.mxu1  ;;  %3421 = vmatpush.bf16.msrb.mxu2 %v4518_v43 }
 0x360   :  { %v3522_v52 = vadd.f32 %v3093_v23, %v5626_v16  ;;  %v2997_v38 = vadd.f32 %v2996_v8, %v2948_v22  ;;  %3323 = vmatpush.bf16.msrb.mxu0 %v4390_v13  ;;  %v4835_v23 = vld [vmem:[#allocation8 + $0x2a4] sm:$0xf]  ;;  %v4451_v22 = vld [vmem:[#allocation8 + $0x2a8] sm:$0xf0]  ;;  %v4833_v13 = vld [vmem:[#allocation8 + $0x294] sm:$0xf] }
 0x362   :  { %3554 = vst [vmem:[#allocation10 + $0x40] sm:$0xff] %v3522_v52 }
 0x363   :  { %v3045_v57 = vpop.f32.mrf.mxu2 }
 0x364   :  { %v3046_v55 = vadd.f32 %v3045_v57, %v2997_v38  ;;  %v4454_v38 = vor.u32 %v4835_v23, %v4451_v22 }
 0x365   :  { %v3094_v56 = vpop.f32.mrf.mxu3  ;;  %v2950_v27 = vpop.f32.mrf.mxu0 }
 0x366   :  { %v3095_v53 = vadd.f32 %v3094_v56, %v3046_v55  ;;  %v2951_v7 = vadd.f32 %v2950_v27, %v5579_v18  ;;  %3372 = vmatpush.bf16.msrb.mxu1 %v4454_v38  ;;  %v5885_v27 = vld [vmem:[#allocation27_spill] sm:$0xff]  ;;  %v5888_v38 = vld [vmem:[#allocation16_spill] sm:$0xff] }
 0x367   :  { %v2999_v34 = vpop.f32.mrf.mxu1 }
 0x368   :  { %3145 = vmatmul.bf16.gmra.mxu0 %v5190_v24  ;;  %v3524_v41 = vadd.f32 %v3095_v53, %v5626_v16  ;;  %3243 = vmatmul.bf16.gmra.mxu2 %v5883_v40  ;;  %v3000_v44 = vadd.f32 %v2999_v34, %v2951_v7  ;;  %v5886_v34 = vld [vmem:[#allocation28_spill] sm:$0xff]  ;;  %v4849_v7 = vld [vmem:[#allocation8 + $0x314] sm:$0xf] }
 0x36a   :  { %3194 = vmatmul.bf16.gmra.mxu1 %v5198_v51  ;;  %3292 = vmatmul.bf16.gmra.mxu3 %v5884_v61  ;;  %3556 = vst [vmem:[#allocation10 + $0x50] sm:$0xff] %v3524_v41  ;;  %v4582_v51 = vor.u32 %v4867_v10, %v4579_v25  ;;  %v4507_v41 = vld [vmem:[#allocation8 + $0x318] sm:$0xf0] }
 0x36b   :  { %v3048_v32 = vpop.f32.mrf.mxu2  ;;  %v4510_v61 = vor.u32 %v4849_v7, %v4507_v41  ;;  %v4443_v25 = vld [vmem:[#allocation8 + $0x298] sm:$0xf0] }
 0x36c   :  { %v3049_v18 = vadd.f32 %v3048_v32, %v3000_v44  ;;  %3470 = vmatpush.bf16.msrb.mxu3 %v4582_v51  ;;  %v4817_v44 = vld [vmem:[#allocation8 + $0x214] sm:$0xf]  ;;  %v4446_v51 = vor.u32 %v4833_v13, %v4443_v25 }
 0x36d   :  { %v3097_v46 = vpop.f32.mrf.mxu3  ;;  %v2952_v24 = vpop.f32.mrf.mxu0  ;;  %v4382_v43 = vor.u32 %v4817_v44, %v4379_v20  ;;  %3422 = vmatpush.bf16.msrb.mxu2 %v4510_v61  ;;  %v4563_v61 = vld [vmem:[#allocation8 + $0x388] sm:$0xf0] }
 0x36e   :  { %v3098_v0 = vadd.f32 %v3097_v46, %v3049_v18  ;;  %v2953_v58 = vadd.f32 %v2952_v24, %v5581_v31  ;;  %3373 = vmatpush.bf16.msrb.mxu1 %v4446_v51  ;;  %v5892_v51 = vld [vmem:[#allocation18_spill] sm:$0xff] }
 0x36f   :  { %v3001_v36 = vpop.f32.mrf.mxu1  ;;  %3324 = vmatpush.bf16.msrb.mxu0 %v4382_v43  ;;  %v4831_v43 = vld [vmem:[#allocation8 + $0x284] sm:$0xf] }
 0x370   :  { %v3526_v8 = vadd.f32 %v3098_v0, %v5626_v16  ;;  %v3002_v59 = vadd.f32 %v3001_v36, %v2953_v58 }
 0x372   :  { %3558 = vst [vmem:[#allocation10 + $0x60] sm:$0xff] %v3526_v8 }
 0x373   :  { %v3050_v52 = vpop.f32.mrf.mxu2 }
 0x374   :  { %v3051_v11 = vadd.f32 %v3050_v52, %v3002_v59  ;;  %v5887_v52 = vld [vmem:[#allocation15_spill] sm:$0xff] }
 0x375   :  { %v3099_v15 = vpop.f32.mrf.mxu3  ;;  %v2955_v57 = vpop.f32.mrf.mxu0 }
 0x376   :  { %v3100_v55 = vadd.f32 %v3099_v15, %v3051_v11  ;;  %v2956_v56 = vadd.f32 %v2955_v57, %v5587_v5  ;;  %v5889_v11 = vld [vmem:[#allocation29_spill] sm:$0xff]  ;;  %v5890_v15 = vld [vmem:[#allocation30_spill] sm:$0xff] }
 0x377   :  { %v3004_v2 = vpop.f32.mrf.mxu1 }
 0x378   :  { %3150 = vmatmul.bf16.gmra.mxu0 %v5202_v17  ;;  %v3528_v31 = vadd.f32 %v3100_v55, %v5626_v16  ;;  %3248 = vmatmul.bf16.gmra.mxu2 %v5885_v27  ;;  %v3005_v53 = vadd.f32 %v3004_v2, %v2956_v56  ;;  %v4847_v2 = vld [vmem:[#allocation8 + $0x304] sm:$0xf]  ;;  %v4499_v55 = vld [vmem:[#allocation8 + $0x308] sm:$0xf0] }
 0x379   :  { %v4815_v27 = vld [vmem:[#allocation8 + $0x204] sm:$0xf] }
 0x37a   :  { %3199 = vmatmul.bf16.gmra.mxu1 %v5210_v42  ;;  %3297 = vmatmul.bf16.gmra.mxu3 %v5886_v34  ;;  %3560 = vst [vmem:[#allocation10 + $0x70] sm:$0xff] %v3528_v31  ;;  %v4574_v42 = vor.u32 %v4865_v45, %v4571_v29  ;;  %v4502_v31 = vor.u32 %v4847_v2, %v4499_v55  ;;  %v4371_v34 = vld [vmem:[#allocation8 + $0x208] sm:$0xf0] }
 0x37b   :  { %v3053_v40 = vpop.f32.mrf.mxu2  ;;  %v4435_v29 = vld [vmem:[#allocation8 + $0x288] sm:$0xf0] }
 0x37c   :  { %v3054_v5 = vadd.f32 %v3053_v40, %v3005_v53  ;;  %3471 = vmatpush.bf16.msrb.mxu3 %v4574_v42  ;;  %v4863_v53 = vld [vmem:[#allocation8 + $0x384] sm:$0xf]  ;;  %v4374_v40 = vor.u32 %v4815_v27, %v4371_v34  ;;  %3423 = vmatpush.bf16.msrb.mxu2 %v4502_v31  ;;  %v4438_v42 = vor.u32 %v4831_v43, %v4435_v29 }
 0x37d   :  { %v3102_v32 = vpop.f32.mrf.mxu3  ;;  %v2957_v17 = vpop.f32.mrf.mxu0  ;;  %v4566_v20 = vor.u32 %v4863_v53, %v4563_v61  ;;  %v5895_v53 = vld [vmem:[#allocation19_spill] sm:$0xff] }
 0x37e   :  { %v3103_v10 = vadd.f32 %v3102_v32, %v3054_v5  ;;  %v2958_v18 = vadd.f32 %v2957_v17, %v5589_v28  ;;  %3325 = vmatpush.bf16.msrb.mxu0 %v4374_v40  ;;  %3374 = vmatpush.bf16.msrb.mxu1 %v4438_v42 }
 0x37f   :  { %v3006_v21 = vpop.f32.mrf.mxu1 }
 0x380   :  { %v3530_v46 = vadd.f32 %v3103_v10, %v5626_v16  ;;  %v3007_v24 = vadd.f32 %v3006_v21, %v2958_v18  ;;  %3472 = vmatpush.bf16.msrb.mxu3 %v4566_v20 }
 0x382   :  { %3562 = vst [vmem:[#allocation10 + $0x80] sm:$0xff] %v3530_v46 }
 0x383   :  { %v3055_v36 = vpop.f32.mrf.mxu2 }
 0x384   :  { %v3056_v0 = vadd.f32 %v3055_v36, %v3007_v24  ;;  %v5891_v36 = vld [vmem:[#allocation17_spill] sm:$0xff] }
 0x385   :  { %v3104_v58 = vpop.f32.mrf.mxu3  ;;  %v2960_v8 = vpop.f32.mrf.mxu0 }
 0x386   :  { %v3105_v23 = vadd.f32 %v3104_v58, %v3056_v0  ;;  %v2961_v22 = vadd.f32 %v2960_v8, %v5595_v9  ;;  %v5893_v0 = vld [vmem:[#allocation31_spill] sm:$0xff]  ;;  %v5894_v58 = vld [vmem:[#allocation32_spill] sm:$0xff] }
 0x387   :  { %v3009_v59 = vpop.f32.mrf.mxu1 }
 0x388   :  { %3155 = vmatmul.bf16.gmra.mxu0 %v5887_v52  ;;  %v3532_v28 = vadd.f32 %v3105_v23, %v5626_v16  ;;  %3253 = vmatmul.bf16.gmra.mxu2 %v5889_v11  ;;  %v3010_v57 = vadd.f32 %v3009_v59, %v2961_v22 }
 0x38a   :  { %3204 = vmatmul.bf16.gmra.mxu1 %v5888_v38  ;;  %3302 = vmatmul.bf16.gmra.mxu3 %v5890_v15  ;;  %3564 = vst [vmem:[#allocation10 + $0x90] sm:$0xff] %v3532_v28 }
 0x38b   :  { %v3058_v56 = vpop.f32.mrf.mxu2 }
 0x38c   :  { %v3059_v9 = vadd.f32 %v3058_v56, %v3010_v57 }
 0x38d   :  { %v3107_v7 = vpop.f32.mrf.mxu3  ;;  %v2962_v41 = vpop.f32.mrf.mxu0 }
 0x38e   :  { %v3108_v45 = vadd.f32 %v3107_v7, %v3059_v9  ;;  %v2963_v5 = vadd.f32 %v2962_v41, %v5597_v62  ;;  %v5896_v7 = vld [vmem:[#allocation20_spill] sm:$0xff]  ;;  %v5897_v41 = vld [vmem:[#allocation33_spill] sm:$0xff] }
 0x38f   :  { %v3011_v44 = vpop.f32.mrf.mxu1 }
 0x390   :  { %v3534_v32 = vadd.f32 %v3108_v45, %v5626_v16  ;;  %v3012_v17 = vadd.f32 %v3011_v44, %v2963_v5 }
 0x392   :  { %3566 = vst [vmem:[#allocation10 + $0xa0] sm:$0xff] %v3534_v32 }
 0x393   :  { %v3060_v21 = vpop.f32.mrf.mxu2 }
 0x394   :  { %v3061_v10 = vadd.f32 %v3060_v21, %v3012_v17 }
 0x395   :  { %v3109_v18 = vpop.f32.mrf.mxu3  ;;  %v2965_v46 = vpop.f32.mrf.mxu0 }
 0x396   :  { %v3110_v13 = vadd.f32 %v3109_v18, %v3061_v10  ;;  %v2966_v25 = vadd.f32 %v2965_v46, %v5603_v47 }
 0x397   :  { %v3014_v24 = vpop.f32.mrf.mxu1 }
 0x398   :  { %3160 = vmatmul.bf16.gmra.mxu0 %v5891_v36  ;;  %v3536_v62 = vadd.f32 %v3110_v13, %v5626_v16  ;;  %3258 = vmatmul.bf16.gmra.mxu2 %v5893_v0  ;;  %v3015_v8 = vadd.f32 %v3014_v24, %v2966_v25 }
 0x39a   :  { %3209 = vmatmul.bf16.gmra.mxu1 %v5892_v51  ;;  %3307 = vmatmul.bf16.gmra.mxu3 %v5894_v58  ;;  %3568 = vst [vmem:[#allocation10 + $0xb0] sm:$0xff] %v3536_v62 }
 0x39b   :  { %v3063_v59 = vpop.f32.mrf.mxu2 }
 0x39c   :  { %v3064_v23 = vadd.f32 %v3063_v59, %v3015_v8 }
 0x39d   :  { %v3112_v22 = vpop.f32.mrf.mxu3  ;;  %v2967_v52 = vpop.f32.mrf.mxu0 }
 0x39e   :  { %v3113_v38 = vadd.f32 %v3112_v22, %v3064_v23  ;;  %v2968_v47 = vadd.f32 %v2967_v52, %v5605_v3  ;;  %v5898_v3 = vld [vmem:[#allocation34_spill] sm:$0xff] }
 0x39f   :  { %v3016_v28 = vpop.f32.mrf.mxu1 }
 0x3a0   :  { %v3538_v11 = vadd.f32 %v3113_v38, %v5626_v16  ;;  %v3017_v15 = vadd.f32 %v3016_v28, %v2968_v47  ;;  %v5901_v28 = vld [vmem:[#allocation39_spill] sm:$0xff] }
 0x3a2   :  { %3570 = vst [vmem:[#allocation10 + $0xc0] sm:$0xff] %v3538_v11 }
 0x3a3   :  { %v3065_v57 = vpop.f32.mrf.mxu2 }
 0x3a4   :  { %v3066_v2 = vadd.f32 %v3065_v57, %v3017_v15 }
 0x3a5   :  { %v3114_v55 = vpop.f32.mrf.mxu3  ;;  %v2970_v56 = vpop.f32.mrf.mxu0 }
 0x3a6   :  { %v3115_v27 = vadd.f32 %v3114_v55, %v3066_v2  ;;  %v2971_v34 = vadd.f32 %v2970_v56, %v5611_v60 }
 0x3a7   :  { %v3019_v31 = vpop.f32.mrf.mxu1 }
 0x3a8   :  { %3165 = vmatmul.bf16.gmra.mxu0 %v5895_v53  ;;  %v3540_v9 = vadd.f32 %v3115_v27, %v5626_v16  ;;  %3263 = vmatmul.bf16.gmra.mxu2 %v5897_v41  ;;  %v3020_v40 = vadd.f32 %v3019_v31, %v2971_v34 }
 0x3aa   :  { %3214 = vmatmul.bf16.gmra.mxu1 %v5896_v7  ;;  %3312 = vmatmul.bf16.gmra.mxu3 %v5898_v3  ;;  %3572 = vst [vmem:[#allocation10 + $0xd0] sm:$0xff] %v3540_v9  ;;  %v5902_v9 = vld [vmem:[#allocation40_spill] sm:$0xff]  ;;  %v5903_v7 = vld [vmem:[#allocation41_spill] sm:$0xff] }
 0x3ab   :  { %v3068_v61 = vpop.f32.mrf.mxu2 }
 0x3ac   :  { %v3069_v44 = vadd.f32 %v3068_v61, %v3020_v40 }
 0x3ad   :  { %v3117_v20 = vpop.f32.mrf.mxu3  ;;  %v2972_v45 = vpop.f32.mrf.mxu0 }
 0x3ae   :  { %v3118_v32 = vadd.f32 %v3117_v20, %v3069_v44  ;;  %v2973_v60 = vadd.f32 %v2972_v45, %v5613_v33  ;;  %v5899_v33 = vld [vmem:[#allocation37_spill] sm:$0xff] }
 0x3af   :  { %v3021_v5 = vpop.f32.mrf.mxu1 }
 0x3b0   :  { %v3542_v17 = vadd.f32 %v3118_v32, %v5626_v16  ;;  %v3022_v43 = vadd.f32 %v3021_v5, %v2973_v60 }
 0x3b2   :  { %3574 = vst [vmem:[#allocation10 + $0xe0] sm:$0xff] %v3542_v17 }
 0x3b3   :  { %v3070_v29 = vpop.f32.mrf.mxu2 }
 0x3b4   :  { %v3071_v21 = vadd.f32 %v3070_v29, %v3022_v43  ;;  %v5904_v29 = vld [vmem:[#allocation42_spill] sm:$0xff] }
 0x3b5   :  { %v3119_v42 = vpop.f32.mrf.mxu3  ;;  %v3131_v10 = vpop.f32.mrf.mxu0 }
 0x3b6   :  { %v3120_v46 = vadd.f32 %v3119_v42, %v3071_v21  ;;  %v5905_v21 = vld [vmem:[#allocation43_spill] sm:$0xff] }
 0x3b7   :  { %v3180_v18 = vpop.f32.mrf.mxu1 }
 0x3b8   :  { %v3181_v24 = vadd.f32 %v3180_v18, %v3131_v10  ;;  %3326 = vmatmul.bf16.vlgmr.msrb.gmra.mxu0 %v5360_v12  ;;  %v3544_v13 = vadd.f32 %v3120_v46, %v5626_v16  ;;  %3424 = vmatmul.bf16.vlgmr.msrb.gmra.mxu2 %v5462_v4  ;;  %v5900_v4 = vld [vmem:[#allocation38_spill] sm:$0xff] }
 0x3ba   :  { %3375 = vmatmul.bf16.vlgmr.msrb.gmra.mxu1 %v5368_v49  ;;  %3473 = vmatmul.bf16.vlgmr.msrb.gmra.mxu3 %v5899_v33  ;;  %3576 = vst [vmem:[#allocation10 + $0xf0] sm:$0xff] %v3544_v13 }
 0x3bb   :  { %v3229_v25 = vpop.f32.mrf.mxu2 }
 0x3bc   :  { %v3230_v36 = vadd.f32 %v3229_v25, %v3181_v24 }
 0x3bd   :  { %v3278_v62 = vpop.f32.mrf.mxu3  ;;  %v3133_v51 = vpop.f32.mrf.mxu0 }
 0x3be   :  { %v5691_v58 = vadd.f32 %v3278_v62, %v3230_v36 }
 0x3bf   :  { %v3182_v0 = vpop.f32.mrf.mxu1 }
 0x3c0   :  { %v3183_v8 = vadd.f32 %v3182_v0, %v3133_v51 }
 0x3c3   :  { %v3231_v59 = vpop.f32.mrf.mxu2 }
 0x3c4   :  { %v3232_v23 = vadd.f32 %v3231_v59, %v3183_v8  ;;  %v5906_v8 = vld [vmem:[#allocation44_spill] sm:$0xff]  ;;  %v5907_v59 = vld [vmem:[#allocation45_spill] sm:$0xff] }
 0x3c5   :  { %v3280_v12 = vpop.f32.mrf.mxu3  ;;  %v3136_v22 = vpop.f32.mrf.mxu0 }
 0x3c6   :  { %v5693_v52 = vadd.f32 %v3280_v12, %v3232_v23 }
 0x3c7   :  { %v3185_v16 = vpop.f32.mrf.mxu1 }
 0x3c8   :  { %v3186_v49 = vadd.f32 %v3185_v16, %v3136_v22  ;;  %3331 = vmatmul.bf16.gmra.mxu0 %v5372_v35  ;;  %3429 = vmatmul.bf16.gmra.mxu2 %v5900_v4 }
 0x3ca   :  { %3380 = vmatmul.bf16.gmra.mxu1 %v5380_v50  ;;  %3478 = vmatmul.bf16.gmra.mxu3 %v5901_v28 }
 0x3cb   :  { %v3234_v38 = vpop.f32.mrf.mxu2 }
 0x3cc   :  { %v3235_v47 = vadd.f32 %v3234_v38, %v3186_v49 }
 0x3cd   :  { %v3283_v11 = vpop.f32.mrf.mxu3  ;;  %v3138_v15 = vpop.f32.mrf.mxu0 }
 0x3ce   :  { %v5699_v2 = vadd.f32 %v3283_v11, %v3235_v47 }
 0x3cf   :  { %v3187_v57 = vpop.f32.mrf.mxu1 }
 0x3d0   :  { %v3188_v55 = vadd.f32 %v3187_v57, %v3138_v15 }
 0x3d3   :  { %v3236_v56 = vpop.f32.mrf.mxu2 }
 0x3d4   :  { %v3237_v31 = vadd.f32 %v3236_v56, %v3188_v55  ;;  %v5908_v55 = vld [vmem:[#allocation46_spill] sm:$0xff]  ;;  %v5909_v56 = vld [vmem:[#allocation47_spill] sm:$0xff] }
 0x3d5   :  { %v3285_v27 = vpop.f32.mrf.mxu3  ;;  %v3141_v34 = vpop.f32.mrf.mxu0 }
 0x3d6   :  { %v5701_v35 = vadd.f32 %v3285_v27, %v3237_v31 }
 0x3d7   :  { %v3190_v53 = vpop.f32.mrf.mxu1 }
 0x3d8   :  { %v3191_v50 = vadd.f32 %v3190_v53, %v3141_v34  ;;  %3336 = vmatmul.bf16.gmra.mxu0 %v5384_v1  ;;  %3434 = vmatmul.bf16.gmra.mxu2 %v5902_v9 }
 0x3da   :  { %3385 = vmatmul.bf16.gmra.mxu1 %v5392_v37  ;;  %3483 = vmatmul.bf16.gmra.mxu3 %v5903_v7 }
 0x3db   :  { %v3239_v41 = vpop.f32.mrf.mxu2 }
 0x3dc   :  { %v3240_v3 = vadd.f32 %v3239_v41, %v3191_v50 }
 0x3dd   :  { %v3288_v40 = vpop.f32.mrf.mxu3  ;;  %v3143_v61 = vpop.f32.mrf.mxu0 }
 0x3de   :  { %v5707_v20 = vadd.f32 %v3288_v40, %v3240_v3 }
 0x3df   :  { %v3192_v44 = vpop.f32.mrf.mxu1 }
 0x3e0   :  { %v3193_v45 = vadd.f32 %v3192_v44, %v3143_v61 }
 0x3e3   :  { %v3241_v5 = vpop.f32.mrf.mxu2 }
 0x3e4   :  { %v3242_v32 = vadd.f32 %v3241_v5, %v3193_v45  ;;  %v5910_v45 = vld [vmem:[#allocation35_spill] sm:$0xff]  ;;  %v5911_v5 = vld [vmem:[#allocation36_spill] sm:$0xff] }
 0x3e5   :  { %v3290_v60 = vpop.f32.mrf.mxu3  ;;  %v3146_v17 = vpop.f32.mrf.mxu0 }
 0x3e6   :  { %v5709_v1 = vadd.f32 %v3290_v60, %v3242_v32  ;;  %v5912_v32 = vld [vmem:[#allocation48_spill] sm:$0xff]  ;;  %v5913_v60 = vld [vmem:[#allocation49_spill] sm:$0xff] }
 0x3e7   :  { %v3195_v43 = vpop.f32.mrf.mxu1 }
 0x3e8   :  { %v3196_v37 = vadd.f32 %v3195_v43, %v3146_v17  ;;  %3341 = vmatmul.bf16.gmra.mxu0 %v5396_v63  ;;  %3439 = vmatmul.bf16.gmra.mxu2 %v5904_v29 }
 0x3ea   :  { %3390 = vmatmul.bf16.gmra.mxu1 %v5404_v54  ;;  %3488 = vmatmul.bf16.gmra.mxu3 %v5905_v21 }
 0x3eb   :  { %v3244_v42 = vpop.f32.mrf.mxu2 }
 0x3ec   :  { %v3245_v10 = vadd.f32 %v3244_v42, %v3196_v37 }
 0x3ed   :  { %v3293_v18 = vpop.f32.mrf.mxu3  ;;  %v3148_v46 = vpop.f32.mrf.mxu0 }
 0x3ee   :  { %v5715_v13 = vadd.f32 %v3293_v18, %v3245_v10 }
 0x3ef   :  { %v3197_v24 = vpop.f32.mrf.mxu1 }
 0x3f0   :  { %v3198_v33 = vadd.f32 %v3197_v24, %v3148_v46 }
 0x3f3   :  { %v3246_v25 = vpop.f32.mrf.mxu2 }
 0x3f4   :  { %v3247_v36 = vadd.f32 %v3246_v25, %v3198_v33 }
 0x3f5   :  { %v3295_v62 = vpop.f32.mrf.mxu3  ;;  %v3151_v51 = vpop.f32.mrf.mxu0 }
 0x3f6   :  { %v5717_v63 = vadd.f32 %v3295_v62, %v3247_v36 }
 0x3f7   :  { %v3200_v0 = vpop.f32.mrf.mxu1 }
 0x3f8   :  { %v3201_v54 = vadd.f32 %v3200_v0, %v3151_v51  ;;  %3346 = vmatmul.bf16.gmra.mxu0 %v5408_v39  ;;  %3444 = vmatmul.bf16.gmra.mxu2 %v5906_v8  ;;  %v5914_v51 = vld [vmem:[#allocation50_spill] sm:$0xff]  ;;  %v5915_v0 = vld [vmem:[#allocation51_spill] sm:$0xff] }
 0x3fa   :  { %3395 = vmatmul.bf16.gmra.mxu1 %v5416_v19  ;;  %3493 = vmatmul.bf16.gmra.mxu3 %v5907_v59 }
 0x3fb   :  { %v3249_v23 = vpop.f32.mrf.mxu2 }
 0x3fc   :  { %v3250_v12 = vadd.f32 %v3249_v23, %v3201_v54 }
 0x3fd   :  { %v3298_v22 = vpop.f32.mrf.mxu3  ;;  %v3153_v16 = vpop.f32.mrf.mxu0 }
 0x3fe   :  { %v5723_v4 = vadd.f32 %v3298_v22, %v3250_v12 }
 0x3ff   :  { %v3202_v49 = vpop.f32.mrf.mxu1 }
 0x400   :  { %v3203_v28 = vadd.f32 %v3202_v49, %v3153_v16 }
 0x403   :  { %v3251_v38 = vpop.f32.mrf.mxu2 }
 0x404   :  { %v3252_v47 = vadd.f32 %v3251_v38, %v3203_v28 }
 0x405   :  { %v3300_v11 = vpop.f32.mrf.mxu3  ;;  %v3156_v15 = vpop.f32.mrf.mxu0 }
 0x406   :  { %v5725_v39 = vadd.f32 %v3300_v11, %v3252_v47 }
 0x407   :  { %v3205_v57 = vpop.f32.mrf.mxu1 }
 0x408   :  { %v3206_v19 = vadd.f32 %v3205_v57, %v3156_v15  ;;  %3351 = vmatmul.bf16.gmra.mxu0 %v5420_v14  ;;  %3449 = vmatmul.bf16.gmra.mxu2 %v5908_v55  ;;  %v5753_v55 = vperm.slane %v5623_v26, 1 }
 0x40a   :  { %3400 = vmatmul.bf16.gmra.mxu1 %v5428_v30  ;;  %3498 = vmatmul.bf16.gmra.mxu3 %v5909_v56 }
 0x40b   :  { %v3254_v31 = vpop.f32.mrf.mxu2 }
 0x40c   :  { %v3255_v27 = vadd.f32 %v3254_v31, %v3206_v19 }
 0x40d   :  { %v3303_v34 = vpop.f32.mrf.mxu3  ;;  %v3158_v53 = vpop.f32.mrf.mxu0 }
 0x40e   :  { %v5731_v9 = vadd.f32 %v3303_v34, %v3255_v27 }
 0x40f   :  { %v3207_v50 = vpop.f32.mrf.mxu1 }
 0x410   :  { %v3208_v7 = vadd.f32 %v3207_v50, %v3158_v53 }
 0x413   :  { %v3256_v41 = vpop.f32.mrf.mxu2 }
 0x414   :  { %v3257_v3 = vadd.f32 %v3256_v41, %v3208_v7 }
 0x415   :  { %v3305_v40 = vpop.f32.mrf.mxu3  ;;  %v3161_v61 = vpop.f32.mrf.mxu0 }
 0x416   :  { %v5733_v14 = vadd.f32 %v3305_v40, %v3257_v3 }
 0x417   :  { %v3210_v44 = vpop.f32.mrf.mxu1 }
 0x418   :  { %v3211_v30 = vadd.f32 %v3210_v44, %v3161_v61  ;;  %3356 = vmatmul.bf16.gmra.mxu0 %v5910_v45  ;;  %3454 = vmatmul.bf16.gmra.mxu2 %v5912_v32 }
 0x41a   :  { %3405 = vmatmul.bf16.gmra.mxu1 %v5911_v5  ;;  %3503 = vmatmul.bf16.gmra.mxu3 %v5913_v60 }
 0x41b   :  { %v3259_v17 = vpop.f32.mrf.mxu2 }
 0x41c   :  { %v3260_v43 = vadd.f32 %v3259_v17, %v3211_v30 }
 0x41d   :  { %v3308_v37 = vpop.f32.mrf.mxu3  ;;  %v3163_v29 = vpop.f32.mrf.mxu0 }
 0x41e   :  { %v5739_v42 = vadd.f32 %v3308_v37, %v3260_v43 }
 0x41f   :  { %v3212_v21 = vpop.f32.mrf.mxu1 }
 0x420   :  { %v3213_v10 = vadd.f32 %v3212_v21, %v3163_v29 }
 0x423   :  { %v3261_v18 = vpop.f32.mrf.mxu2 }
 0x424   :  { %v3262_v46 = vadd.f32 %v3261_v18, %v3213_v10 }
 0x425   :  { %v3310_v24 = vpop.f32.mrf.mxu3  ;;  %v3166_v33 = vpop.f32.mrf.mxu0 }
 0x426   :  { %v5741_v36 = vadd.f32 %v3310_v24, %v3262_v46 }
 0x427   :  { %v3215_v25 = vpop.f32.mrf.mxu1 }
 0x428   :  { %v3216_v62 = vadd.f32 %v3215_v25, %v3166_v33  ;;  %3361 = vmatmul.bf16.gmra.mxu0 %v5447_v48  ;;  %3459 = vmatmul.bf16.gmra.mxu2 %v5914_v51 }
 0x42a   :  { %3410 = vmatmul.bf16.gmra.mxu1 %v5458_v6  ;;  %3508 = vmatmul.bf16.gmra.mxu3 %v5915_v0 }
 0x42b   :  { %v3264_v54 = vpop.f32.mrf.mxu2 }
 0x42c   :  { %v3265_v8 = vadd.f32 %v3264_v54, %v3216_v62 }
 0x42d   :  { %v3313_v59 = vpop.f32.mrf.mxu3  ;;  %v3168_v23 = vpop.f32.mrf.mxu0 }
 0x42e   :  { %v5747_v22 = vadd.f32 %v3313_v59, %v3265_v8 }
 0x42f   :  { %v3217_v12 = vpop.f32.mrf.mxu1 }
 0x430   :  { %v3218_v16 = vadd.f32 %v3217_v12, %v3168_v23 }
 0x433   :  { %v3266_v49 = vpop.f32.mrf.mxu2 }
 0x434   :  { %v3267_v28 = vadd.f32 %v3266_v49, %v3218_v16 }
 0x435   :  { %v3315_v38 = vpop.f32.mrf.mxu3  ;;  %v3327_v47 = vpop.f32.mrf.mxu0 }
 0x436   :  { %v5749_v48 = vadd.f32 %v3315_v38, %v3267_v28  ;;  %v3328_v6 = vadd.f32 %v3327_v47, %v5691_v58 }
 0x437   :  { %v3376_v11 = vpop.f32.mrf.mxu1 }
 0x438   :  { %v3377_v15 = vadd.f32 %v3376_v11, %v3328_v6 }
 0x43b   :  { %v3425_v57 = vpop.f32.mrf.mxu2 }
 0x43c   :  { %v3426_v19 = vadd.f32 %v3425_v57, %v3377_v15 }
 0x43d   :  { %v3474_v56 = vpop.f32.mrf.mxu3  ;;  %v3329_v31 = vpop.f32.mrf.mxu0 }
 0x43e   :  { %v3475_v34 = vadd.f32 %v3474_v56, %v3426_v19  ;;  %v3330_v53 = vadd.f32 %v3329_v31, %v5693_v52 }
 0x43f   :  { %v3378_v27 = vpop.f32.mrf.mxu1 }
 0x440   :  { %v3515_v50 = vadd.f32 %v3475_v34, %v5753_v55  ;;  %v3379_v7 = vadd.f32 %v3378_v27, %v3330_v53 }
 0x442   :  { %3547 = vst [vmem:[#allocation10 + $0x8] sm:$0xff] %v3515_v50 }
 0x443   :  { %v3427_v41 = vpop.f32.mrf.mxu2 }
 0x444   :  { %v3428_v3 = vadd.f32 %v3427_v41, %v3379_v7 }
 0x445   :  { %v3476_v40 = vpop.f32.mrf.mxu3  ;;  %v3332_v58 = vpop.f32.mrf.mxu0 }
 0x446   :  { %v3477_v44 = vadd.f32 %v3476_v40, %v3428_v3  ;;  %v3333_v30 = vadd.f32 %v3332_v58, %v5699_v2 }
 0x447   :  { %v3381_v61 = vpop.f32.mrf.mxu1 }
 0x448   :  { %v3517_v26 = vadd.f32 %v3477_v44, %v5753_v55  ;;  %v3382_v45 = vadd.f32 %v3381_v61, %v3333_v30 }
 0x44a   :  { %3549 = vst [vmem:[#allocation10 + $0x18] sm:$0xff] %v3517_v26 }
 0x44b   :  { %v3430_v5 = vpop.f32.mrf.mxu2 }
 0x44c   :  { %v3431_v32 = vadd.f32 %v3430_v5, %v3382_v45 }
 0x44d   :  { %v3479_v60 = vpop.f32.mrf.mxu3  ;;  %v3334_v52 = vpop.f32.mrf.mxu0 }
 0x44e   :  { %v3480_v43 = vadd.f32 %v3479_v60, %v3431_v32  ;;  %v3335_v37 = vadd.f32 %v3334_v52, %v5701_v35 }
 0x44f   :  { %v3383_v17 = vpop.f32.mrf.mxu1 }
 0x450   :  { %v3519_v29 = vadd.f32 %v3480_v43, %v5753_v55  ;;  %v3384_v21 = vadd.f32 %v3383_v17, %v3335_v37 }
 0x452   :  { %3551 = vst [vmem:[#allocation10 + $0x28] sm:$0xff] %v3519_v29 }
 0x453   :  { %v3432_v10 = vpop.f32.mrf.mxu2 }
 0x454   :  { %v3433_v18 = vadd.f32 %v3432_v10, %v3384_v21 }
 0x455   :  { %v3481_v46 = vpop.f32.mrf.mxu3  ;;  %v3337_v2 = vpop.f32.mrf.mxu0 }
 0x456   :  { %v3482_v33 = vadd.f32 %v3481_v46, %v3433_v18  ;;  %v3338_v25 = vadd.f32 %v3337_v2, %v5707_v20 }
 0x457   :  { %v3386_v24 = vpop.f32.mrf.mxu1 }
 0x458   :  { %v3521_v62 = vadd.f32 %v3482_v33, %v5753_v55  ;;  %v3387_v51 = vadd.f32 %v3386_v24, %v3338_v25 }
 0x45a   :  { %3553 = vst [vmem:[#allocation10 + $0x38] sm:$0xff] %v3521_v62 }
 0x45b   :  { %v3435_v0 = vpop.f32.mrf.mxu2 }
 0x45c   :  { %v3436_v54 = vadd.f32 %v3435_v0, %v3387_v51 }
 0x45d   :  { %v3484_v8 = vpop.f32.mrf.mxu3  ;;  %v3339_v35 = vpop.f32.mrf.mxu0 }
 0x45e   :  { %v3485_v23 = vadd.f32 %v3484_v8, %v3436_v54  ;;  %v3340_v12 = vadd.f32 %v3339_v35, %v5709_v1 }
 0x45f   :  { %v3388_v59 = vpop.f32.mrf.mxu1 }
 0x460   :  { %v3523_v16 = vadd.f32 %v3485_v23, %v5753_v55  ;;  %v3389_v49 = vadd.f32 %v3388_v59, %v3340_v12 }
 0x462   :  { %3555 = vst [vmem:[#allocation10 + $0x48] sm:$0xff] %v3523_v16 }
 0x463   :  { %v3437_v28 = vpop.f32.mrf.mxu2 }
 0x464   :  { %v3438_v38 = vadd.f32 %v3437_v28, %v3389_v49 }
 0x465   :  { %v3486_v47 = vpop.f32.mrf.mxu3  ;;  %v3342_v20 = vpop.f32.mrf.mxu0 }
 0x466   :  { %v3487_v6 = vadd.f32 %v3486_v47, %v3438_v38  ;;  %v3343_v15 = vadd.f32 %v3342_v20, %v5715_v13 }
 0x467   :  { %v3391_v11 = vpop.f32.mrf.mxu1 }
 0x468   :  { %v3525_v57 = vadd.f32 %v3487_v6, %v5753_v55  ;;  %v3392_v19 = vadd.f32 %v3391_v11, %v3343_v15 }
 0x46a   :  { %3557 = vst [vmem:[#allocation10 + $0x58] sm:$0xff] %v3525_v57 }
 0x46b   :  { %v3440_v56 = vpop.f32.mrf.mxu2 }
 0x46c   :  { %v3441_v31 = vadd.f32 %v3440_v56, %v3392_v19 }
 0x46d   :  { %v3489_v27 = vpop.f32.mrf.mxu3  ;;  %v3344_v1 = vpop.f32.mrf.mxu0 }
 0x46e   :  { %v3490_v53 = vadd.f32 %v3489_v27, %v3441_v31  ;;  %v3345_v50 = vadd.f32 %v3344_v1, %v5717_v63 }
 0x46f   :  { %v3393_v34 = vpop.f32.mrf.mxu1 }
 0x470   :  { %v3527_v7 = vadd.f32 %v3490_v53, %v5753_v55  ;;  %v3394_v41 = vadd.f32 %v3393_v34, %v3345_v50 }
 0x472   :  { %3559 = vst [vmem:[#allocation10 + $0x68] sm:$0xff] %v3527_v7 }
 0x473   :  { %v3442_v3 = vpop.f32.mrf.mxu2 }
 0x474   :  { %v3443_v40 = vadd.f32 %v3442_v3, %v3394_v41 }
 0x475   :  { %v3491_v58 = vpop.f32.mrf.mxu3  ;;  %v3347_v13 = vpop.f32.mrf.mxu0 }
 0x476   :  { %v3492_v44 = vadd.f32 %v3491_v58, %v3443_v40  ;;  %v3348_v30 = vadd.f32 %v3347_v13, %v5723_v4 }
 0x477   :  { %v3396_v61 = vpop.f32.mrf.mxu1 }
 0x478   :  { %v3529_v26 = vadd.f32 %v3492_v44, %v5753_v55  ;;  %v3397_v45 = vadd.f32 %v3396_v61, %v3348_v30 }
 0x47a   :  { %3561 = vst [vmem:[#allocation10 + $0x78] sm:$0xff] %v3529_v26 }
 0x47b   :  { %v3445_v5 = vpop.f32.mrf.mxu2 }
 0x47c   :  { %v3446_v32 = vadd.f32 %v3445_v5, %v3397_v45 }
 0x47d   :  { %v3494_v60 = vpop.f32.mrf.mxu3  ;;  %v3349_v63 = vpop.f32.mrf.mxu0 }
 0x47e   :  { %v3495_v17 = vadd.f32 %v3494_v60, %v3446_v32  ;;  %v3350_v43 = vadd.f32 %v3349_v63, %v5725_v39 }
 0x47f   :  { %v3398_v52 = vpop.f32.mrf.mxu1 }
 0x480   :  { %v3531_v37 = vadd.f32 %v3495_v17, %v5753_v55  ;;  %v3399_v29 = vadd.f32 %v3398_v52, %v3350_v43 }
 0x482   :  { %3563 = vst [vmem:[#allocation10 + $0x88] sm:$0xff] %v3531_v37 }
 0x483   :  { %v3447_v21 = vpop.f32.mrf.mxu2 }
 0x484   :  { %v3448_v10 = vadd.f32 %v3447_v21, %v3399_v29 }
 0x485   :  { %v3496_v18 = vpop.f32.mrf.mxu3  ;;  %v3352_v4 = vpop.f32.mrf.mxu0 }
 0x486   :  { %v3497_v2 = vadd.f32 %v3496_v18, %v3448_v10  ;;  %v3353_v24 = vadd.f32 %v3352_v4, %v5731_v9 }
 0x487   :  { %v3401_v46 = vpop.f32.mrf.mxu1 }
 0x488   :  { %v3533_v33 = vadd.f32 %v3497_v2, %v5753_v55  ;;  %v3402_v25 = vadd.f32 %v3401_v46, %v3353_v24 }
 0x48a   :  { %3565 = vst [vmem:[#allocation10 + $0x98] sm:$0xff] %v3533_v33 }
 0x48b   :  { %v3450_v62 = vpop.f32.mrf.mxu2 }
 0x48c   :  { %v3451_v51 = vadd.f32 %v3450_v62, %v3402_v25 }
 0x48d   :  { %v3499_v0 = vpop.f32.mrf.mxu3  ;;  %v3354_v39 = vpop.f32.mrf.mxu0 }
 0x48e   :  { %v3500_v8 = vadd.f32 %v3499_v0, %v3451_v51  ;;  %v3355_v35 = vadd.f32 %v3354_v39, %v5733_v14 }
 0x48f   :  { %v3403_v54 = vpop.f32.mrf.mxu1 }
 0x490   :  { %v3535_v59 = vadd.f32 %v3500_v8, %v5753_v55  ;;  %v3404_v23 = vadd.f32 %v3403_v54, %v3355_v35 }
 0x492   :  { %3567 = vst [vmem:[#allocation10 + $0xa8] sm:$0xff] %v3535_v59 }
 0x493   :  { %v3452_v12 = vpop.f32.mrf.mxu2 }
 0x494   :  { %v3453_v16 = vadd.f32 %v3452_v12, %v3404_v23 }
 0x495   :  { %v3501_v49 = vpop.f32.mrf.mxu3  ;;  %v3357_v9 = vpop.f32.mrf.mxu0 }
 0x496   :  { %v3502_v38 = vadd.f32 %v3501_v49, %v3453_v16  ;;  %v3358_v47 = vadd.f32 %v3357_v9, %v5739_v42 }
 0x497   :  { %v3406_v28 = vpop.f32.mrf.mxu1 }
 0x498   :  { %v3537_v20 = vadd.f32 %v3502_v38, %v5753_v55  ;;  %v3407_v11 = vadd.f32 %v3406_v28, %v3358_v47 }
 0x49a   :  { %3569 = vst [vmem:[#allocation10 + $0xb8] sm:$0xff] %v3537_v20 }
 0x49b   :  { %v3455_v6 = vpop.f32.mrf.mxu2 }
 0x49c   :  { %v3456_v15 = vadd.f32 %v3455_v6, %v3407_v11 }
 0x49d   :  { %v3504_v57 = vpop.f32.mrf.mxu3  ;;  %v3359_v14 = vpop.f32.mrf.mxu0 }
 0x49e   :  { %v3505_v56 = vadd.f32 %v3504_v57, %v3456_v15  ;;  %v3360_v31 = vadd.f32 %v3359_v14, %v5741_v36 }
 0x49f   :  { %v3408_v19 = vpop.f32.mrf.mxu1 }
 0x4a0   :  { %v3539_v27 = vadd.f32 %v3505_v56, %v5753_v55  ;;  %v3409_v1 = vadd.f32 %v3408_v19, %v3360_v31 }
 0x4a2   :  { %3571 = vst [vmem:[#allocation10 + $0xc8] sm:$0xff] %v3539_v27 }
 0x4a3   :  { %v3457_v34 = vpop.f32.mrf.mxu2 }
 0x4a4   :  { %v3458_v53 = vadd.f32 %v3457_v34, %v3409_v1 }
 0x4a5   :  { %v3506_v50 = vpop.f32.mrf.mxu3  ;;  %v3362_v42 = vpop.f32.mrf.mxu0 }
 0x4a6   :  { %v3507_v7 = vadd.f32 %v3506_v50, %v3458_v53  ;;  %v3363_v41 = vadd.f32 %v3362_v42, %v5747_v22 }
 0x4a7   :  { %v3411_v3 = vpop.f32.mrf.mxu1 }
 0x4a8   :  { %v3541_v40 = vadd.f32 %v3507_v7, %v5753_v55  ;;  %v3412_v58 = vadd.f32 %v3411_v3, %v3363_v41 }
 0x4aa   :  { %3573 = vst [vmem:[#allocation10 + $0xd8] sm:$0xff] %v3541_v40 }
 0x4ab   :  { %v3460_v13 = vpop.f32.mrf.mxu2 }
 0x4ac   :  { %v3461_v61 = vadd.f32 %v3460_v13, %v3412_v58 }
 0x4ad   :  { %v3509_v44 = vpop.f32.mrf.mxu3  ;;  %v3364_v36 = vpop.f32.mrf.mxu0 }
 0x4ae   :  { %v3510_v30 = vadd.f32 %v3509_v44, %v3461_v61  ;;  %v3365_v26 = vadd.f32 %v3364_v36, %v5749_v48 }
 0x4af   :  { %v3413_v5 = vpop.f32.mrf.mxu1 }
 0x4b0   :  { %v3543_v45 = vadd.f32 %v3510_v30, %v5753_v55  ;;  %v3414_v32 = vadd.f32 %v3413_v5, %v3365_v26 }
 0x4b2   :  { %3575 = vst [vmem:[#allocation10 + $0xe8] sm:$0xff] %v3543_v45 }
 0x4b3   :  { %v3462_v60 = vpop.f32.mrf.mxu2 }
 0x4b4   :  { %v3463_v63 = vadd.f32 %v3462_v60, %v3414_v32 }
 0x4b5   :  { %v3511_v22 = vpop.f32.mrf.mxu3 }
 0x4b6   :  { %v3512_v52 = vadd.f32 %v3511_v22, %v3463_v63 }
 0x4b8   :  { %v3545_v17 = vadd.f32 %v3512_v52, %v5753_v55 }
 0x4ba   :  { %3577 = vst [vmem:[#allocation10 + $0xf8] sm:$0xff] %v3545_v17 }
 0x4bb   :  { %3590 = dma.vmem_to_hbm [thread:$0]  %s3583_s17, 4096, %s3585_s20, [#allocation4], %s5023_s30, %s5023_s30, %s5024_s6  }
 0x4bc   :  { %5017 = dma.done.wait [#allocation4], 4096  }
 0x4bd   :  { %5018 = vsyncadd [#allocation4], 4294963200 }
 0x4be   :  { %3595 = vsyncpa [#allocation3], 1 }
 0x4bf   :  { %3596 = vsyncpa [#allocation6], 1 }
 0x4c0   :  { %3597 = vsyncpa [#allocation9], 1 }
 0x4c1   :  { %3598 = vsyncpa [#allocation4], 1 }

</bundles_post_ra>
